<compile_context>
chip_gen: v6e
topology: v6e:2x2x1
jax: 0.10.0
libtpu: 0.0.40
codegen_flags: <defaults>
</compile_context>

<pallas_src>
import functools

import jax
import jax.numpy as jnp
from jax.experimental import pallas as pl
from jax.experimental.pallas import tpu as pltpu

_EPS = 1e-5
_LANE = 128          # lane width: channel padding target and cout tile size
_PADW = 8            # sublane-aligned column offset of the interior in the halo scratch

# cout-tile axis must be "arbitrary": the j==0-gated scratch build relies on
# sequential j per image on one core (megacore split, if any, is on batch).
_CONV_COMPILER = pltpu.CompilerParams(
    dimension_semantics=("parallel", "arbitrary"),
    vmem_limit_bytes=32 * 1024 * 1024,
)
_ELTWISE_COMPILER = pltpu.CompilerParams(
    dimension_semantics=("parallel", "parallel"),
    vmem_limit_bytes=32 * 1024 * 1024,
)


def _ceil_to(x, m):
    return (x + m - 1) // m * m


def _pad_last(a, target):
    pad = target - a.shape[-1]
    if pad == 0:
        return a
    widths = [(0, 0)] * (a.ndim - 1) + [(0, pad)]
    return jnp.pad(a, widths)


# ----------------------------- Pallas kernels ------------------------------ #

def _conv_kernel(*refs, stride, fuse_in_affine, has_down):
    """[affine+ReLU prologue] -> 3x3 conv (stride s) [+ fused 1x1 downsample]
    -> per-channel sum/sumsq epilogue.  Grid = (image, cout-tile-of-128).

    The prologue / halo / im2col taps are built once per image (j == 0) into
    persistent VMEM scratch; every cout tile then runs 9 accumulating bf16
    MXU dots against the resident taps.
    """
    it = iter(refs)
    x_ref = next(it)
    in_scale_ref = next(it) if fuse_in_affine else None
    in_shift_ref = next(it) if fuse_in_affine else None
    w_ref = next(it)                                    # (9, Cin_pad, ct) bf16
    wd_ref = next(it) if has_down else None             # (Cin_pad, ct)    bf16
    y_ref = next(it)                                    # (1, ho, wo, ct)  bf16
    s_ref = next(it)                                    # (1, 1, 1, ct)    f32
    ss_ref = next(it)
    idn_ref = next(it) if has_down else None
    sd_ref = next(it) if has_down else None
    ssd_ref = next(it) if has_down else None
    xpad_sc = next(it)                                  # (h+2, _PADW+w+1, cin) f32
    taps_sc = next(it)                                  # (9, ho*wo, cin)  bf16
    col_sc = next(it) if stride > 1 else None           # (h+2, wo, cin)   f32

    _, h, w, cin = x_ref.shape
    ct = y_ref.shape[-1]
    ho = (h - 1) // stride + 1
    wo = (w - 1) // stride + 1
    wpad = xpad_sc.shape[1]

    # ---- per-image work, hoisted out of the cout-tile (j) loop ------------ #
    @pl.when(pl.program_id(1) == 0)
    def _build_taps():
        x = x_ref[...].reshape(h, w, cin).astype(jnp.float32)
        if fuse_in_affine:
            # BN-affine + ReLU of the previous conv, fused into this load.
            x = jnp.maximum(
                x * in_scale_ref[...].reshape(1, 1, cin)
                + in_shift_ref[...].reshape(1, 1, cin), 0.0)

        # Zero only the 1-px halo border (perimeter, not area).
        zrow = jnp.zeros((wpad, cin), jnp.float32)
        xpad_sc[0] = zrow
        xpad_sc[h + 1] = zrow
        zcol = jnp.zeros((h + 2, 1, cin), jnp.float32)
        xpad_sc[:, pl.ds(_PADW - 1, 1), :] = zcol
        xpad_sc[:, pl.ds(_PADW + w, 1), :] = zcol
        # Aligned interior store (col offset _PADW is a sublane multiple of 8).
        xpad_sc[pl.ds(1, h), pl.ds(_PADW, w), :] = x

        # im2col taps, cast once to bf16 (the MXU operand dtype).
        if stride == 1:
            for kh in range(3):
                for kw in range(3):
                    tap = xpad_sc[pl.ds(kh, ho), pl.ds(_PADW - 1 + kw, wo), :]
                    taps_sc[kh * 3 + kw] = (
                        tap.reshape(ho * wo, cin).astype(jnp.bfloat16))
        else:
            for kw in range(3):
                # strided column phase (sublane stride), staged through VMEM...
                col_sc[...] = xpad_sc[:, pl.ds(_PADW - 1 + kw, wo, stride), :]
                for kh in range(3):
                    # ... then strided rows (major-dim stride)
                    tap = col_sc[pl.ds(kh, ho, stride), :, :]
                    taps_sc[kh * 3 + kw] = (
                        tap.reshape(ho * wo, cin).astype(jnp.bfloat16))

    # ---- per-(image, cout-tile): 9 accumulating MXU passes ---------------- #
    acc = jnp.dot(taps_sc[0], w_ref[0], preferred_element_type=jnp.float32)
    for t in range(1, 9):
        acc = acc + jnp.dot(taps_sc[t], w_ref[t],
                            preferred_element_type=jnp.float32)

    y_ref[...] = acc.reshape(1, ho, wo, ct).astype(y_ref.dtype)
    s_ref[...] = jnp.sum(acc, axis=0).reshape(1, 1, 1, ct)
    ss_ref[...] = jnp.sum(acc * acc, axis=0).reshape(1, 1, 1, ct)

    if has_down:
        # stride-s 1x1 conv == matmul on the centre tap of the im2col taps.
        d = jnp.dot(taps_sc[4], wd_ref[...], preferred_element_type=jnp.float32)
        idn_ref[...] = d.reshape(1, ho, wo, ct).astype(idn_ref.dtype)
        sd_ref[...] = jnp.sum(d, axis=0).reshape(1, 1, 1, ct)
        ssd_ref[...] = jnp.sum(d * d, axis=0).reshape(1, 1, 1, ct)


def _residual_kernel(*refs, has_down):
    """out = relu(bn2(y2) + identity).  identity = bn_d(downsample) or raw x."""
    if has_down:
        y2_ref, idn_ref, sc2_ref, sh2_ref, scd_ref, shd_ref, o_ref = refs
    else:
        y2_ref, idn_ref, sc2_ref, sh2_ref, o_ref = refs
    ct = y2_ref.shape[-1]
    y2 = y2_ref[...].astype(jnp.float32)
    idn = idn_ref[...].astype(jnp.float32)
    out = (y2 * sc2_ref[...].reshape(1, 1, 1, ct)
           + sh2_ref[...].reshape(1, 1, 1, ct))
    if has_down:
        out = out + (idn * scd_ref[...].reshape(1, 1, 1, ct)
                     + shd_ref[...].reshape(1, 1, 1, ct))
    else:
        out = out + idn          # identity path: no affine (static skip)
    o_ref[...] = jnp.maximum(out, 0.0).astype(o_ref.dtype)


# ------------------------------ call wrappers ------------------------------ #

def _conv_block(x, w9, *, stride, in_affine=None, wd=None):
    """x: (N,H,W,Cin_pad); w9: (9, Cin_pad, Cout_pad) bf16; wd: (Cin_pad, Cout_pad) bf16."""
    n, h, w, cin_pad = x.shape
    cout_pad = w9.shape[-1]
    ct = _LANE
    n_ct = cout_pad // ct
    ho = (h - 1) // stride + 1
    wo = (w - 1) // stride + 1
    has_down = wd is not None
    fuse = in_affine is not None

    args = [x]
    in_specs = [pl.BlockSpec((1, h, w, cin_pad), lambda i, j: (i, 0, 0, 0))]
    if fuse:
        scale, shift = in_affine
        args += [scale, shift]
        in_specs += [pl.BlockSpec((1, cin_pad), lambda i, j: (0, 0)),
                     pl.BlockSpec((1, cin_pad), lambda i, j: (0, 0))]
    args.append(w9)
    in_specs.append(pl.BlockSpec((9, cin_pad, ct), lambda i, j: (0, 0, j)))
    if has_down:
        args.append(wd)
        in_specs.append(pl.BlockSpec((cin_pad, ct), lambda i, j: (0, j)))

    y_shape = jax.ShapeDtypeStruct((n, ho, wo, cout_pad), jnp.bfloat16)
    st_shape = jax.ShapeDtypeStruct((n, n_ct, 1, ct), jnp.float32)
    y_spec = pl.BlockSpec((1, ho, wo, ct), lambda i, j: (i, 0, 0, j))
    st_spec = pl.BlockSpec((1, 1, 1, ct), lambda i, j: (i, j, 0, 0))
    out_shape = [y_shape, st_shape, st_shape]
    out_specs = [y_spec, st_spec, st_spec]
    if has_down:
        out_shape += [y_shape, st_shape, st_shape]
        out_specs += [y_spec, st_spec, st_spec]

    scratch = [pltpu.VMEM((h + 2, _PADW + w + 1, cin_pad), jnp.float32),
               pltpu.VMEM((9, ho * wo, cin_pad), jnp.bfloat16)]
    if stride > 1:
        scratch.append(pltpu.VMEM((h + 2, wo, cin_pad), jnp.float32))

    flops = 2 * n * ho * wo * 9 * cin_pad * cout_pad
    if has_down:
        flops += 2 * n * ho * wo * cin_pad * cout_pad
    bytes_acc = (x.dtype.itemsize * x.size
                 + 2 * (w9.size + (wd.size if has_down else 0))
                 + 2 * n * ho * wo * cout_pad * (2 if has_down else 1)
                 + 8 * n * n_ct * ct * (2 if has_down else 1))

    kernel = functools.partial(_conv_kernel, stride=stride,
                               fuse_in_affine=fuse, has_down=has_down)
    return pl.pallas_call(
        kernel,
        grid=(n, n_ct),
        in_specs=in_specs,
        out_specs=out_specs,
        out_shape=out_shape,
        scratch_shapes=scratch,
        compiler_params=_CONV_COMPILER,
        cost_estimate=pl.CostEstimate(flops=flops, transcendentals=0,
                                      bytes_accessed=int(bytes_acc)),
    )(*args)


def _residual_out(y2, idn, scale2, shift2, scaled=None, shiftd=None):
    n, ho, wo, cp = y2.shape
    ct = _LANE
    n_ct = cp // ct
    has_down = scaled is not None
    t_spec = pl.BlockSpec((1, ho, wo, ct), lambda i, j: (i, 0, 0, j))
    v_spec = pl.BlockSpec((1, ct), lambda i, j: (0, j))
    args = [y2, idn, scale2, shift2]
    in_specs = [t_spec, t_spec, v_spec, v_spec]
    if has_down:
        args += [scaled, shiftd]
        in_specs += [v_spec, v_spec]
    return pl.pallas_call(
        functools.partial(_residual_kernel, has_down=has_down),
        grid=(n, n_ct),
        in_specs=in_specs,
        out_specs=pl.BlockSpec((1, ho, wo, ct), lambda i, j: (i, 0, 0, j)),
        out_shape=jax.ShapeDtypeStruct((n, ho, wo, cp), jnp.float32),
        compiler_params=_ELTWISE_COMPILER,
    )(*args)


def _bn_scale_shift(s_part, ss_part, gamma_p, beta_p, count):
    """Per-channel affine (scale, shift) from partial sums (tiny, plain JAX)."""
    s = jnp.sum(s_part, axis=0).reshape(-1)      # (Cpad,)
    ss = jnp.sum(ss_part, axis=0).reshape(-1)
    mean = s / count
    var = jnp.maximum(ss / count - mean * mean, 0.0)   # biased, like PyTorch BN
    scale = gamma_p * jax.lax.rsqrt(var + _EPS)
    shift = beta_p - mean * scale
    return scale.reshape(1, -1), shift.reshape(1, -1)


def basic_block_forward(x_nchw, params, stride):
    """BasicBlock.forward.  x_nchw: (N, Cin, H, W) -> (N, planes, H/s, W/s)."""
    n, cin, h, w = x_nchw.shape
    planes = params["w1"].shape[-1]
    cin_p = _ceil_to(cin, _LANE)
    cp = _ceil_to(planes, _LANE)
    has_down = "wd" in params
    if not has_down:
        # PyTorch BasicBlock guarantees this; asserted per review.
        assert stride == 1 and cin == planes, "identity path needs stride=1, cin==planes"

    # NCHW -> NHWC, lane-dense channel padding.
    # TODO(synk): when blocks are chained, do this layout plumbing once per network.
    x = jnp.transpose(x_nchw, (0, 2, 3, 1)).astype(jnp.float32)
    x = _pad_last(x, cin_p)

    # Weights: (3,3,Cin,Cout) -> (9, Cin_pad, Cout_pad) bf16 (MXU operand dtype).
    w1 = _pad_last(jnp.pad(params["w1"], ((0, 0), (0, 0), (0, cin_p - cin), (0, 0))), cp)
    w1 = w1.reshape(9, cin_p, cp).astype(jnp.bfloat16)
    w2 = _pad_last(jnp.pad(params["w2"], ((0, 0), (0, 0), (0, cp - planes), (0, 0))), cp)
    w2 = w2.reshape(9, cp, cp).astype(jnp.bfloat16)
    g1, b1 = _pad_last(params["g1"], cp), _pad_last(params["b1"], cp)
    g2, b2 = _pad_last(params["g2"], cp), _pad_last(params["b2"], cp)

    ho = (h - 1) // stride + 1
    wo = (w - 1) // stride + 1
    count = n * ho * wo

    if has_down:
        wd = _pad_last(jnp.pad(params["wd"], ((0, cin_p - cin), (0, 0))), cp)
        wd = wd.astype(jnp.bfloat16)
        gd, bd = _pad_last(params["gd"], cp), _pad_last(params["bd"], cp)
        y1, s1, ss1, idn, sd, ssd = _conv_block(x, w1, stride=stride, wd=wd)
        scaled, shiftd = _bn_scale_shift(sd, ssd, gd, bd, count)
    else:
        y1, s1, ss1 = _conv_block(x, w1, stride=stride)
        idn = x                                   # raw identity, no affine
        scaled = shiftd = None

    scale1, shift1 = _bn_scale_shift(s1, ss1, g1, b1, count)
    y2, s2, ss2 = _conv_block(y1, w2, stride=1, in_affine=(scale1, shift1))
    scale2, shift2 = _bn_scale_shift(s2, ss2, g2, b2, count)

    out = _residual_out(y2, idn, scale2, shift2, scaled, shiftd)
    out = out[..., :planes]
    return jnp.transpose(out, (0, 3, 1, 2))      # NHWC -> NCHW


# ----------------------- deterministic parameter init ---------------------- #

def init_params(key, in_planes, planes, stride):
    ks = jax.random.split(key, 9)
    p = {
        "w1": 0.1 * jax.random.normal(ks[0], (3, 3, in_planes, planes), jnp.float32),
        "g1": 1.0 + 0.1 * jax.random.normal(ks[1], (planes,), jnp.float32),
        "b1": 0.1 * jax.random.normal(ks[2], (planes,), jnp.float32),
        "w2": 0.1 * jax.random.normal(ks[3], (3, 3, planes, planes), jnp.float32),
        "g2": 1.0 + 0.1 * jax.random.normal(ks[4], (planes,), jnp.float32),
        "b2": 0.1 * jax.random.normal(ks[5], (planes,), jnp.float32),
    }
    if stride != 1 or in_planes != planes:
        p["wd"] = 0.1 * jax.random.normal(ks[6], (in_planes, planes), jnp.float32)
        p["gd"] = 1.0 + 0.1 * jax.random.normal(ks[7], (planes,), jnp.float32)
        p["bd"] = 0.1 * jax.random.normal(ks[8], (planes,), jnp.float32)
    return p


# ------------------------------- JAX reference ------------------------------ #

def _ref_bn(x, g, b):
    mean = jnp.mean(x, axis=(0, 2, 3), keepdims=True)
    var = jnp.mean((x - mean) ** 2, axis=(0, 2, 3), keepdims=True)
    return ((x - mean) * jax.lax.rsqrt(var + _EPS) * g.reshape(1, -1, 1, 1)
            + b.reshape(1, -1, 1, 1))


def ref_forward(x_nchw, params, stride):
    def conv(x, w_hwio, s, pad):
        return jax.lax.conv_general_dilated(
            x, w_hwio, window_strides=(s, s), padding=pad,
            dimension_numbers=("NCHW", "HWIO", "NCHW"))
    out = jax.nn.relu(_ref_bn(conv(x_nchw, params["w1"], stride, ((1, 1), (1, 1))),
                              params["g1"], params["b1"]))
    out = _ref_bn(conv(out, params["w2"], 1, ((1, 1), (1, 1))), params["g2"], params["b2"])
    if "wd" in params:
        idn = conv(x_nchw, params["wd"][None, None], stride, "VALID")
        idn = _ref_bn(idn, params["gd"], params["bd"])
    else:
        idn = x_nchw
    return jax.nn.relu(out + idn)


# ----------------------------------- main ----------------------------------- #

def _run_case(key, n, in_planes, planes, stride, hw):
    kx, kp = jax.random.split(key)
    x = jax.random.normal(kx, (n, in_planes, hw, hw), jnp.float32)
    params = init_params(kp, in_planes, planes, stride)
    fwd = jax.jit(basic_block_forward, static_argnums=2)
    out = jax.block_until_ready(fwd(x, params, stride))
    ref = ref_forward(x, params, stride)
    assert out.shape == ref.shape, (out.shape, ref.shape)
    # bf16 intermediates / MXU operands (f32 accumulation) bound the error.
    max_err = float(jnp.max(jnp.abs(out - ref)))
    mean_err = float(jnp.mean(jnp.abs(out - ref)))
    assert max_err < 5e-2, f"mismatch vs reference: max abs err = {max_err}"
    assert mean_err < 1e-2, f"mismatch vs reference: mean abs err = {mean_err}"


if __name__ == "__main__":
    key = jax.random.PRNGKey(0)
    k1, k2 = jax.random.split(key)
    _run_case(k1, 2, 4, 8, 2, 16)   # strided conv1 + fused downsample branch
    _run_case(k2, 2, 8, 8, 1, 16)   # identity (no-downsample) branch
    print("KERNEL_OK")
</pallas_src>

<mosaic_0001>
module attributes {stable_mosaic.version = 11 : i64} {
  func.func @_conv_kernel(%arg0: i32, %arg1: i32, %arg2: memref<1x16x16x128xf32, #tpu.memory_space<vmem>>, %arg3: memref<9x128x128xbf16, #tpu.memory_space<vmem>>, %arg4: memref<128x128xbf16, #tpu.memory_space<vmem>>, %arg5: memref<1x8x8x128xbf16, #tpu.memory_space<vmem>>, %arg6: memref<1x1x1x128xf32, #tpu.memory_space<vmem>>, %arg7: memref<1x1x1x128xf32, #tpu.memory_space<vmem>>, %arg8: memref<1x8x8x128xbf16, #tpu.memory_space<vmem>>, %arg9: memref<1x1x1x128xf32, #tpu.memory_space<vmem>>, %arg10: memref<1x1x1x128xf32, #tpu.memory_space<vmem>>, %arg11: memref<18x25x128xf32, #tpu.memory_space<vmem>>, %arg12: memref<9x64x128xbf16, #tpu.memory_space<vmem>>, %arg13: memref<18x8x128xf32, #tpu.memory_space<vmem>>) attributes {dimension_semantics = [#tpu.dimension_semantics<parallel>, #tpu.dimension_semantics<arbitrary>], iteration_bounds = array<i64: 2, 1>, scalar_prefetch = 0 : i64, scratch_operands = 3 : i64, tpu.core_type = #tpu.core_type<tc>, window_params = [{transform_indices = @transform_0, window_bounds = array<i64: 1, 16, 16, 128>}, {transform_indices = @transform_1, window_bounds = array<i64: 9, 128, 128>}, {transform_indices = @transform_2, window_bounds = array<i64: 128, 128>}, {transform_indices = @transform_3, window_bounds = array<i64: 1, 8, 8, 128>}, {transform_indices = @transform_4, window_bounds = array<i64: 1, 1, 1, 128>}, {transform_indices = @transform_5, window_bounds = array<i64: 1, 1, 1, 128>}, {transform_indices = @transform_6, window_bounds = array<i64: 1, 8, 8, 128>}, {transform_indices = @transform_7, window_bounds = array<i64: 1, 1, 1, 128>}, {transform_indices = @transform_8, window_bounds = array<i64: 1, 1, 1, 128>}]} {
    %c0_i32 = arith.constant 0 : i32
    %0 = arith.cmpi eq, %arg1, %c0_i32 : i32
    %1 = arith.extui %0 : i1 to i32
    %c0_i32_0 = arith.constant 0 : i32
    %2 = arith.cmpi ne, %1, %c0_i32_0 : i32
    scf.if %2 {
      %c0_88 = arith.constant 0 : index
      %c0_89 = arith.constant 0 : index
      %c0_90 = arith.constant 0 : index
      %c0_91 = arith.constant 0 : index
      %80 = vector.load %arg2[%c0_88, %c0_89, %c0_90, %c0_91] : memref<1x16x16x128xf32, #tpu.memory_space<vmem>>, vector<1x16x16x128xf32>
      %81 = vector.shape_cast %80 : vector<1x16x16x128xf32> to vector<16x16x128xf32>
      %cst_92 = arith.constant 0.000000e+00 : f32
      %82 = vector.broadcast %cst_92 : f32 to vector<25x128xf32>
      %c0_93 = arith.constant 0 : index
      %c0_94 = arith.constant 0 : index
      %c0_95 = arith.constant 0 : index
      %83 = vector.load %arg11[%c0_93, %c0_94, %c0_95] : memref<18x25x128xf32, #tpu.memory_space<vmem>>, vector<1x25x128xf32>
      %84 = vector.shape_cast %83 : vector<1x25x128xf32> to vector<25x128xf32>
      %85 = vector.shape_cast %82 : vector<25x128xf32> to vector<1x25x128xf32>
      tpu.vector_store %arg11[%c0_93, %c0_94, %c0_95], %85 {strides = array<i32>} : memref<18x25x128xf32, #tpu.memory_space<vmem>>, vector<1x25x128xf32>,
      %c17 = arith.constant 17 : index
      %c0_96 = arith.constant 0 : index
      %c0_97 = arith.constant 0 : index
      %86 = vector.load %arg11[%c17, %c0_96, %c0_97] : memref<18x25x128xf32, #tpu.memory_space<vmem>>, vector<1x25x128xf32>
      %87 = vector.shape_cast %86 : vector<1x25x128xf32> to vector<25x128xf32>
      %88 = vector.shape_cast %82 : vector<25x128xf32> to vector<1x25x128xf32>
      tpu.vector_store %arg11[%c17, %c0_96, %c0_97], %88 {strides = array<i32>} : memref<18x25x128xf32, #tpu.memory_space<vmem>>, vector<1x25x128xf32>,
      %cst_98 = arith.constant 0.000000e+00 : f32
      %89 = vector.broadcast %cst_98 : f32 to vector<18x1x128xf32>
      %c0_99 = arith.constant 0 : index
      %c7_100 = arith.constant 7 : index
      %c0_101 = arith.constant 0 : index
      %90 = vector.load %arg11[%c0_99, %c7_100, %c0_101] : memref<18x25x128xf32, #tpu.memory_space<vmem>>, vector<18x1x128xf32>
      tpu.vector_store %arg11[%c0_99, %c7_100, %c0_101], %89 {strides = array<i32>} : memref<18x25x128xf32, #tpu.memory_space<vmem>>, vector<18x1x128xf32>,
      %c0_102 = arith.constant 0 : index
      %c24 = arith.constant 24 : index
      %c0_103 = arith.constant 0 : index
      %91 = vector.load %arg11[%c0_102, %c24, %c0_103] : memref<18x25x128xf32, #tpu.memory_space<vmem>>, vector<18x1x128xf32>
      tpu.vector_store %arg11[%c0_102, %c24, %c0_103], %89 {strides = array<i32>} : memref<18x25x128xf32, #tpu.memory_space<vmem>>, vector<18x1x128xf32>,
      %c1_104 = arith.constant 1 : index
      %c8_105 = arith.constant 8 : index
      %c0_106 = arith.constant 0 : index
      %92 = vector.load %arg11[%c1_104, %c8_105, %c0_106] : memref<18x25x128xf32, #tpu.memory_space<vmem>>, vector<16x16x128xf32>
      tpu.vector_store %arg11[%c1_104, %c8_105, %c0_106], %81 {strides = array<i32>} : memref<18x25x128xf32, #tpu.memory_space<vmem>>, vector<16x16x128xf32>,
      %c0_107 = arith.constant 0 : index
      %c7_108 = arith.constant 7 : index
      %c0_109 = arith.constant 0 : index
      %93 = tpu.strided_load %arg11[%c0_107, %c7_108, %c0_109] {strides = array<i32: 1, 2, 1>} : memref<18x25x128xf32, #tpu.memory_space<vmem>>, vector<18x8x128xf32>
      %c0_110 = arith.constant 0 : index
      %c0_111 = arith.constant 0 : index
      %c0_112 = arith.constant 0 : index
      %94 = vector.load %arg13[%c0_110, %c0_111, %c0_112] : memref<18x8x128xf32, #tpu.memory_space<vmem>>, vector<18x8x128xf32>
      tpu.vector_store %arg13[%c0_110, %c0_111, %c0_112], %93 {strides = array<i32>} : memref<18x8x128xf32, #tpu.memory_space<vmem>>, vector<18x8x128xf32>,
      %c0_113 = arith.constant 0 : index
      %c0_114 = arith.constant 0 : index
      %c0_115 = arith.constant 0 : index
      %95 = tpu.strided_load %arg13[%c0_113, %c0_114, %c0_115] {strides = array<i32: 2, 1, 1>} : memref<18x8x128xf32, #tpu.memory_space<vmem>>, vector<8x8x128xf32>
      %96 = vector.shape_cast %95 : vector<8x8x128xf32> to vector<64x128xf32>
      %97 = arith.truncf %96 : vector<64x128xf32> to vector<64x128xbf16>
      %c0_116 = arith.constant 0 : index
      %c0_117 = arith.constant 0 : index
      %c0_118 = arith.constant 0 : index
      %98 = vector.load %arg12[%c0_116, %c0_117, %c0_118] : memref<9x64x128xbf16, #tpu.memory_space<vmem>>, vector<1x64x128xbf16>
      %99 = vector.shape_cast %98 : vector<1x64x128xbf16> to vector<64x128xbf16>
      %100 = vector.shape_cast %97 : vector<64x128xbf16> to vector<1x64x128xbf16>
      tpu.vector_store %arg12[%c0_116, %c0_117, %c0_118], %100 {strides = array<i32>} : memref<9x64x128xbf16, #tpu.memory_space<vmem>>, vector<1x64x128xbf16>,
      %c1_119 = arith.constant 1 : index
      %c0_120 = arith.constant 0 : index
      %c0_121 = arith.constant 0 : index
      %101 = tpu.strided_load %arg13[%c1_119, %c0_120, %c0_121] {strides = array<i32: 2, 1, 1>} : memref<18x8x128xf32, #tpu.memory_space<vmem>>, vector<8x8x128xf32>
      %102 = vector.shape_cast %101 : vector<8x8x128xf32> to vector<64x128xf32>
      %103 = arith.truncf %102 : vector<64x128xf32> to vector<64x128xbf16>
      %c3_122 = arith.constant 3 : index
      %c0_123 = arith.constant 0 : index
      %c0_124 = arith.constant 0 : index
      %104 = vector.load %arg12[%c3_122, %c0_123, %c0_124] : memref<9x64x128xbf16, #tpu.memory_space<vmem>>, vector<1x64x128xbf16>
      %105 = vector.shape_cast %104 : vector<1x64x128xbf16> to vector<64x128xbf16>
      %106 = vector.shape_cast %103 : vector<64x128xbf16> to vector<1x64x128xbf16>
      tpu.vector_store %arg12[%c3_122, %c0_123, %c0_124], %106 {strides = array<i32>} : memref<9x64x128xbf16, #tpu.memory_space<vmem>>, vector<1x64x128xbf16>,
      %c2_125 = arith.constant 2 : index
      %c0_126 = arith.constant 0 : index
      %c0_127 = arith.constant 0 : index
      %107 = tpu.strided_load %arg13[%c2_125, %c0_126, %c0_127] {strides = array<i32: 2, 1, 1>} : memref<18x8x128xf32, #tpu.memory_space<vmem>>, vector<8x8x128xf32>
      %108 = vector.shape_cast %107 : vector<8x8x128xf32> to vector<64x128xf32>
      %109 = arith.truncf %108 : vector<64x128xf32> to vector<64x128xbf16>
      %c6_128 = arith.constant 6 : index
      %c0_129 = arith.constant 0 : index
      %c0_130 = arith.constant 0 : index
      %110 = vector.load %arg12[%c6_128, %c0_129, %c0_130] : memref<9x64x128xbf16, #tpu.memory_space<vmem>>, vector<1x64x128xbf16>
      %111 = vector.shape_cast %110 : vector<1x64x128xbf16> to vector<64x128xbf16>
      %112 = vector.shape_cast %109 : vector<64x128xbf16> to vector<1x64x128xbf16>
      tpu.vector_store %arg12[%c6_128, %c0_129, %c0_130], %112 {strides = array<i32>} : memref<9x64x128xbf16, #tpu.memory_space<vmem>>, vector<1x64x128xbf16>,
      %c0_131 = arith.constant 0 : index
      %c8_132 = arith.constant 8 : index
      %c0_133 = arith.constant 0 : index
      %113 = tpu.strided_load %arg11[%c0_131, %c8_132, %c0_133] {strides = array<i32: 1, 2, 1>} : memref<18x25x128xf32, #tpu.memory_space<vmem>>, vector<18x8x128xf32>
      %c0_134 = arith.constant 0 : index
      %c0_135 = arith.constant 0 : index
      %c0_136 = arith.constant 0 : index
      %114 = vector.load %arg13[%c0_134, %c0_135, %c0_136] : memref<18x8x128xf32, #tpu.memory_space<vmem>>, vector<18x8x128xf32>
      tpu.vector_store %arg13[%c0_134, %c0_135, %c0_136], %113 {strides = array<i32>} : memref<18x8x128xf32, #tpu.memory_space<vmem>>, vector<18x8x128xf32>,
      %c0_137 = arith.constant 0 : index
      %c0_138 = arith.constant 0 : index
      %c0_139 = arith.constant 0 : index
      %115 = tpu.strided_load %arg13[%c0_137, %c0_138, %c0_139] {strides = array<i32: 2, 1, 1>} : memref<18x8x128xf32, #tpu.memory_space<vmem>>, vector<8x8x128xf32>
      %116 = vector.shape_cast %115 : vector<8x8x128xf32> to vector<64x128xf32>
      %117 = arith.truncf %116 : vector<64x128xf32> to vector<64x128xbf16>
      %c1_140 = arith.constant 1 : index
      %c0_141 = arith.constant 0 : index
      %c0_142 = arith.constant 0 : index
      %118 = vector.load %arg12[%c1_140, %c0_141, %c0_142] : memref<9x64x128xbf16, #tpu.memory_space<vmem>>, vector<1x64x128xbf16>
      %119 = vector.shape_cast %118 : vector<1x64x128xbf16> to vector<64x128xbf16>
      %120 = vector.shape_cast %117 : vector<64x128xbf16> to vector<1x64x128xbf16>
      tpu.vector_store %arg12[%c1_140, %c0_141, %c0_142], %120 {strides = array<i32>} : memref<9x64x128xbf16, #tpu.memory_space<vmem>>, vector<1x64x128xbf16>,
      %c1_143 = arith.constant 1 : index
      %c0_144 = arith.constant 0 : index
      %c0_145 = arith.constant 0 : index
      %121 = tpu.strided_load %arg13[%c1_143, %c0_144, %c0_145] {strides = array<i32: 2, 1, 1>} : memref<18x8x128xf32, #tpu.memory_space<vmem>>, vector<8x8x128xf32>
      %122 = vector.shape_cast %121 : vector<8x8x128xf32> to vector<64x128xf32>
      %123 = arith.truncf %122 : vector<64x128xf32> to vector<64x128xbf16>
      %c4_146 = arith.constant 4 : index
      %c0_147 = arith.constant 0 : index
      %c0_148 = arith.constant 0 : index
      %124 = vector.load %arg12[%c4_146, %c0_147, %c0_148] : memref<9x64x128xbf16, #tpu.memory_space<vmem>>, vector<1x64x128xbf16>
      %125 = vector.shape_cast %124 : vector<1x64x128xbf16> to vector<64x128xbf16>
      %126 = vector.shape_cast %123 : vector<64x128xbf16> to vector<1x64x128xbf16>
      tpu.vector_store %arg12[%c4_146, %c0_147, %c0_148], %126 {strides = array<i32>} : memref<9x64x128xbf16, #tpu.memory_space<vmem>>, vector<1x64x128xbf16>,
      %c2_149 = arith.constant 2 : index
      %c0_150 = arith.constant 0 : index
      %c0_151 = arith.constant 0 : index
      %127 = tpu.strided_load %arg13[%c2_149, %c0_150, %c0_151] {strides = array<i32: 2, 1, 1>} : memref<18x8x128xf32, #tpu.memory_space<vmem>>, vector<8x8x128xf32>
      %128 = vector.shape_cast %127 : vector<8x8x128xf32> to vector<64x128xf32>
      %129 = arith.truncf %128 : vector<64x128xf32> to vector<64x128xbf16>
      %c7_152 = arith.constant 7 : index
      %c0_153 = arith.constant 0 : index
      %c0_154 = arith.constant 0 : index
      %130 = vector.load %arg12[%c7_152, %c0_153, %c0_154] : memref<9x64x128xbf16, #tpu.memory_space<vmem>>, vector<1x64x128xbf16>
      %131 = vector.shape_cast %130 : vector<1x64x128xbf16> to vector<64x128xbf16>
      %132 = vector.shape_cast %129 : vector<64x128xbf16> to vector<1x64x128xbf16>
      tpu.vector_store %arg12[%c7_152, %c0_153, %c0_154], %132 {strides = array<i32>} : memref<9x64x128xbf16, #tpu.memory_space<vmem>>, vector<1x64x128xbf16>,
      %c0_155 = arith.constant 0 : index
      %c9 = arith.constant 9 : index
      %c0_156 = arith.constant 0 : index
      %133 = tpu.strided_load %arg11[%c0_155, %c9, %c0_156] {strides = array<i32: 1, 2, 1>} : memref<18x25x128xf32, #tpu.memory_space<vmem>>, vector<18x8x128xf32>
      %c0_157 = arith.constant 0 : index
      %c0_158 = arith.constant 0 : index
      %c0_159 = arith.constant 0 : index
      %134 = vector.load %arg13[%c0_157, %c0_158, %c0_159] : memref<18x8x128xf32, #tpu.memory_space<vmem>>, vector<18x8x128xf32>
      tpu.vector_store %arg13[%c0_157, %c0_158, %c0_159], %133 {strides = array<i32>} : memref<18x8x128xf32, #tpu.memory_space<vmem>>, vector<18x8x128xf32>,
      %c0_160 = arith.constant 0 : index
      %c0_161 = arith.constant 0 : index
      %c0_162 = arith.constant 0 : index
      %135 = tpu.strided_load %arg13[%c0_160, %c0_161, %c0_162] {strides = array<i32: 2, 1, 1>} : memref<18x8x128xf32, #tpu.memory_space<vmem>>, vector<8x8x128xf32>
      %136 = vector.shape_cast %135 : vector<8x8x128xf32> to vector<64x128xf32>
      %137 = arith.truncf %136 : vector<64x128xf32> to vector<64x128xbf16>
      %c2_163 = arith.constant 2 : index
      %c0_164 = arith.constant 0 : index
      %c0_165 = arith.constant 0 : index
      %138 = vector.load %arg12[%c2_163, %c0_164, %c0_165] : memref<9x64x128xbf16, #tpu.memory_space<vmem>>, vector<1x64x128xbf16>
      %139 = vector.shape_cast %138 : vector<1x64x128xbf16> to vector<64x128xbf16>
      %140 = vector.shape_cast %137 : vector<64x128xbf16> to vector<1x64x128xbf16>
      tpu.vector_store %arg12[%c2_163, %c0_164, %c0_165], %140 {strides = array<i32>} : memref<9x64x128xbf16, #tpu.memory_space<vmem>>, vector<1x64x128xbf16>,
      %c1_166 = arith.constant 1 : index
      %c0_167 = arith.constant 0 : index
      %c0_168 = arith.constant 0 : index
      %141 = tpu.strided_load %arg13[%c1_166, %c0_167, %c0_168] {strides = array<i32: 2, 1, 1>} : memref<18x8x128xf32, #tpu.memory_space<vmem>>, vector<8x8x128xf32>
      %142 = vector.shape_cast %141 : vector<8x8x128xf32> to vector<64x128xf32>
      %143 = arith.truncf %142 : vector<64x128xf32> to vector<64x128xbf16>
      %c5_169 = arith.constant 5 : index
      %c0_170 = arith.constant 0 : index
      %c0_171 = arith.constant 0 : index
      %144 = vector.load %arg12[%c5_169, %c0_170, %c0_171] : memref<9x64x128xbf16, #tpu.memory_space<vmem>>, vector<1x64x128xbf16>
      %145 = vector.shape_cast %144 : vector<1x64x128xbf16> to vector<64x128xbf16>
      %146 = vector.shape_cast %143 : vector<64x128xbf16> to vector<1x64x128xbf16>
      tpu.vector_store %arg12[%c5_169, %c0_170, %c0_171], %146 {strides = array<i32>} : memref<9x64x128xbf16, #tpu.memory_space<vmem>>, vector<1x64x128xbf16>,
      %c2_172 = arith.constant 2 : index
      %c0_173 = arith.constant 0 : index
      %c0_174 = arith.constant 0 : index
      %147 = tpu.strided_load %arg13[%c2_172, %c0_173, %c0_174] {strides = array<i32: 2, 1, 1>} : memref<18x8x128xf32, #tpu.memory_space<vmem>>, vector<8x8x128xf32>
      %148 = vector.shape_cast %147 : vector<8x8x128xf32> to vector<64x128xf32>
      %149 = arith.truncf %148 : vector<64x128xf32> to vector<64x128xbf16>
      %c8_175 = arith.constant 8 : index
      %c0_176 = arith.constant 0 : index
      %c0_177 = arith.constant 0 : index
      %150 = vector.load %arg12[%c8_175, %c0_176, %c0_177] : memref<9x64x128xbf16, #tpu.memory_space<vmem>>, vector<1x64x128xbf16>
      %151 = vector.shape_cast %150 : vector<1x64x128xbf16> to vector<64x128xbf16>
      %152 = vector.shape_cast %149 : vector<64x128xbf16> to vector<1x64x128xbf16>
      tpu.vector_store %arg12[%c8_175, %c0_176, %c0_177], %152 {strides = array<i32>} : memref<9x64x128xbf16, #tpu.memory_space<vmem>>, vector<1x64x128xbf16>,
    } else {
    }
    %c0 = arith.constant 0 : index
    %c0_1 = arith.constant 0 : index
    %c0_2 = arith.constant 0 : index
    %3 = vector.load %arg12[%c0, %c0_1, %c0_2] : memref<9x64x128xbf16, #tpu.memory_space<vmem>>, vector<1x64x128xbf16>
    %4 = vector.shape_cast %3 : vector<1x64x128xbf16> to vector<64x128xbf16>
    %c0_3 = arith.constant 0 : index
    %c0_4 = arith.constant 0 : index
    %c0_5 = arith.constant 0 : index
    %5 = vector.load %arg3[%c0_3, %c0_4, %c0_5] : memref<9x128x128xbf16, #tpu.memory_space<vmem>>, vector<1x128x128xbf16>
    %6 = vector.shape_cast %5 : vector<1x128x128xbf16> to vector<128x128xbf16>
    %cst = arith.constant dense<0.000000e+00> : vector<64x128xf32>
    %7 = tpu.matmul %4, %6, %cst {dimension_numbers = #tpu.dot_dimension_numbers<[1], [0], [0], [1], [0, 0, 1, 1], [], []>} : vector<64x128xbf16>, vector<128x128xbf16>, vector<64x128xf32> -> vector<64x128xf32>
    %c1 = arith.constant 1 : index
    %c0_6 = arith.constant 0 : index
    %c0_7 = arith.constant 0 : index
    %8 = vector.load %arg12[%c1, %c0_6, %c0_7] : memref<9x64x128xbf16, #tpu.memory_space<vmem>>, vector<1x64x128xbf16>
    %9 = vector.shape_cast %8 : vector<1x64x128xbf16> to vector<64x128xbf16>
    %c1_8 = arith.constant 1 : index
    %c0_9 = arith.constant 0 : index
    %c0_10 = arith.constant 0 : index
    %10 = vector.load %arg3[%c1_8, %c0_9, %c0_10] : memref<9x128x128xbf16, #tpu.memory_space<vmem>>, vector<1x128x128xbf16>
    %11 = vector.shape_cast %10 : vector<1x128x128xbf16> to vector<128x128xbf16>
    %cst_11 = arith.constant dense<0.000000e+00> : vector<64x128xf32>
    %12 = tpu.matmul %9, %11, %cst_11 {dimension_numbers = #tpu.dot_dimension_numbers<[1], [0], [0], [1], [0, 0, 1, 1], [], []>} : vector<64x128xbf16>, vector<128x128xbf16>, vector<64x128xf32> -> vector<64x128xf32>
    %13 = arith.addf %7, %12 : vector<64x128xf32>
    %c2 = arith.constant 2 : index
    %c0_12 = arith.constant 0 : index
    %c0_13 = arith.constant 0 : index
    %14 = vector.load %arg12[%c2, %c0_12, %c0_13] : memref<9x64x128xbf16, #tpu.memory_space<vmem>>, vector<1x64x128xbf16>
    %15 = vector.shape_cast %14 : vector<1x64x128xbf16> to vector<64x128xbf16>
    %c2_14 = arith.constant 2 : index
    %c0_15 = arith.constant 0 : index
    %c0_16 = arith.constant 0 : index
    %16 = vector.load %arg3[%c2_14, %c0_15, %c0_16] : memref<9x128x128xbf16, #tpu.memory_space<vmem>>, vector<1x128x128xbf16>
    %17 = vector.shape_cast %16 : vector<1x128x128xbf16> to vector<128x128xbf16>
    %cst_17 = arith.constant dense<0.000000e+00> : vector<64x128xf32>
    %18 = tpu.matmul %15, %17, %cst_17 {dimension_numbers = #tpu.dot_dimension_numbers<[1], [0], [0], [1], [0, 0, 1, 1], [], []>} : vector<64x128xbf16>, vector<128x128xbf16>, vector<64x128xf32> -> vector<64x128xf32>
    %19 = arith.addf %13, %18 : vector<64x128xf32>
    %c3 = arith.constant 3 : index
    %c0_18 = arith.constant 0 : index
    %c0_19 = arith.constant 0 : index
    %20 = vector.load %arg12[%c3, %c0_18, %c0_19] : memref<9x64x128xbf16, #tpu.memory_space<vmem>>, vector<1x64x128xbf16>
    %21 = vector.shape_cast %20 : vector<1x64x128xbf16> to vector<64x128xbf16>
    %c3_20 = arith.constant 3 : index
    %c0_21 = arith.constant 0 : index
    %c0_22 = arith.constant 0 : index
    %22 = vector.load %arg3[%c3_20, %c0_21, %c0_22] : memref<9x128x128xbf16, #tpu.memory_space<vmem>>, vector<1x128x128xbf16>
    %23 = vector.shape_cast %22 : vector<1x128x128xbf16> to vector<128x128xbf16>
    %cst_23 = arith.constant dense<0.000000e+00> : vector<64x128xf32>
    %24 = tpu.matmul %21, %23, %cst_23 {dimension_numbers = #tpu.dot_dimension_numbers<[1], [0], [0], [1], [0, 0, 1, 1], [], []>} : vector<64x128xbf16>, vector<128x128xbf16>, vector<64x128xf32> -> vector<64x128xf32>
    %25 = arith.addf %19, %24 : vector<64x128xf32>
    %c4 = arith.constant 4 : index
    %c0_24 = arith.constant 0 : index
    %c0_25 = arith.constant 0 : index
    %26 = vector.load %arg12[%c4, %c0_24, %c0_25] : memref<9x64x128xbf16, #tpu.memory_space<vmem>>, vector<1x64x128xbf16>
    %27 = vector.shape_cast %26 : vector<1x64x128xbf16> to vector<64x128xbf16>
    %c4_26 = arith.constant 4 : index
    %c0_27 = arith.constant 0 : index
    %c0_28 = arith.constant 0 : index
    %28 = vector.load %arg3[%c4_26, %c0_27, %c0_28] : memref<9x128x128xbf16, #tpu.memory_space<vmem>>, vector<1x128x128xbf16>
    %29 = vector.shape_cast %28 : vector<1x128x128xbf16> to vector<128x128xbf16>
    %cst_29 = arith.constant dense<0.000000e+00> : vector<64x128xf32>
    %30 = tpu.matmul %27, %29, %cst_29 {dimension_numbers = #tpu.dot_dimension_numbers<[1], [0], [0], [1], [0, 0, 1, 1], [], []>} : vector<64x128xbf16>, vector<128x128xbf16>, vector<64x128xf32> -> vector<64x128xf32>
    %31 = arith.addf %25, %30 : vector<64x128xf32>
    %c5 = arith.constant 5 : index
    %c0_30 = arith.constant 0 : index
    %c0_31 = arith.constant 0 : index
    %32 = vector.load %arg12[%c5, %c0_30, %c0_31] : memref<9x64x128xbf16, #tpu.memory_space<vmem>>, vector<1x64x128xbf16>
    %33 = vector.shape_cast %32 : vector<1x64x128xbf16> to vector<64x128xbf16>
    %c5_32 = arith.constant 5 : index
    %c0_33 = arith.constant 0 : index
    %c0_34 = arith.constant 0 : index
    %34 = vector.load %arg3[%c5_32, %c0_33, %c0_34] : memref<9x128x128xbf16, #tpu.memory_space<vmem>>, vector<1x128x128xbf16>
    %35 = vector.shape_cast %34 : vector<1x128x128xbf16> to vector<128x128xbf16>
    %cst_35 = arith.constant dense<0.000000e+00> : vector<64x128xf32>
    %36 = tpu.matmul %33, %35, %cst_35 {dimension_numbers = #tpu.dot_dimension_numbers<[1], [0], [0], [1], [0, 0, 1, 1], [], []>} : vector<64x128xbf16>, vector<128x128xbf16>, vector<64x128xf32> -> vector<64x128xf32>
    %37 = arith.addf %31, %36 : vector<64x128xf32>
    %c6 = arith.constant 6 : index
    %c0_36 = arith.constant 0 : index
    %c0_37 = arith.constant 0 : index
    %38 = vector.load %arg12[%c6, %c0_36, %c0_37] : memref<9x64x128xbf16, #tpu.memory_space<vmem>>, vector<1x64x128xbf16>
    %39 = vector.shape_cast %38 : vector<1x64x128xbf16> to vector<64x128xbf16>
    %c6_38 = arith.constant 6 : index
    %c0_39 = arith.constant 0 : index
    %c0_40 = arith.constant 0 : index
    %40 = vector.load %arg3[%c6_38, %c0_39, %c0_40] : memref<9x128x128xbf16, #tpu.memory_space<vmem>>, vector<1x128x128xbf16>
    %41 = vector.shape_cast %40 : vector<1x128x128xbf16> to vector<128x128xbf16>
    %cst_41 = arith.constant dense<0.000000e+00> : vector<64x128xf32>
    %42 = tpu.matmul %39, %41, %cst_41 {dimension_numbers = #tpu.dot_dimension_numbers<[1], [0], [0], [1], [0, 0, 1, 1], [], []>} : vector<64x128xbf16>, vector<128x128xbf16>, vector<64x128xf32> -> vector<64x128xf32>
    %43 = arith.addf %37, %42 : vector<64x128xf32>
    %c7 = arith.constant 7 : index
    %c0_42 = arith.constant 0 : index
    %c0_43 = arith.constant 0 : index
    %44 = vector.load %arg12[%c7, %c0_42, %c0_43] : memref<9x64x128xbf16, #tpu.memory_space<vmem>>, vector<1x64x128xbf16>
    %45 = vector.shape_cast %44 : vector<1x64x128xbf16> to vector<64x128xbf16>
    %c7_44 = arith.constant 7 : index
    %c0_45 = arith.constant 0 : index
    %c0_46 = arith.constant 0 : index
    %46 = vector.load %arg3[%c7_44, %c0_45, %c0_46] : memref<9x128x128xbf16, #tpu.memory_space<vmem>>, vector<1x128x128xbf16>
    %47 = vector.shape_cast %46 : vector<1x128x128xbf16> to vector<128x128xbf16>
    %cst_47 = arith.constant dense<0.000000e+00> : vector<64x128xf32>
    %48 = tpu.matmul %45, %47, %cst_47 {dimension_numbers = #tpu.dot_dimension_numbers<[1], [0], [0], [1], [0, 0, 1, 1], [], []>} : vector<64x128xbf16>, vector<128x128xbf16>, vector<64x128xf32> -> vector<64x128xf32>
    %49 = arith.addf %43, %48 : vector<64x128xf32>
    %c8 = arith.constant 8 : index
    %c0_48 = arith.constant 0 : index
    %c0_49 = arith.constant 0 : index
    %50 = vector.load %arg12[%c8, %c0_48, %c0_49] : memref<9x64x128xbf16, #tpu.memory_space<vmem>>, vector<1x64x128xbf16>
    %51 = vector.shape_cast %50 : vector<1x64x128xbf16> to vector<64x128xbf16>
    %c8_50 = arith.constant 8 : index
    %c0_51 = arith.constant 0 : index
    %c0_52 = arith.constant 0 : index
    %52 = vector.load %arg3[%c8_50, %c0_51, %c0_52] : memref<9x128x128xbf16, #tpu.memory_space<vmem>>, vector<1x128x128xbf16>
    %53 = vector.shape_cast %52 : vector<1x128x128xbf16> to vector<128x128xbf16>
    %cst_53 = arith.constant dense<0.000000e+00> : vector<64x128xf32>
    %54 = tpu.matmul %51, %53, %cst_53 {dimension_numbers = #tpu.dot_dimension_numbers<[1], [0], [0], [1], [0, 0, 1, 1], [], []>} : vector<64x128xbf16>, vector<128x128xbf16>, vector<64x128xf32> -> vector<64x128xf32>
    %55 = arith.addf %49, %54 : vector<64x128xf32>
    %56 = vector.shape_cast %55 : vector<64x128xf32> to vector<1x8x8x128xf32>
    %57 = arith.truncf %56 : vector<1x8x8x128xf32> to vector<1x8x8x128xbf16>
    %c0_54 = arith.constant 0 : index
    %c0_55 = arith.constant 0 : index
    %c0_56 = arith.constant 0 : index
    %c0_57 = arith.constant 0 : index
    %58 = vector.load %arg5[%c0_54, %c0_55, %c0_56, %c0_57] : memref<1x8x8x128xbf16, #tpu.memory_space<vmem>>, vector<1x8x8x128xbf16>
    tpu.vector_store %arg5[%c0_54, %c0_55, %c0_56, %c0_57], %57 {strides = array<i32>} : memref<1x8x8x128xbf16, #tpu.memory_space<vmem>>, vector<1x8x8x128xbf16>,
    %cst_58 = arith.constant dense<0.000000e+00> : vector<128xf32>
    %59 = vector.multi_reduction <add>, %55, %cst_58 [0] : vector<64x128xf32> to vector<128xf32>
    %60 = vector.shape_cast %59 : vector<128xf32> to vector<1x1x1x128xf32>
    %c0_59 = arith.constant 0 : index
    %c0_60 = arith.constant 0 : index
    %c0_61 = arith.constant 0 : index
    %c0_62 = arith.constant 0 : index
    %61 = vector.load %arg6[%c0_59, %c0_60, %c0_61, %c0_62] : memref<1x1x1x128xf32, #tpu.memory_space<vmem>>, vector<1x1x1x128xf32>
    tpu.vector_store %arg6[%c0_59, %c0_60, %c0_61, %c0_62], %60 {strides = array<i32>} : memref<1x1x1x128xf32, #tpu.memory_space<vmem>>, vector<1x1x1x128xf32>,
    %62 = arith.mulf %55, %55 : vector<64x128xf32>
    %cst_63 = arith.constant dense<0.000000e+00> : vector<128xf32>
    %63 = vector.multi_reduction <add>, %62, %cst_63 [0] : vector<64x128xf32> to vector<128xf32>
    %64 = vector.shape_cast %63 : vector<128xf32> to vector<1x1x1x128xf32>
    %c0_64 = arith.constant 0 : index
    %c0_65 = arith.constant 0 : index
    %c0_66 = arith.constant 0 : index
    %c0_67 = arith.constant 0 : index
    %65 = vector.load %arg7[%c0_64, %c0_65, %c0_66, %c0_67] : memref<1x1x1x128xf32, #tpu.memory_space<vmem>>, vector<1x1x1x128xf32>
    tpu.vector_store %arg7[%c0_64, %c0_65, %c0_66, %c0_67], %64 {strides = array<i32>} : memref<1x1x1x128xf32, #tpu.memory_space<vmem>>, vector<1x1x1x128xf32>,
    %c4_68 = arith.constant 4 : index
    %c0_69 = arith.constant 0 : index
    %c0_70 = arith.constant 0 : index
    %66 = vector.load %arg12[%c4_68, %c0_69, %c0_70] : memref<9x64x128xbf16, #tpu.memory_space<vmem>>, vector<1x64x128xbf16>
    %67 = vector.shape_cast %66 : vector<1x64x128xbf16> to vector<64x128xbf16>
    %c0_71 = arith.constant 0 : index
    %c0_72 = arith.constant 0 : index
    %68 = vector.load %arg4[%c0_71, %c0_72] : memref<128x128xbf16, #tpu.memory_space<vmem>>, vector<128x128xbf16>
    %cst_73 = arith.constant dense<0.000000e+00> : vector<64x128xf32>
    %69 = tpu.matmul %67, %68, %cst_73 {dimension_numbers = #tpu.dot_dimension_numbers<[1], [0], [0], [1], [0, 0, 1, 1], [], []>} : vector<64x128xbf16>, vector<128x128xbf16>, vector<64x128xf32> -> vector<64x128xf32>
    %70 = vector.shape_cast %69 : vector<64x128xf32> to vector<1x8x8x128xf32>
    %71 = arith.truncf %70 : vector<1x8x8x128xf32> to vector<1x8x8x128xbf16>
    %c0_74 = arith.constant 0 : index
    %c0_75 = arith.constant 0 : index
    %c0_76 = arith.constant 0 : index
    %c0_77 = arith.constant 0 : index
    %72 = vector.load %arg8[%c0_74, %c0_75, %c0_76, %c0_77] : memref<1x8x8x128xbf16, #tpu.memory_space<vmem>>, vector<1x8x8x128xbf16>
    tpu.vector_store %arg8[%c0_74, %c0_75, %c0_76, %c0_77], %71 {strides = array<i32>} : memref<1x8x8x128xbf16, #tpu.memory_space<vmem>>, vector<1x8x8x128xbf16>,
    %cst_78 = arith.constant dense<0.000000e+00> : vector<128xf32>
    %73 = vector.multi_reduction <add>, %69, %cst_78 [0] : vector<64x128xf32> to vector<128xf32>
    %74 = vector.shape_cast %73 : vector<128xf32> to vector<1x1x1x128xf32>
    %c0_79 = arith.constant 0 : index
    %c0_80 = arith.constant 0 : index
    %c0_81 = arith.constant 0 : index
    %c0_82 = arith.constant 0 : index
    %75 = vector.load %arg9[%c0_79, %c0_80, %c0_81, %c0_82] : memref<1x1x1x128xf32, #tpu.memory_space<vmem>>, vector<1x1x1x128xf32>
    tpu.vector_store %arg9[%c0_79, %c0_80, %c0_81, %c0_82], %74 {strides = array<i32>} : memref<1x1x1x128xf32, #tpu.memory_space<vmem>>, vector<1x1x1x128xf32>,
    %76 = arith.mulf %69, %69 : vector<64x128xf32>
    %cst_83 = arith.constant dense<0.000000e+00> : vector<128xf32>
    %77 = vector.multi_reduction <add>, %76, %cst_83 [0] : vector<64x128xf32> to vector<128xf32>
    %78 = vector.shape_cast %77 : vector<128xf32> to vector<1x1x1x128xf32>
    %c0_84 = arith.constant 0 : index
    %c0_85 = arith.constant 0 : index
    %c0_86 = arith.constant 0 : index
    %c0_87 = arith.constant 0 : index
    %79 = vector.load %arg10[%c0_84, %c0_85, %c0_86, %c0_87] : memref<1x1x1x128xf32, #tpu.memory_space<vmem>>, vector<1x1x1x128xf32>
    tpu.vector_store %arg10[%c0_84, %c0_85, %c0_86, %c0_87], %78 {strides = array<i32>} : memref<1x1x1x128xf32, #tpu.memory_space<vmem>>, vector<1x1x1x128xf32>,
    return
  }
  func.func @transform_0(%arg0: i32, %arg1: i32) -> (i32, i32, i32, i32) {
    %c0_i32 = arith.constant 0 : i32
    %c0_i32_0 = arith.constant 0 : i32
    %c0_i32_1 = arith.constant 0 : i32
    %c0_i32_2 = arith.constant 0 : i32
    return %arg0, %c0_i32, %c0_i32_0, %c0_i32_1 : i32, i32, i32, i32
  }
  func.func @transform_1(%arg0: i32, %arg1: i32) -> (i32, i32, i32) {
    %c0_i32 = arith.constant 0 : i32
    %c0_i32_0 = arith.constant 0 : i32
    %c0_i32_1 = arith.constant 0 : i32
    return %c0_i32, %c0_i32_0, %arg1 : i32, i32, i32
  }
  func.func @transform_2(%arg0: i32, %arg1: i32) -> (i32, i32) {
    %c0_i32 = arith.constant 0 : i32
    %c0_i32_0 = arith.constant 0 : i32
    return %c0_i32, %arg1 : i32, i32
  }
  func.func @transform_3(%arg0: i32, %arg1: i32) -> (i32, i32, i32, i32) {
    %c0_i32 = arith.constant 0 : i32
    %c0_i32_0 = arith.constant 0 : i32
    %c0_i32_1 = arith.constant 0 : i32
    return %arg0, %c0_i32, %c0_i32_0, %arg1 : i32, i32, i32, i32
  }
  func.func @transform_4(%arg0: i32, %arg1: i32) -> (i32, i32, i32, i32) {
    %c0_i32 = arith.constant 0 : i32
    %c0_i32_0 = arith.constant 0 : i32
    %c0_i32_1 = arith.constant 0 : i32
    return %arg0, %arg1, %c0_i32, %c0_i32_0 : i32, i32, i32, i32
  }
  func.func @transform_5(%arg0: i32, %arg1: i32) -> (i32, i32, i32, i32) {
    %c0_i32 = arith.constant 0 : i32
    %c0_i32_0 = arith.constant 0 : i32
    %c0_i32_1 = arith.constant 0 : i32
    return %arg0, %arg1, %c0_i32, %c0_i32_0 : i32, i32, i32, i32
  }
  func.func @transform_6(%arg0: i32, %arg1: i32) -> (i32, i32, i32, i32) {
    %c0_i32 = arith.constant 0 : i32
    %c0_i32_0 = arith.constant 0 : i32
    %c0_i32_1 = arith.constant 0 : i32
    return %arg0, %c0_i32, %c0_i32_0, %arg1 : i32, i32, i32, i32
  }
  func.func @transform_7(%arg0: i32, %arg1: i32) -> (i32, i32, i32, i32) {
    %c0_i32 = arith.constant 0 : i32
    %c0_i32_0 = arith.constant 0 : i32
    %c0_i32_1 = arith.constant 0 : i32
    return %arg0, %arg1, %c0_i32, %c0_i32_0 : i32, i32, i32, i32
  }
  func.func @transform_8(%arg0: i32, %arg1: i32) -> (i32, i32, i32, i32) {
    %c0_i32 = arith.constant 0 : i32
    %c0_i32_0 = arith.constant 0 : i32
    %c0_i32_1 = arith.constant 0 : i32
    return %arg0, %arg1, %c0_i32, %c0_i32_0 : i32, i32, i32, i32
  }
}

module attributes {stable_mosaic.version = 11 : i64} {
  func.func @_conv_kernel(%arg0: i32, %arg1: i32, %arg2: memref<1x8x8x128xbf16, #tpu.memory_space<vmem>>, %arg3: memref<1x128xf32, #tpu.memory_space<vmem>>, %arg4: memref<1x128xf32, #tpu.memory_space<vmem>>, %arg5: memref<9x128x128xbf16, #tpu.memory_space<vmem>>, %arg6: memref<1x8x8x128xbf16, #tpu.memory_space<vmem>>, %arg7: memref<1x1x1x128xf32, #tpu.memory_space<vmem>>, %arg8: memref<1x1x1x128xf32, #tpu.memory_space<vmem>>, %arg9: memref<10x17x128xf32, #tpu.memory_space<vmem>>, %arg10: memref<9x64x128xbf16, #tpu.memory_space<vmem>>) attributes {dimension_semantics = [#tpu.dimension_semantics<parallel>, #tpu.dimension_semantics<arbitrary>], iteration_bounds = array<i64: 2, 1>, scalar_prefetch = 0 : i64, scratch_operands = 2 : i64, tpu.core_type = #tpu.core_type<tc>, window_params = [{transform_indices = @transform_0, window_bounds = array<i64: 1, 8, 8, 128>}, {pipeline_mode = #tpu.pipeline_mode<synchronous>, transform_indices = @transform_1, window_bounds = array<i64: 1, 128>}, {pipeline_mode = #tpu.pipeline_mode<synchronous>, transform_indices = @transform_2, window_bounds = array<i64: 1, 128>}, {transform_indices = @transform_3, window_bounds = array<i64: 9, 128, 128>}, {transform_indices = @transform_4, window_bounds = array<i64: 1, 8, 8, 128>}, {transform_indices = @transform_5, window_bounds = array<i64: 1, 1, 1, 128>}, {transform_indices = @transform_6, window_bounds = array<i64: 1, 1, 1, 128>}]} {
    %c0_i32 = arith.constant 0 : i32
    %0 = arith.cmpi eq, %arg1, %c0_i32 : i32
    %1 = arith.extui %0 : i1 to i32
    %c0_i32_0 = arith.constant 0 : i32
    %2 = arith.cmpi ne, %1, %c0_i32_0 : i32
    scf.if %2 {
      %c0_68 = arith.constant 0 : index
      %c0_69 = arith.constant 0 : index
      %c0_70 = arith.constant 0 : index
      %c0_71 = arith.constant 0 : index
      %66 = vector.load %arg2[%c0_68, %c0_69, %c0_70, %c0_71] : memref<1x8x8x128xbf16, #tpu.memory_space<vmem>>, vector<1x8x8x128xbf16>
      %67 = vector.shape_cast %66 : vector<1x8x8x128xbf16> to vector<8x8x128xbf16>
      %68 = arith.extf %67 : vector<8x8x128xbf16> to vector<8x8x128xf32>
      %c0_72 = arith.constant 0 : index
      %c0_73 = arith.constant 0 : index
      %69 = vector.load %arg3[%c0_72, %c0_73] : memref<1x128xf32, #tpu.memory_space<vmem>>, vector<1x128xf32>
      %70 = vector.shape_cast %69 : vector<1x128xf32> to vector<1x1x128xf32>
      %71 = vector.broadcast %70 : vector<1x1x128xf32> to vector<8x8x128xf32>
      %72 = arith.mulf %68, %71 : vector<8x8x128xf32>
      %c0_74 = arith.constant 0 : index
      %c0_75 = arith.constant 0 : index
      %73 = vector.load %arg4[%c0_74, %c0_75] : memref<1x128xf32, #tpu.memory_space<vmem>>, vector<1x128xf32>
      %74 = vector.shape_cast %73 : vector<1x128xf32> to vector<1x1x128xf32>
      %75 = vector.broadcast %74 : vector<1x1x128xf32> to vector<8x8x128xf32>
      %76 = arith.addf %72, %75 : vector<8x8x128xf32>
      %cst_76 = arith.constant 0.000000e+00 : f32
      %77 = vector.broadcast %cst_76 : f32 to vector<8x8x128xf32>
      %78 = arith.maximumf %76, %77 : vector<8x8x128xf32>
      %cst_77 = arith.constant 0.000000e+00 : f32
      %79 = vector.broadcast %cst_77 : f32 to vector<17x128xf32>
      %c0_78 = arith.constant 0 : index
      %c0_79 = arith.constant 0 : index
      %c0_80 = arith.constant 0 : index
      %80 = vector.load %arg9[%c0_78, %c0_79, %c0_80] : memref<10x17x128xf32, #tpu.memory_space<vmem>>, vector<1x17x128xf32>
      %81 = vector.shape_cast %80 : vector<1x17x128xf32> to vector<17x128xf32>
      %82 = vector.shape_cast %79 : vector<17x128xf32> to vector<1x17x128xf32>
      tpu.vector_store %arg9[%c0_78, %c0_79, %c0_80], %82 {strides = array<i32>} : memref<10x17x128xf32, #tpu.memory_space<vmem>>, vector<1x17x128xf32>,
      %c9 = arith.constant 9 : index
      %c0_81 = arith.constant 0 : index
      %c0_82 = arith.constant 0 : index
      %83 = vector.load %arg9[%c9, %c0_81, %c0_82] : memref<10x17x128xf32, #tpu.memory_space<vmem>>, vector<1x17x128xf32>
      %84 = vector.shape_cast %83 : vector<1x17x128xf32> to vector<17x128xf32>
      %85 = vector.shape_cast %79 : vector<17x128xf32> to vector<1x17x128xf32>
      tpu.vector_store %arg9[%c9, %c0_81, %c0_82], %85 {strides = array<i32>} : memref<10x17x128xf32, #tpu.memory_space<vmem>>, vector<1x17x128xf32>,
      %cst_83 = arith.constant 0.000000e+00 : f32
      %86 = vector.broadcast %cst_83 : f32 to vector<10x1x128xf32>
      %c0_84 = arith.constant 0 : index
      %c7_85 = arith.constant 7 : index
      %c0_86 = arith.constant 0 : index
      %87 = vector.load %arg9[%c0_84, %c7_85, %c0_86] : memref<10x17x128xf32, #tpu.memory_space<vmem>>, vector<10x1x128xf32>
      tpu.vector_store %arg9[%c0_84, %c7_85, %c0_86], %86 {strides = array<i32>} : memref<10x17x128xf32, #tpu.memory_space<vmem>>, vector<10x1x128xf32>,
      %c0_87 = arith.constant 0 : index
      %c16 = arith.constant 16 : index
      %c0_88 = arith.constant 0 : index
      %88 = vector.load %arg9[%c0_87, %c16, %c0_88] : memref<10x17x128xf32, #tpu.memory_space<vmem>>, vector<10x1x128xf32>
      tpu.vector_store %arg9[%c0_87, %c16, %c0_88], %86 {strides = array<i32>} : memref<10x17x128xf32, #tpu.memory_space<vmem>>, vector<10x1x128xf32>,
      %c1_89 = arith.constant 1 : index
      %c8_90 = arith.constant 8 : index
      %c0_91 = arith.constant 0 : index
      %89 = vector.load %arg9[%c1_89, %c8_90, %c0_91] : memref<10x17x128xf32, #tpu.memory_space<vmem>>, vector<8x8x128xf32>
      tpu.vector_store %arg9[%c1_89, %c8_90, %c0_91], %78 {strides = array<i32>} : memref<10x17x128xf32, #tpu.memory_space<vmem>>, vector<8x8x128xf32>,
      %c0_92 = arith.constant 0 : index
      %c7_93 = arith.constant 7 : index
      %c0_94 = arith.constant 0 : index
      %90 = vector.load %arg9[%c0_92, %c7_93, %c0_94] : memref<10x17x128xf32, #tpu.memory_space<vmem>>, vector<8x8x128xf32>
      %91 = vector.shape_cast %90 : vector<8x8x128xf32> to vector<64x128xf32>
      %92 = arith.truncf %91 : vector<64x128xf32> to vector<64x128xbf16>
      %c0_95 = arith.constant 0 : index
      %c0_96 = arith.constant 0 : index
      %c0_97 = arith.constant 0 : index
      %93 = vector.load %arg10[%c0_95, %c0_96, %c0_97] : memref<9x64x128xbf16, #tpu.memory_space<vmem>>, vector<1x64x128xbf16>
      %94 = vector.shape_cast %93 : vector<1x64x128xbf16> to vector<64x128xbf16>
      %95 = vector.shape_cast %92 : vector<64x128xbf16> to vector<1x64x128xbf16>
      tpu.vector_store %arg10[%c0_95, %c0_96, %c0_97], %95 {strides = array<i32>} : memref<9x64x128xbf16, #tpu.memory_space<vmem>>, vector<1x64x128xbf16>,
      %c0_98 = arith.constant 0 : index
      %c8_99 = arith.constant 8 : index
      %c0_100 = arith.constant 0 : index
      %96 = vector.load %arg9[%c0_98, %c8_99, %c0_100] : memref<10x17x128xf32, #tpu.memory_space<vmem>>, vector<8x8x128xf32>
      %97 = vector.shape_cast %96 : vector<8x8x128xf32> to vector<64x128xf32>
      %98 = arith.truncf %97 : vector<64x128xf32> to vector<64x128xbf16>
      %c1_101 = arith.constant 1 : index
      %c0_102 = arith.constant 0 : index
      %c0_103 = arith.constant 0 : index
      %99 = vector.load %arg10[%c1_101, %c0_102, %c0_103] : memref<9x64x128xbf16, #tpu.memory_space<vmem>>, vector<1x64x128xbf16>
      %100 = vector.shape_cast %99 : vector<1x64x128xbf16> to vector<64x128xbf16>
      %101 = vector.shape_cast %98 : vector<64x128xbf16> to vector<1x64x128xbf16>
      tpu.vector_store %arg10[%c1_101, %c0_102, %c0_103], %101 {strides = array<i32>} : memref<9x64x128xbf16, #tpu.memory_space<vmem>>, vector<1x64x128xbf16>,
      %c0_104 = arith.constant 0 : index
      %c9_105 = arith.constant 9 : index
      %c0_106 = arith.constant 0 : index
      %102 = vector.load %arg9[%c0_104, %c9_105, %c0_106] : memref<10x17x128xf32, #tpu.memory_space<vmem>>, vector<8x8x128xf32>
      %103 = vector.shape_cast %102 : vector<8x8x128xf32> to vector<64x128xf32>
      %104 = arith.truncf %103 : vector<64x128xf32> to vector<64x128xbf16>
      %c2_107 = arith.constant 2 : index
      %c0_108 = arith.constant 0 : index
      %c0_109 = arith.constant 0 : index
      %105 = vector.load %arg10[%c2_107, %c0_108, %c0_109] : memref<9x64x128xbf16, #tpu.memory_space<vmem>>, vector<1x64x128xbf16>
      %106 = vector.shape_cast %105 : vector<1x64x128xbf16> to vector<64x128xbf16>
      %107 = vector.shape_cast %104 : vector<64x128xbf16> to vector<1x64x128xbf16>
      tpu.vector_store %arg10[%c2_107, %c0_108, %c0_109], %107 {strides = array<i32>} : memref<9x64x128xbf16, #tpu.memory_space<vmem>>, vector<1x64x128xbf16>,
      %c1_110 = arith.constant 1 : index
      %c7_111 = arith.constant 7 : index
      %c0_112 = arith.constant 0 : index
      %108 = vector.load %arg9[%c1_110, %c7_111, %c0_112] : memref<10x17x128xf32, #tpu.memory_space<vmem>>, vector<8x8x128xf32>
      %109 = vector.shape_cast %108 : vector<8x8x128xf32> to vector<64x128xf32>
      %110 = arith.truncf %109 : vector<64x128xf32> to vector<64x128xbf16>
      %c3_113 = arith.constant 3 : index
      %c0_114 = arith.constant 0 : index
      %c0_115 = arith.constant 0 : index
      %111 = vector.load %arg10[%c3_113, %c0_114, %c0_115] : memref<9x64x128xbf16, #tpu.memory_space<vmem>>, vector<1x64x128xbf16>
      %112 = vector.shape_cast %111 : vector<1x64x128xbf16> to vector<64x128xbf16>
      %113 = vector.shape_cast %110 : vector<64x128xbf16> to vector<1x64x128xbf16>
      tpu.vector_store %arg10[%c3_113, %c0_114, %c0_115], %113 {strides = array<i32>} : memref<9x64x128xbf16, #tpu.memory_space<vmem>>, vector<1x64x128xbf16>,
      %c1_116 = arith.constant 1 : index
      %c8_117 = arith.constant 8 : index
      %c0_118 = arith.constant 0 : index
      %114 = vector.load %arg9[%c1_116, %c8_117, %c0_118] : memref<10x17x128xf32, #tpu.memory_space<vmem>>, vector<8x8x128xf32>
      %115 = vector.shape_cast %114 : vector<8x8x128xf32> to vector<64x128xf32>
      %116 = arith.truncf %115 : vector<64x128xf32> to vector<64x128xbf16>
      %c4_119 = arith.constant 4 : index
      %c0_120 = arith.constant 0 : index
      %c0_121 = arith.constant 0 : index
      %117 = vector.load %arg10[%c4_119, %c0_120, %c0_121] : memref<9x64x128xbf16, #tpu.memory_space<vmem>>, vector<1x64x128xbf16>
      %118 = vector.shape_cast %117 : vector<1x64x128xbf16> to vector<64x128xbf16>
      %119 = vector.shape_cast %116 : vector<64x128xbf16> to vector<1x64x128xbf16>
      tpu.vector_store %arg10[%c4_119, %c0_120, %c0_121], %119 {strides = array<i32>} : memref<9x64x128xbf16, #tpu.memory_space<vmem>>, vector<1x64x128xbf16>,
      %c1_122 = arith.constant 1 : index
      %c9_123 = arith.constant 9 : index
      %c0_124 = arith.constant 0 : index
      %120 = vector.load %arg9[%c1_122, %c9_123, %c0_124] : memref<10x17x128xf32, #tpu.memory_space<vmem>>, vector<8x8x128xf32>
      %121 = vector.shape_cast %120 : vector<8x8x128xf32> to vector<64x128xf32>
      %122 = arith.truncf %121 : vector<64x128xf32> to vector<64x128xbf16>
      %c5_125 = arith.constant 5 : index
      %c0_126 = arith.constant 0 : index
      %c0_127 = arith.constant 0 : index
      %123 = vector.load %arg10[%c5_125, %c0_126, %c0_127] : memref<9x64x128xbf16, #tpu.memory_space<vmem>>, vector<1x64x128xbf16>
      %124 = vector.shape_cast %123 : vector<1x64x128xbf16> to vector<64x128xbf16>
      %125 = vector.shape_cast %122 : vector<64x128xbf16> to vector<1x64x128xbf16>
      tpu.vector_store %arg10[%c5_125, %c0_126, %c0_127], %125 {strides = array<i32>} : memref<9x64x128xbf16, #tpu.memory_space<vmem>>, vector<1x64x128xbf16>,
      %c2_128 = arith.constant 2 : index
      %c7_129 = arith.constant 7 : index
      %c0_130 = arith.constant 0 : index
      %126 = vector.load %arg9[%c2_128, %c7_129, %c0_130] : memref<10x17x128xf32, #tpu.memory_space<vmem>>, vector<8x8x128xf32>
      %127 = vector.shape_cast %126 : vector<8x8x128xf32> to vector<64x128xf32>
      %128 = arith.truncf %127 : vector<64x128xf32> to vector<64x128xbf16>
      %c6_131 = arith.constant 6 : index
      %c0_132 = arith.constant 0 : index
      %c0_133 = arith.constant 0 : index
      %129 = vector.load %arg10[%c6_131, %c0_132, %c0_133] : memref<9x64x128xbf16, #tpu.memory_space<vmem>>, vector<1x64x128xbf16>
      %130 = vector.shape_cast %129 : vector<1x64x128xbf16> to vector<64x128xbf16>
      %131 = vector.shape_cast %128 : vector<64x128xbf16> to vector<1x64x128xbf16>
      tpu.vector_store %arg10[%c6_131, %c0_132, %c0_133], %131 {strides = array<i32>} : memref<9x64x128xbf16, #tpu.memory_space<vmem>>, vector<1x64x128xbf16>,
      %c2_134 = arith.constant 2 : index
      %c8_135 = arith.constant 8 : index
      %c0_136 = arith.constant 0 : index
      %132 = vector.load %arg9[%c2_134, %c8_135, %c0_136] : memref<10x17x128xf32, #tpu.memory_space<vmem>>, vector<8x8x128xf32>
      %133 = vector.shape_cast %132 : vector<8x8x128xf32> to vector<64x128xf32>
      %134 = arith.truncf %133 : vector<64x128xf32> to vector<64x128xbf16>
      %c7_137 = arith.constant 7 : index
      %c0_138 = arith.constant 0 : index
      %c0_139 = arith.constant 0 : index
      %135 = vector.load %arg10[%c7_137, %c0_138, %c0_139] : memref<9x64x128xbf16, #tpu.memory_space<vmem>>, vector<1x64x128xbf16>
      %136 = vector.shape_cast %135 : vector<1x64x128xbf16> to vector<64x128xbf16>
      %137 = vector.shape_cast %134 : vector<64x128xbf16> to vector<1x64x128xbf16>
      tpu.vector_store %arg10[%c7_137, %c0_138, %c0_139], %137 {strides = array<i32>} : memref<9x64x128xbf16, #tpu.memory_space<vmem>>, vector<1x64x128xbf16>,
      %c2_140 = arith.constant 2 : index
      %c9_141 = arith.constant 9 : index
      %c0_142 = arith.constant 0 : index
      %138 = vector.load %arg9[%c2_140, %c9_141, %c0_142] : memref<10x17x128xf32, #tpu.memory_space<vmem>>, vector<8x8x128xf32>
      %139 = vector.shape_cast %138 : vector<8x8x128xf32> to vector<64x128xf32>
      %140 = arith.truncf %139 : vector<64x128xf32> to vector<64x128xbf16>
      %c8_143 = arith.constant 8 : index
      %c0_144 = arith.constant 0 : index
      %c0_145 = arith.constant 0 : index
      %141 = vector.load %arg10[%c8_143, %c0_144, %c0_145] : memref<9x64x128xbf16, #tpu.memory_space<vmem>>, vector<1x64x128xbf16>
      %142 = vector.shape_cast %141 : vector<1x64x128xbf16> to vector<64x128xbf16>
      %143 = vector.shape_cast %140 : vector<64x128xbf16> to vector<1x64x128xbf16>
      tpu.vector_store %arg10[%c8_143, %c0_144, %c0_145], %143 {strides = array<i32>} : memref<9x64x128xbf16, #tpu.memory_space<vmem>>, vector<1x64x128xbf16>,
    } else {
    }
    %c0 = arith.constant 0 : index
    %c0_1 = arith.constant 0 : index
    %c0_2 = arith.constant 0 : index
    %3 = vector.load %arg10[%c0, %c0_1, %c0_2] : memref<9x64x128xbf16, #tpu.memory_space<vmem>>, vector<1x64x128xbf16>
    %4 = vector.shape_cast %3 : vector<1x64x128xbf16> to vector<64x128xbf16>
    %c0_3 = arith.constant 0 : index
    %c0_4 = arith.constant 0 : index
    %c0_5 = arith.constant 0 : index
    %5 = vector.load %arg5[%c0_3, %c0_4, %c0_5] : memref<9x128x128xbf16, #tpu.memory_space<vmem>>, vector<1x128x128xbf16>
    %6 = vector.shape_cast %5 : vector<1x128x128xbf16> to vector<128x128xbf16>
    %cst = arith.constant dense<0.000000e+00> : vector<64x128xf32>
    %7 = tpu.matmul %4, %6, %cst {dimension_numbers = #tpu.dot_dimension_numbers<[1], [0], [0], [1], [0, 0, 1, 1], [], []>} : vector<64x128xbf16>, vector<128x128xbf16>, vector<64x128xf32> -> vector<64x128xf32>
    %c1 = arith.constant 1 : index
    %c0_6 = arith.constant 0 : index
    %c0_7 = arith.constant 0 : index
    %8 = vector.load %arg10[%c1, %c0_6, %c0_7] : memref<9x64x128xbf16, #tpu.memory_space<vmem>>, vector<1x64x128xbf16>
    %9 = vector.shape_cast %8 : vector<1x64x128xbf16> to vector<64x128xbf16>
    %c1_8 = arith.constant 1 : index
    %c0_9 = arith.constant 0 : index
    %c0_10 = arith.constant 0 : index
    %10 = vector.load %arg5[%c1_8, %c0_9, %c0_10] : memref<9x128x128xbf16, #tpu.memory_space<vmem>>, vector<1x128x128xbf16>
    %11 = vector.shape_cast %10 : vector<1x128x128xbf16> to vector<128x128xbf16>
    %cst_11 = arith.constant dense<0.000000e+00> : vector<64x128xf32>
    %12 = tpu.matmul %9, %11, %cst_11 {dimension_numbers = #tpu.dot_dimension_numbers<[1], [0], [0], [1], [0, 0, 1, 1], [], []>} : vector<64x128xbf16>, vector<128x128xbf16>, vector<64x128xf32> -> vector<64x128xf32>
    %13 = arith.addf %7, %12 : vector<64x128xf32>
    %c2 = arith.constant 2 : index
    %c0_12 = arith.constant 0 : index
    %c0_13 = arith.constant 0 : index
    %14 = vector.load %arg10[%c2, %c0_12, %c0_13] : memref<9x64x128xbf16, #tpu.memory_space<vmem>>, vector<1x64x128xbf16>
    %15 = vector.shape_cast %14 : vector<1x64x128xbf16> to vector<64x128xbf16>
    %c2_14 = arith.constant 2 : index
    %c0_15 = arith.constant 0 : index
    %c0_16 = arith.constant 0 : index
    %16 = vector.load %arg5[%c2_14, %c0_15, %c0_16] : memref<9x128x128xbf16, #tpu.memory_space<vmem>>, vector<1x128x128xbf16>
    %17 = vector.shape_cast %16 : vector<1x128x128xbf16> to vector<128x128xbf16>
    %cst_17 = arith.constant dense<0.000000e+00> : vector<64x128xf32>
    %18 = tpu.matmul %15, %17, %cst_17 {dimension_numbers = #tpu.dot_dimension_numbers<[1], [0], [0], [1], [0, 0, 1, 1], [], []>} : vector<64x128xbf16>, vector<128x128xbf16>, vector<64x128xf32> -> vector<64x128xf32>
    %19 = arith.addf %13, %18 : vector<64x128xf32>
    %c3 = arith.constant 3 : index
    %c0_18 = arith.constant 0 : index
    %c0_19 = arith.constant 0 : index
    %20 = vector.load %arg10[%c3, %c0_18, %c0_19] : memref<9x64x128xbf16, #tpu.memory_space<vmem>>, vector<1x64x128xbf16>
    %21 = vector.shape_cast %20 : vector<1x64x128xbf16> to vector<64x128xbf16>
    %c3_20 = arith.constant 3 : index
    %c0_21 = arith.constant 0 : index
    %c0_22 = arith.constant 0 : index
    %22 = vector.load %arg5[%c3_20, %c0_21, %c0_22] : memref<9x128x128xbf16, #tpu.memory_space<vmem>>, vector<1x128x128xbf16>
    %23 = vector.shape_cast %22 : vector<1x128x128xbf16> to vector<128x128xbf16>
    %cst_23 = arith.constant dense<0.000000e+00> : vector<64x128xf32>
    %24 = tpu.matmul %21, %23, %cst_23 {dimension_numbers = #tpu.dot_dimension_numbers<[1], [0], [0], [1], [0, 0, 1, 1], [], []>} : vector<64x128xbf16>, vector<128x128xbf16>, vector<64x128xf32> -> vector<64x128xf32>
    %25 = arith.addf %19, %24 : vector<64x128xf32>
    %c4 = arith.constant 4 : index
    %c0_24 = arith.constant 0 : index
    %c0_25 = arith.constant 0 : index
    %26 = vector.load %arg10[%c4, %c0_24, %c0_25] : memref<9x64x128xbf16, #tpu.memory_space<vmem>>, vector<1x64x128xbf16>
    %27 = vector.shape_cast %26 : vector<1x64x128xbf16> to vector<64x128xbf16>
    %c4_26 = arith.constant 4 : index
    %c0_27 = arith.constant 0 : index
    %c0_28 = arith.constant 0 : index
    %28 = vector.load %arg5[%c4_26, %c0_27, %c0_28] : memref<9x128x128xbf16, #tpu.memory_space<vmem>>, vector<1x128x128xbf16>
    %29 = vector.shape_cast %28 : vector<1x128x128xbf16> to vector<128x128xbf16>
    %cst_29 = arith.constant dense<0.000000e+00> : vector<64x128xf32>
    %30 = tpu.matmul %27, %29, %cst_29 {dimension_numbers = #tpu.dot_dimension_numbers<[1], [0], [0], [1], [0, 0, 1, 1], [], []>} : vector<64x128xbf16>, vector<128x128xbf16>, vector<64x128xf32> -> vector<64x128xf32>
    %31 = arith.addf %25, %30 : vector<64x128xf32>
    %c5 = arith.constant 5 : index
    %c0_30 = arith.constant 0 : index
    %c0_31 = arith.constant 0 : index
    %32 = vector.load %arg10[%c5, %c0_30, %c0_31] : memref<9x64x128xbf16, #tpu.memory_space<vmem>>, vector<1x64x128xbf16>
    %33 = vector.shape_cast %32 : vector<1x64x128xbf16> to vector<64x128xbf16>
    %c5_32 = arith.constant 5 : index
    %c0_33 = arith.constant 0 : index
    %c0_34 = arith.constant 0 : index
    %34 = vector.load %arg5[%c5_32, %c0_33, %c0_34] : memref<9x128x128xbf16, #tpu.memory_space<vmem>>, vector<1x128x128xbf16>
    %35 = vector.shape_cast %34 : vector<1x128x128xbf16> to vector<128x128xbf16>
    %cst_35 = arith.constant dense<0.000000e+00> : vector<64x128xf32>
    %36 = tpu.matmul %33, %35, %cst_35 {dimension_numbers = #tpu.dot_dimension_numbers<[1], [0], [0], [1], [0, 0, 1, 1], [], []>} : vector<64x128xbf16>, vector<128x128xbf16>, vector<64x128xf32> -> vector<64x128xf32>
    %37 = arith.addf %31, %36 : vector<64x128xf32>
    %c6 = arith.constant 6 : index
    %c0_36 = arith.constant 0 : index
    %c0_37 = arith.constant 0 : index
    %38 = vector.load %arg10[%c6, %c0_36, %c0_37] : memref<9x64x128xbf16, #tpu.memory_space<vmem>>, vector<1x64x128xbf16>
    %39 = vector.shape_cast %38 : vector<1x64x128xbf16> to vector<64x128xbf16>
    %c6_38 = arith.constant 6 : index
    %c0_39 = arith.constant 0 : index
    %c0_40 = arith.constant 0 : index
    %40 = vector.load %arg5[%c6_38, %c0_39, %c0_40] : memref<9x128x128xbf16, #tpu.memory_space<vmem>>, vector<1x128x128xbf16>
    %41 = vector.shape_cast %40 : vector<1x128x128xbf16> to vector<128x128xbf16>
    %cst_41 = arith.constant dense<0.000000e+00> : vector<64x128xf32>
    %42 = tpu.matmul %39, %41, %cst_41 {dimension_numbers = #tpu.dot_dimension_numbers<[1], [0], [0], [1], [0, 0, 1, 1], [], []>} : vector<64x128xbf16>, vector<128x128xbf16>, vector<64x128xf32> -> vector<64x128xf32>
    %43 = arith.addf %37, %42 : vector<64x128xf32>
    %c7 = arith.constant 7 : index
    %c0_42 = arith.constant 0 : index
    %c0_43 = arith.constant 0 : index
    %44 = vector.load %arg10[%c7, %c0_42, %c0_43] : memref<9x64x128xbf16, #tpu.memory_space<vmem>>, vector<1x64x128xbf16>
    %45 = vector.shape_cast %44 : vector<1x64x128xbf16> to vector<64x128xbf16>
    %c7_44 = arith.constant 7 : index
    %c0_45 = arith.constant 0 : index
    %c0_46 = arith.constant 0 : index
    %46 = vector.load %arg5[%c7_44, %c0_45, %c0_46] : memref<9x128x128xbf16, #tpu.memory_space<vmem>>, vector<1x128x128xbf16>
    %47 = vector.shape_cast %46 : vector<1x128x128xbf16> to vector<128x128xbf16>
    %cst_47 = arith.constant dense<0.000000e+00> : vector<64x128xf32>
    %48 = tpu.matmul %45, %47, %cst_47 {dimension_numbers = #tpu.dot_dimension_numbers<[1], [0], [0], [1], [0, 0, 1, 1], [], []>} : vector<64x128xbf16>, vector<128x128xbf16>, vector<64x128xf32> -> vector<64x128xf32>
    %49 = arith.addf %43, %48 : vector<64x128xf32>
    %c8 = arith.constant 8 : index
    %c0_48 = arith.constant 0 : index
    %c0_49 = arith.constant 0 : index
    %50 = vector.load %arg10[%c8, %c0_48, %c0_49] : memref<9x64x128xbf16, #tpu.memory_space<vmem>>, vector<1x64x128xbf16>
    %51 = vector.shape_cast %50 : vector<1x64x128xbf16> to vector<64x128xbf16>
    %c8_50 = arith.constant 8 : index
    %c0_51 = arith.constant 0 : index
    %c0_52 = arith.constant 0 : index
    %52 = vector.load %arg5[%c8_50, %c0_51, %c0_52] : memref<9x128x128xbf16, #tpu.memory_space<vmem>>, vector<1x128x128xbf16>
    %53 = vector.shape_cast %52 : vector<1x128x128xbf16> to vector<128x128xbf16>
    %cst_53 = arith.constant dense<0.000000e+00> : vector<64x128xf32>
    %54 = tpu.matmul %51, %53, %cst_53 {dimension_numbers = #tpu.dot_dimension_numbers<[1], [0], [0], [1], [0, 0, 1, 1], [], []>} : vector<64x128xbf16>, vector<128x128xbf16>, vector<64x128xf32> -> vector<64x128xf32>
    %55 = arith.addf %49, %54 : vector<64x128xf32>
    %56 = vector.shape_cast %55 : vector<64x128xf32> to vector<1x8x8x128xf32>
    %57 = arith.truncf %56 : vector<1x8x8x128xf32> to vector<1x8x8x128xbf16>
    %c0_54 = arith.constant 0 : index
    %c0_55 = arith.constant 0 : index
    %c0_56 = arith.constant 0 : index
    %c0_57 = arith.constant 0 : index
    %58 = vector.load %arg6[%c0_54, %c0_55, %c0_56, %c0_57] : memref<1x8x8x128xbf16, #tpu.memory_space<vmem>>, vector<1x8x8x128xbf16>
    tpu.vector_store %arg6[%c0_54, %c0_55, %c0_56, %c0_57], %57 {strides = array<i32>} : memref<1x8x8x128xbf16, #tpu.memory_space<vmem>>, vector<1x8x8x128xbf16>,
    %cst_58 = arith.constant dense<0.000000e+00> : vector<128xf32>
    %59 = vector.multi_reduction <add>, %55, %cst_58 [0] : vector<64x128xf32> to vector<128xf32>
    %60 = vector.shape_cast %59 : vector<128xf32> to vector<1x1x1x128xf32>
    %c0_59 = arith.constant 0 : index
    %c0_60 = arith.constant 0 : index
    %c0_61 = arith.constant 0 : index
    %c0_62 = arith.constant 0 : index
    %61 = vector.load %arg7[%c0_59, %c0_60, %c0_61, %c0_62] : memref<1x1x1x128xf32, #tpu.memory_space<vmem>>, vector<1x1x1x128xf32>
    tpu.vector_store %arg7[%c0_59, %c0_60, %c0_61, %c0_62], %60 {strides = array<i32>} : memref<1x1x1x128xf32, #tpu.memory_space<vmem>>, vector<1x1x1x128xf32>,
    %62 = arith.mulf %55, %55 : vector<64x128xf32>
    %cst_63 = arith.constant dense<0.000000e+00> : vector<128xf32>
    %63 = vector.multi_reduction <add>, %62, %cst_63 [0] : vector<64x128xf32> to vector<128xf32>
    %64 = vector.shape_cast %63 : vector<128xf32> to vector<1x1x1x128xf32>
    %c0_64 = arith.constant 0 : index
    %c0_65 = arith.constant 0 : index
    %c0_66 = arith.constant 0 : index
    %c0_67 = arith.constant 0 : index
    %65 = vector.load %arg8[%c0_64, %c0_65, %c0_66, %c0_67] : memref<1x1x1x128xf32, #tpu.memory_space<vmem>>, vector<1x1x1x128xf32>
    tpu.vector_store %arg8[%c0_64, %c0_65, %c0_66, %c0_67], %64 {strides = array<i32>} : memref<1x1x1x128xf32, #tpu.memory_space<vmem>>, vector<1x1x1x128xf32>,
    return
  }
  func.func @transform_0(%arg0: i32, %arg1: i32) -> (i32, i32, i32, i32) {
    %c0_i32 = arith.constant 0 : i32
    %c0_i32_0 = arith.constant 0 : i32
    %c0_i32_1 = arith.constant 0 : i32
    %c0_i32_2 = arith.constant 0 : i32
    return %arg0, %c0_i32, %c0_i32_0, %c0_i32_1 : i32, i32, i32, i32
  }
  func.func @transform_1(%arg0: i32, %arg1: i32) -> (i32, i32) {
    %c0_i32 = arith.constant 0 : i32
    %c0_i32_0 = arith.constant 0 : i32
    %c0_i32_1 = arith.constant 0 : i32
    return %c0_i32, %c0_i32_0 : i32, i32
  }
  func.func @transform_2(%arg0: i32, %arg1: i32) -> (i32, i32) {
    %c0_i32 = arith.constant 0 : i32
    %c0_i32_0 = arith.constant 0 : i32
    %c0_i32_1 = arith.constant 0 : i32
    return %c0_i32, %c0_i32_0 : i32, i32
  }
  func.func @transform_3(%arg0: i32, %arg1: i32) -> (i32, i32, i32) {
    %c0_i32 = arith.constant 0 : i32
    %c0_i32_0 = arith.constant 0 : i32
    %c0_i32_1 = arith.constant 0 : i32
    return %c0_i32, %c0_i32_0, %arg1 : i32, i32, i32
  }
  func.func @transform_4(%arg0: i32, %arg1: i32) -> (i32, i32, i32, i32) {
    %c0_i32 = arith.constant 0 : i32
    %c0_i32_0 = arith.constant 0 : i32
    %c0_i32_1 = arith.constant 0 : i32
    return %arg0, %c0_i32, %c0_i32_0, %arg1 : i32, i32, i32, i32
  }
  func.func @transform_5(%arg0: i32, %arg1: i32) -> (i32, i32, i32, i32) {
    %c0_i32 = arith.constant 0 : i32
    %c0_i32_0 = arith.constant 0 : i32
    %c0_i32_1 = arith.constant 0 : i32
    return %arg0, %arg1, %c0_i32, %c0_i32_0 : i32, i32, i32, i32
  }
  func.func @transform_6(%arg0: i32, %arg1: i32) -> (i32, i32, i32, i32) {
    %c0_i32 = arith.constant 0 : i32
    %c0_i32_0 = arith.constant 0 : i32
    %c0_i32_1 = arith.constant 0 : i32
    return %arg0, %arg1, %c0_i32, %c0_i32_0 : i32, i32, i32, i32
  }
}

module attributes {stable_mosaic.version = 11 : i64} {
  func.func @_residual_kernel(%arg0: i32, %arg1: i32, %arg2: memref<1x8x8x128xbf16, #tpu.memory_space<vmem>>, %arg3: memref<1x8x8x128xbf16, #tpu.memory_space<vmem>>, %arg4: memref<1x128xf32, #tpu.memory_space<vmem>>, %arg5: memref<1x128xf32, #tpu.memory_space<vmem>>, %arg6: memref<1x128xf32, #tpu.memory_space<vmem>>, %arg7: memref<1x128xf32, #tpu.memory_space<vmem>>, %arg8: memref<1x8x8x128xf32, #tpu.memory_space<vmem>>) attributes {dimension_semantics = [#tpu.dimension_semantics<parallel>, #tpu.dimension_semantics<parallel>], iteration_bounds = array<i64: 2, 1>, scalar_prefetch = 0 : i64, scratch_operands = 0 : i64, tpu.core_type = #tpu.core_type<tc>, window_params = [{transform_indices = @transform_0, window_bounds = array<i64: 1, 8, 8, 128>}, {transform_indices = @transform_1, window_bounds = array<i64: 1, 8, 8, 128>}, {transform_indices = @transform_2, window_bounds = array<i64: 1, 128>}, {transform_indices = @transform_3, window_bounds = array<i64: 1, 128>}, {transform_indices = @transform_4, window_bounds = array<i64: 1, 128>}, {transform_indices = @transform_5, window_bounds = array<i64: 1, 128>}, {transform_indices = @transform_6, window_bounds = array<i64: 1, 8, 8, 128>}]} {
    %c0 = arith.constant 0 : index
    %c0_0 = arith.constant 0 : index
    %c0_1 = arith.constant 0 : index
    %c0_2 = arith.constant 0 : index
    %0 = vector.load %arg2[%c0, %c0_0, %c0_1, %c0_2] : memref<1x8x8x128xbf16, #tpu.memory_space<vmem>>, vector<1x8x8x128xbf16>
    %1 = arith.extf %0 : vector<1x8x8x128xbf16> to vector<1x8x8x128xf32>
    %c0_3 = arith.constant 0 : index
    %c0_4 = arith.constant 0 : index
    %c0_5 = arith.constant 0 : index
    %c0_6 = arith.constant 0 : index
    %2 = vector.load %arg3[%c0_3, %c0_4, %c0_5, %c0_6] : memref<1x8x8x128xbf16, #tpu.memory_space<vmem>>, vector<1x8x8x128xbf16>
    %3 = arith.extf %2 : vector<1x8x8x128xbf16> to vector<1x8x8x128xf32>
    %c0_7 = arith.constant 0 : index
    %c0_8 = arith.constant 0 : index
    %4 = vector.load %arg4[%c0_7, %c0_8] : memref<1x128xf32, #tpu.memory_space<vmem>>, vector<1x128xf32>
    %5 = vector.shape_cast %4 : vector<1x128xf32> to vector<1x1x1x128xf32>
    %6 = vector.broadcast %5 : vector<1x1x1x128xf32> to vector<1x8x8x128xf32>
    %7 = arith.mulf %1, %6 : vector<1x8x8x128xf32>
    %c0_9 = arith.constant 0 : index
    %c0_10 = arith.constant 0 : index
    %8 = vector.load %arg5[%c0_9, %c0_10] : memref<1x128xf32, #tpu.memory_space<vmem>>, vector<1x128xf32>
    %9 = vector.shape_cast %8 : vector<1x128xf32> to vector<1x1x1x128xf32>
    %10 = vector.broadcast %9 : vector<1x1x1x128xf32> to vector<1x8x8x128xf32>
    %11 = arith.addf %7, %10 : vector<1x8x8x128xf32>
    %c0_11 = arith.constant 0 : index
    %c0_12 = arith.constant 0 : index
    %12 = vector.load %arg6[%c0_11, %c0_12] : memref<1x128xf32, #tpu.memory_space<vmem>>, vector<1x128xf32>
    %13 = vector.shape_cast %12 : vector<1x128xf32> to vector<1x1x1x128xf32>
    %14 = vector.broadcast %13 : vector<1x1x1x128xf32> to vector<1x8x8x128xf32>
    %15 = arith.mulf %3, %14 : vector<1x8x8x128xf32>
    %c0_13 = arith.constant 0 : index
    %c0_14 = arith.constant 0 : index
    %16 = vector.load %arg7[%c0_13, %c0_14] : memref<1x128xf32, #tpu.memory_space<vmem>>, vector<1x128xf32>
    %17 = vector.shape_cast %16 : vector<1x128xf32> to vector<1x1x1x128xf32>
    %18 = vector.broadcast %17 : vector<1x1x1x128xf32> to vector<1x8x8x128xf32>
    %19 = arith.addf %15, %18 : vector<1x8x8x128xf32>
    %20 = arith.addf %11, %19 : vector<1x8x8x128xf32>
    %cst = arith.constant 0.000000e+00 : f32
    %21 = vector.broadcast %cst : f32 to vector<1x8x8x128xf32>
    %22 = arith.maximumf %20, %21 : vector<1x8x8x128xf32>
    %c0_15 = arith.constant 0 : index
    %c0_16 = arith.constant 0 : index
    %c0_17 = arith.constant 0 : index
    %c0_18 = arith.constant 0 : index
    %23 = vector.load %arg8[%c0_15, %c0_16, %c0_17, %c0_18] : memref<1x8x8x128xf32, #tpu.memory_space<vmem>>, vector<1x8x8x128xf32>
    tpu.vector_store %arg8[%c0_15, %c0_16, %c0_17, %c0_18], %22 {strides = array<i32>} : memref<1x8x8x128xf32, #tpu.memory_space<vmem>>, vector<1x8x8x128xf32>,
    return
  }
  func.func @transform_0(%arg0: i32, %arg1: i32) -> (i32, i32, i32, i32) {
    %c0_i32 = arith.constant 0 : i32
    %c0_i32_0 = arith.constant 0 : i32
    %c0_i32_1 = arith.constant 0 : i32
    return %arg0, %c0_i32, %c0_i32_0, %arg1 : i32, i32, i32, i32
  }
  func.func @transform_1(%arg0: i32, %arg1: i32) -> (i32, i32, i32, i32) {
    %c0_i32 = arith.constant 0 : i32
    %c0_i32_0 = arith.constant 0 : i32
    %c0_i32_1 = arith.constant 0 : i32
    return %arg0, %c0_i32, %c0_i32_0, %arg1 : i32, i32, i32, i32
  }
  func.func @transform_2(%arg0: i32, %arg1: i32) -> (i32, i32) {
    %c0_i32 = arith.constant 0 : i32
    %c0_i32_0 = arith.constant 0 : i32
    return %c0_i32, %arg1 : i32, i32
  }
  func.func @transform_3(%arg0: i32, %arg1: i32) -> (i32, i32) {
    %c0_i32 = arith.constant 0 : i32
    %c0_i32_0 = arith.constant 0 : i32
    return %c0_i32, %arg1 : i32, i32
  }
  func.func @transform_4(%arg0: i32, %arg1: i32) -> (i32, i32) {
    %c0_i32 = arith.constant 0 : i32
    %c0_i32_0 = arith.constant 0 : i32
    return %c0_i32, %arg1 : i32, i32
  }
  func.func @transform_5(%arg0: i32, %arg1: i32) -> (i32, i32) {
    %c0_i32 = arith.constant 0 : i32
    %c0_i32_0 = arith.constant 0 : i32
    return %c0_i32, %arg1 : i32, i32
  }
  func.func @transform_6(%arg0: i32, %arg1: i32) -> (i32, i32, i32, i32) {
    %c0_i32 = arith.constant 0 : i32
    %c0_i32_0 = arith.constant 0 : i32
    %c0_i32_1 = arith.constant 0 : i32
    return %arg0, %c0_i32, %c0_i32_0, %arg1 : i32, i32, i32, i32
  }
}

</mosaic_0001>

<bundles_post_ra>
// kernel: basic_block_forward.5
= control target key start
LH: loop header
LB: loop body
LE: loop exit
PB: predicated region body
PF: predicated region fallthrough
CT: control target
= control target key end

     0   :  { %s781_s21 = smov 0   ;;  %s783_s22 = smov 0   ;;  %s895_s0 = inlined_call_operand.vmem [shape: bf16[2,8,8,128], index: 0, kind: input, shape index: {}]   ;;  %s896_s1 = inlined_call_operand.vmem [shape: bf16[2,8,8,128], index: 1, kind: input, shape index: {}]   ;;  %s897_s2 = inlined_call_operand.vmem [shape: f32[1,128], index: 2, kind: input, shape index: {}]   ;;  %s898_s3 = inlined_call_operand.vmem [shape: f32[1,128], index: 3, kind: input, shape index: {}]   ;;  %s899_s4 = inlined_call_operand.vmem [shape: f32[1,128], index: 4, kind: input, shape index: {}]   ;;  %s900_s5 = inlined_call_operand.vmem [shape: f32[1,128], index: 5, kind: input, shape index: {}]   ;;  %s901_s6 = inlined_call_operand.vmem [shape: f32[2,8,8,128], index: 6, kind: output, shape index: {}]  }
   0x1   :  { %s785_s23 = smov 0  }
   0x2 LB: > { %s28_s24 = sadd.s32 1, %s740_s22  ;;  %p644_p0 = scmp.ge.s32.totalorder %s744_s23, 1  ;;  %s744_s23 = sphi %s785_s23, %s16_s23   ;;  %s740_s22 = sphi %s783_s22, %s903_s22   ;;  %s736_s21 = sphi %s781_s21, %s902_s21  }
   0x3   : > { %p30_p1 = scmp.ge.s32.totalorder %s28_s24, 2  ;;  %p278_p2 = scmp.lt.s32.totalorder %s744_s23, 3 }
   0x5   : > { %s905_s24 = smov (%p30_p1, %s28_s24), 0  ;;  %p279_p3 = pnand %p644_p0, %p278_p2 }
   0x6   : > { %p334_p4 = scmp.lt.s32.totalorder (!%p279_p3), %s736_s21, 1 }
   0x7   : > { %282 = sbr.rel (%p279_p3) target bundleno = 38 (0x26), region = 44 }
   0xc   : > { %s907_s21 = smov (!%p334_p4, %s736_s21), 1  ;;  %v815_v0 = vld [vmem:[%s897_s2] ss:$0 sm:$0xff] }
   0xd   : > { %s657_s25 = sshll.u32 %s907_s21, 5  ;;  %v820_v1 = vld [vmem:[%s899_s4] ss:$0 sm:$0xff]  ;;  %s659_s16 = sshll.u32 %s907_s21, 6 }
   0xe   : > { %s805_s28 = scalar_lea.vmem %s895_s0, %s657_s25  ;;  %s810_s7 = scalar_lea.vmem %s896_s1, %s657_s25  ;;  %v829_v10 = vld [vmem:[%s898_s3] ss:$0 sm:$0xff] }
   0xf   : > { %v661_v2 = vld [vmem:[%s805_s28] sm:$0xff]   ;;  %v692_v4 = vld [vmem:[%s805_s28 + $0x8] sm:$0xff]   ;;  %v693_v24 = vld [vmem:[%s805_s28 + $0x10] sm:$0xff]   ;;  %s858_s19 = scalar_lea.vmem %s901_s6, %s659_s16 }
  0x10   : > { %v677_v3 = vld [vmem:[%s810_s7] sm:$0xff]   ;;  %v662_v5 = vunpack.c.l.bf16 %v661_v2  ;;  %v663_v7 = vunpack.c.h.bf16 %v661_v2  ;;  %v695_v9 = vld [vmem:[%s810_s7 + $0x8] sm:$0xff]   ;;  %v666_v12 = vunpack.c.l.bf16 %v692_v4  ;;  %v667_v14 = vunpack.c.h.bf16 %v692_v4  ;;  %v696_v25 = vld [vmem:[%s810_s7 + $0x10] sm:$0xff]  }
  0x11   : > { %v678_v6 = vunpack.c.l.bf16 %v677_v3  ;;  %v679_v8 = vunpack.c.h.bf16 %v677_v3  ;;  %v834_v11 = vld [vmem:[%s900_s5] ss:$0 sm:$0xff]  ;;  %v682_v13 = vunpack.c.l.bf16 %v695_v9  ;;  %v683_v15 = vunpack.c.h.bf16 %v695_v9  ;;  %v694_v42 = vld [vmem:[%s805_s28 + $0x18] sm:$0xff]  }
  0x12   : > { %v409_v16 = vmul.f32 %v662_v5, %v815_v0  ;;  %v410_v18 = vmul.f32 %v663_v7, %v815_v0  ;;  %v411_v20 = vmul.f32 %v666_v12, %v815_v0  ;;  %v412_v22 = vmul.f32 %v667_v14, %v815_v0  ;;  %v697_v43 = vld [vmem:[%s810_s7 + $0x18] sm:$0xff]  }
  0x13   : > { %v439_v17 = vmul.f32 %v678_v6, %v820_v1  ;;  %v440_v19 = vmul.f32 %v679_v8, %v820_v1  ;;  %v441_v21 = vmul.f32 %v682_v13, %v820_v1  ;;  %v442_v23 = vmul.f32 %v683_v15, %v820_v1 }
  0x14   : > { %v424_v26 = vadd.f32 %v829_v10, %v409_v16  ;;  %v425_v28 = vadd.f32 %v829_v10, %v410_v18  ;;  %v426_v30 = vadd.f32 %v829_v10, %v411_v20  ;;  %v427_v32 = vadd.f32 %v829_v10, %v412_v22 }
  0x15   : > { %v454_v27 = vadd.f32 %v834_v11, %v439_v17  ;;  %v455_v29 = vadd.f32 %v834_v11, %v440_v19  ;;  %v456_v31 = vadd.f32 %v834_v11, %v441_v21  ;;  %v457_v33 = vadd.f32 %v834_v11, %v442_v23 }
  0x16   : > { %v670_v36 = vunpack.c.l.bf16 %v693_v24  ;;  %v686_v37 = vunpack.c.l.bf16 %v696_v25  ;;  %v671_v40 = vunpack.c.h.bf16 %v693_v24  ;;  %v687_v41 = vunpack.c.h.bf16 %v696_v25 }
  0x17   : > { %v462_v34 = vadd.f32 %v454_v27, %v424_v26  ;;  %v463_v35 = vadd.f32 %v455_v29, %v425_v28  ;;  %v464_v38 = vadd.f32 %v456_v31, %v426_v30  ;;  %v465_v39 = vadd.f32 %v457_v33, %v427_v32 }
  0x18   : > { %v413_v46 = vmul.f32 %v670_v36, %v815_v0  ;;  %v443_v47 = vmul.f32 %v686_v37, %v820_v1  ;;  %v414_v50 = vmul.f32 %v671_v40, %v815_v0  ;;  %v444_v51 = vmul.f32 %v687_v41, %v820_v1 }
  0x19   : > { %v470_v44 = vmax.f32 %v462_v34, 0.0  ;;  %v471_v45 = vmax.f32 %v463_v35, 0.0  ;;  %v472_v48 = vmax.f32 %v464_v38, 0.0  ;;  %v473_v49 = vmax.f32 %v465_v39, 0.0 }
  0x1a   : > { %v428_v52 = vadd.f32 %v829_v10, %v413_v46  ;;  %v458_v53 = vadd.f32 %v834_v11, %v443_v47  ;;  %v674_v54 = vunpack.c.l.bf16 %v694_v42  ;;  %v690_v55 = vunpack.c.l.bf16 %v697_v43 }
  0x1b   : > { %478 = vst [vmem:[%s858_s19] sm:$0xff] %v470_v44  ;;  %479 = vst [vmem:[%s858_s19 + $0x8] sm:$0xff] %v471_v45  ;;  %v429_v56 = vadd.f32 %v829_v10, %v414_v50  ;;  %v459_v57 = vadd.f32 %v834_v11, %v444_v51  ;;  %v675_v58 = vunpack.c.h.bf16 %v694_v42  ;;  %v691_v59 = vunpack.c.h.bf16 %v697_v43 }
  0x1c   : > { %480 = vst [vmem:[%s858_s19 + $0x10] sm:$0xff] %v472_v48  ;;  %481 = vst [vmem:[%s858_s19 + $0x18] sm:$0xff] %v473_v49  ;;  %v466_v60 = vadd.f32 %v458_v53, %v428_v52  ;;  %v415_v61 = vmul.f32 %v674_v54, %v815_v0  ;;  %v445_v62 = vmul.f32 %v690_v55, %v820_v1 }
  0x1d   : > { %v467_v63 = vadd.f32 %v459_v57, %v429_v56  ;;  %v416_v2 = vmul.f32 %v675_v58, %v815_v0  ;;  %v446_v3 = vmul.f32 %v691_v59, %v820_v1 }
  0x1e   : > { %v474_v4 = vmax.f32 %v466_v60, 0.0  ;;  %v430_v5 = vadd.f32 %v829_v10, %v415_v61  ;;  %v460_v6 = vadd.f32 %v834_v11, %v445_v62 }
  0x1f   : > { %v475_v7 = vmax.f32 %v467_v63, 0.0  ;;  %v431_v8 = vadd.f32 %v829_v10, %v416_v2  ;;  %v461_v9 = vadd.f32 %v834_v11, %v446_v3 }
  0x20   : > { %482 = vst [vmem:[%s858_s19 + $0x20] sm:$0xff] %v474_v4  ;;  %v468_v12 = vadd.f32 %v460_v6, %v430_v5 }
  0x21   : > { %483 = vst [vmem:[%s858_s19 + $0x28] sm:$0xff] %v475_v7  ;;  %v469_v13 = vadd.f32 %v461_v9, %v431_v8 }
  0x22   : > { %v476_v14 = vmax.f32 %v468_v12, 0.0 }
  0x23   : > { %v477_v15 = vmax.f32 %v469_v13, 0.0 }
  0x24   : > { %484 = vst [vmem:[%s858_s19 + $0x30] sm:$0xff] %v476_v14 }
  0x25   : > { %485 = vst [vmem:[%s858_s19 + $0x38] sm:$0xff] %v477_v15 }
  0x26 PF: > { %s16_s23 = sadd.s32 1, %s744_s23   ;;  %s902_s21 = smov %s740_s22 }
  0x27   : > { %p13_p5 = scmp.ge.s32.totalorder %s16_s23, 4   ;;  %s903_s22 = smov %s905_s24 }
  0x29   :  { %15 = sbr.rel (!%p13_p5) target bundleno = 2 (0x2), region = 89 }

// kernel: basic_block_forward.4
= control target key start
LH: loop header
LB: loop body
LE: loop exit
PB: predicated region body
PF: predicated region fallthrough
CT: control target
= control target key end

     0   :  { %s3772_s21 = smov 0   ;;  %s3774_s22 = smov 0   ;;  %s4129_s0 = inlined_call_operand.vmem [shape: bf16[2,8,8,128], index: 0, kind: input, shape index: {}]   ;;  %s4130_s1 = inlined_call_operand.vmem [shape: f32[1,128], index: 1, kind: input, shape index: {}]   ;;  %s4131_s2 = inlined_call_operand.vmem [shape: f32[1,128], index: 2, kind: input, shape index: {}]   ;;  %s4132_s3 = inlined_call_operand.vmem [shape: bf16[9,128,128], index: 3, kind: input, shape index: {}]   ;;  %s4133_s4 = inlined_call_operand.vmem [shape: bf16[2,8,8,128], index: 4, kind: output, shape index: {0}]   ;;  %s4134_s5 = inlined_call_operand.vmem [shape: f32[2,1,1,128], index: 5, kind: output, shape index: {1}]   ;;  %s4135_s6 = inlined_call_operand.vmem [shape: f32[2,1,1,128], index: 6, kind: output, shape index: {2}]  }
   0x1   :  { %s3776_s23 = smov 0  }
   0x2 LB: > { %s29_s24 = sadd.s32 1, %s3730_s22  ;;  %p2599_p0 = scmp.ge.s32.totalorder %s3734_s23, 1  ;;  %s3734_s23 = sphi %s3776_s23, %s17_s23   ;;  %s3730_s22 = sphi %s3774_s22, %s4139_s22   ;;  %s3726_s21 = sphi %s3772_s21, %s4138_s21  }
   0x3   : > { %p31_p1 = scmp.ge.s32.totalorder %s29_s24, 2  ;;  %p244_p2 = scmp.lt.s32.totalorder %s3734_s23, 3 }
   0x5   : > { %s4141_s24 = smov (%p31_p1, %s29_s24), 0  ;;  %p245_p3 = pnand %p2599_p0, %p244_p2 }
   0x7   : > { %248 = sbr.rel (%p245_p3) target bundleno = 403 (0x193), region = 36 }
   0xc   : > { %v3604_v0 = vld [vmem:[%s4132_s3 + $0x78] sm:$0xff]   ;;  %v3606_v2 = vld [vmem:[%s4132_s3 + $0x70] sm:$0xff]   ;;  %p293_p4 = scmp.lt.s32.totalorder %s3726_s21, 1  ;;  %v3736_v3 = vmov 0.0   ;;  %v3608_v5 = vld [vmem:[%s4132_s3 + $0x68] sm:$0xff]  }
   0xd   : > { %v3605_v1 = vld [vmem:[%s4132_s3 + $0x38] sm:$0xff]   ;;  %3347 = vmatprep.subr.bf16.mxu0 %v3604_v0  ;;  %382 = vst [vmem:[#allocation2 + $0x8] sm:$0xff] %v3736_v3  ;;  %381 = vst [vmem:[#allocation2] sm:$0xff] %v3736_v3  ;;  %v3607_v4 = vld [vmem:[%s4132_s3 + $0x30] sm:$0xff]  }
   0xe   : > { %383 = vst [vmem:[#allocation2 + $0x10] sm:$0x1] %v3736_v3  ;;  %385 = vst [vmem:[#allocation2 + $0xd8] sm:$0xff] %v3736_v3  ;;  %3371 = vmatprep.subr.bf16.mxu1 %v3605_v1  ;;  %3348 = vmatpush3.bf16.msra.mxu0 %v3604_v0  ;;  %v3609_v6 = vld [vmem:[%s4132_s3 + $0x28] sm:$0xff]   ;;  %s4143_s21 = smov (!%p293_p4, %s3726_s21), 1  ;;  %v3610_v7 = vld [vmem:[%s4132_s3 + $0x60] sm:$0xff]  }
   0xf   : > { %386 = vst [vmem:[#allocation2 + $0xe0] sm:$0xff] %v3736_v3  ;;  %387 = vst [vmem:[#allocation2 + $0xe8] sm:$0x1] %v3736_v3  ;;  %3372 = vmatpush3.bf16.msra.mxu1 %v3605_v1  ;;  %3349 = vmatprep.subr.bf16.mxu0 %v3606_v2  ;;  %v3611_v8 = vld [vmem:[%s4132_s3 + $0x20] sm:$0xff]   ;;  %s2916_s17 = sshll.u32 %s4143_s21, 5  ;;  %v3612_v9 = vld [vmem:[%s4132_s3 + $0x58] sm:$0xff]   ;;  %s315_s29 = scalar_lea.vmem %s4134_s5, %s4143_s21 }
  0x10   : > { %389 = vst [vmem:[#allocation2 + $0x1f] sm:$0x1] %v3736_v3  ;;  %390 = vst [vmem:[#allocation2 + $0x37] sm:$0x1] %v3736_v3  ;;  %3373 = vmatprep.subr.bf16.mxu1 %v3607_v4  ;;  %v3613_v10 = vld [vmem:[%s4132_s3 + $0x18] sm:$0xff]   ;;  %s3860_s28 = scalar_lea.vmem %s4129_s0, %s2916_s17  ;;  %v3614_v11 = vld [vmem:[%s4132_s3 + $0x50] sm:$0xff]   ;;  %s4106_s26 = scalar_lea.vmem %s4133_s4, %s2916_s17 }
  0x11   : > { %391 = vst [vmem:[#allocation2 + $0x4f] sm:$0x1] %v3736_v3  ;;  %392 = vst [vmem:[#allocation2 + $0x67] sm:$0x1] %v3736_v3  ;;  %v2991_v12 = vld [vmem:[%s3860_s28] sm:$0xff]   ;;  %v3615_v14 = vld [vmem:[%s4132_s3 + $0x10] sm:$0xff]   ;;  %s321_s7 = scalar_lea.vmem %s4135_s6, %s4143_s21 }
  0x12   : > { %393 = vst [vmem:[#allocation2 + $0x7f] sm:$0x1] %v3736_v3  ;;  %394 = vst [vmem:[#allocation2 + $0x97] sm:$0x1] %v3736_v3  ;;  %3350 = vmatpush3.bf16.msra.mxu0 %v3606_v2  ;;  %v2604_v13 = vld [vmem:[%s4130_s1] ss:$0 sm:$0xff]  ;;  %v2992_v15 = vunpack.c.l.bf16 %v2991_v12  ;;  %v2993_v16 = vunpack.c.h.bf16 %v2991_v12 }
  0x13   : > { %395 = vst [vmem:[#allocation2 + $0xaf] sm:$0x1] %v3736_v3  ;;  %396 = vst [vmem:[#allocation2 + $0xc7] sm:$0x1] %v3736_v3  ;;  %3374 = vmatpush3.bf16.msra.mxu1 %v3607_v4  ;;  %3351 = vmatprep.subr.bf16.mxu0 %v3608_v5  ;;  %v3875_v17 = vld [vmem:[%s4131_s2] ss:$0 sm:$0xff] }
  0x14   : > { %399 = vst [vmem:[#allocation2 + $0x28] sm:$0x1] %v3736_v3  ;;  %400 = vst [vmem:[#allocation2 + $0x40] sm:$0x1] %v3736_v3  ;;  %3375 = vmatprep.subr.bf16.mxu1 %v3609_v6  ;;  %v350_v18 = vmul.f32 %v2992_v15, %v2604_v13  ;;  %v3206_v19 = vld [vmem:[%s3860_s28 + $0x8] sm:$0xff]   ;;  %v351_v20 = vmul.f32 %v2993_v16, %v2604_v13  ;;  %v3618_v29 = vld [vmem:[%s4132_s3 + $0x40] sm:$0xff]  }
  0x15   : > { %401 = vst [vmem:[#allocation2 + $0x58] sm:$0x1] %v3736_v3  ;;  %402 = vst [vmem:[#allocation2 + $0x70] sm:$0x1] %v3736_v3  ;;  %v3616_v21 = vld [vmem:[%s4132_s3 + $0x48] sm:$0xff]   ;;  %v2996_v22 = vunpack.c.l.bf16 %v3206_v19  ;;  %v2997_v23 = vunpack.c.h.bf16 %v3206_v19  ;;  %v3619_v34 = vld [vmem:[%s4132_s3] sm:$0xff]  }
  0x16   : > { %403 = vst [vmem:[#allocation2 + $0x88] sm:$0x1] %v3736_v3  ;;  %404 = vst [vmem:[#allocation2 + $0xa0] sm:$0x1] %v3736_v3  ;;  %3352 = vmatpush3.bf16.msra.mxu0 %v3608_v5  ;;  %v3617_v24 = vld [vmem:[%s4132_s3 + $0x8] sm:$0xff]   ;;  %v365_v25 = vadd.f32 %v3875_v17, %v350_v18  ;;  %v366_v26 = vadd.f32 %v3875_v17, %v351_v20  ;;  %v3898_v38 = vld [vmem:[%s4132_s3 + $0xb8] sm:$0xff]  }
  0x17   : > { %405 = vst [vmem:[#allocation2 + $0xb8] sm:$0x1] %v3736_v3  ;;  %406 = vst [vmem:[#allocation2 + $0xd0] sm:$0x1] %v3736_v3  ;;  %3376 = vmatpush3.bf16.msra.mxu1 %v3609_v6  ;;  %3353 = vmatprep.subr.bf16.mxu0 %v3610_v7  ;;  %v352_v27 = vmul.f32 %v2996_v22, %v2604_v13  ;;  %v353_v28 = vmul.f32 %v2997_v23, %v2604_v13  ;;  %v3207_v39 = vld [vmem:[%s3860_s28 + $0x10] sm:$0xff]   ;;  %v3208_v44 = vld [vmem:[%s3860_s28 + $0x18] sm:$0xff]  }
  0x18   : > { %388 = vst [vmem:[#allocation2 + $0x7] sm:$0x1] %v3736_v3  ;;  %397 = vst [vmem:[#allocation2 + $0xdf] sm:$0x1] %v3736_v3  ;;  %3377 = vmatprep.subr.bf16.mxu1 %v3611_v8  ;;  %v373_v30 = vmax.f32 %v365_v25, 0.0  ;;  %v374_v31 = vmax.f32 %v366_v26, 0.0  ;;  %v3000_v42 = vunpack.c.l.bf16 %v3207_v39  ;;  %v3001_v43 = vunpack.c.h.bf16 %v3207_v39 }
  0x19   : > { %398 = vst [vmem:[#allocation2 + $0x10] sm:$0x1] %v3736_v3  ;;  %407 = vst [vmem:[#allocation2 + $0xe8] sm:$0x1] %v3736_v3  ;;  %v367_v32 = vadd.f32 %v3875_v17, %v352_v27  ;;  %v368_v33 = vadd.f32 %v3875_v17, %v353_v28  ;;  %v3905_v45 = vld [vmem:[%s4132_s3 + $0xf8] sm:$0xff]   ;;  %v3004_v46 = vunpack.c.l.bf16 %v3208_v44  ;;  %v3005_v47 = vunpack.c.h.bf16 %v3208_v44  ;;  %v3626_v1 = vld [vmem:[%s4132_s3 + $0xb0] sm:$0xff]  }
  0x1a   : > { %3354 = vmatpush3.bf16.msra.mxu0 %v3610_v7  ;;  %409 = vst [vmem:[#allocation2 + $0x20] sm:$0xff] %v373_v30  ;;  %v3029_v35 = vpack.c.bf16 %v373_v30, %v3736_v3  ;;  %410 = vst [vmem:[#allocation2 + $0x38] sm:$0xff] %v374_v31  ;;  %v3089_v36 = vpack.c.bf16 %v374_v31, %v373_v30  ;;  %v354_v50 = vmul.f32 %v3000_v42, %v2604_v13  ;;  %v3628_v22 = vld [vmem:[%s4132_s3 + $0xa8] sm:$0xff]   ;;  %v3627_v23 = vld [vmem:[%s4132_s3 + $0xf0] sm:$0xff]  }
  0x1b   : > { %3378 = vmatpush3.bf16.msra.mxu1 %v3611_v8  ;;  %3355 = vmatprep.subr.bf16.mxu0 %v3612_v9  ;;  %v375_v37 = vmax.f32 %v367_v32, 0.0  ;;  %v376_v40 = vmax.f32 %v368_v33, 0.0  ;;  %v355_v51 = vmul.f32 %v3001_v43, %v2604_v13  ;;  %v356_v52 = vmul.f32 %v3004_v46, %v2604_v13  ;;  %v3630_v25 = vld [vmem:[%s4132_s3 + $0xa0] sm:$0xff]  }
  0x1c   : > { %3379 = vmatprep.subr.bf16.mxu1 %v3613_v10  ;;  %3030 = vst [vmem:[#allocation3 + $0x20] sm:$0xff] %v3029_v35   ;;  %3090 = vst [vmem:[#allocation3 + $0x80] sm:$0xff] %v3089_v36   ;;  %v357_v53 = vmul.f32 %v3005_v47, %v2604_v13  ;;  %v369_v56 = vadd.f32 %v3875_v17, %v354_v50  ;;  %v3632_v35 = vld [vmem:[%s4132_s3 + $0x98] sm:$0xff]  }
  0x1d   : > { %411 = vst [vmem:[#allocation2 + $0x50] sm:$0xff] %v375_v37  ;;  %v3034_v41 = vpack.c.bf16 %v375_v37, %v374_v31  ;;  %412 = vst [vmem:[#allocation2 + $0x68] sm:$0xff] %v376_v40  ;;  %v3094_v48 = vpack.c.bf16 %v376_v40, %v375_v37  ;;  %v370_v57 = vadd.f32 %v3875_v17, %v355_v51  ;;  %v3631_v37 = vld [vmem:[%s4132_s3 + $0xe0] sm:$0xff]   ;;  %v3640_v51 = vld [vmem:[%s4132_s3 + $0x88] sm:$0xff]  }
  0x1e   : > { %3356 = vmatpush3.bf16.msra.mxu0 %v3612_v9  ;;  %v371_v59 = vadd.f32 %v3875_v17, %v356_v52  ;;  %v372_v61 = vadd.f32 %v3875_v17, %v357_v53  ;;  %v377_v63 = vmax.f32 %v369_v56, 0.0  ;;  %v3641_v56 = vld [vmem:[%s4132_s3 + $0xc8] sm:$0xff]  }
  0x1f   : > { %3380 = vmatpush3.bf16.msra.mxu1 %v3613_v10  ;;  %3357 = vmatprep.subr.bf16.mxu0 %v3614_v11  ;;  %v417_v49 = vld [vmem:[#allocation2 + $0x7] sm:$0xff]  ;;  %3212 = vst [vmem:[#allocation3 + $0x28] sm:$0xff] %v3034_v41   ;;  %3150 = vst [vmem:[#allocation3 + $0xe0] sm:$0xff] %v3034_v41   ;;  %v378_v2 = vmax.f32 %v370_v57, 0.0  ;;  %v3647_v57 = vld [vmem:[%s4132_s3 + $0x138] sm:$0xff]  }
  0x20   : > { %3381 = vmatprep.subr.bf16.mxu1 %v3615_v14  ;;  %3221 = vst [vmem:[#allocation3 + $0x88] sm:$0xff] %v3094_v48   ;;  %v379_v4 = vmax.f32 %v371_v59, 0.0  ;;  %413 = vst [vmem:[#allocation2 + $0x80] sm:$0xff] %v377_v63  ;;  %v3039_v6 = vpack.c.bf16 %v377_v63, %v376_v40  ;;  %v514_v8 = vld [vmem:[#allocation2 + $0x9] sm:$0xff]  ;;  %v380_v9 = vmax.f32 %v372_v61, 0.0  ;;  %v3643_v59 = vld [vmem:[%s4132_s3 + $0xc0] sm:$0xff]  }
  0x21   : > { %v418_v54 = vld [vmem:[#allocation2 + $0x1f] sm:$0xff]  ;;  %v419_v55 = vld [vmem:[#allocation2 + $0x37] sm:$0xff]  ;;  %414 = vst [vmem:[#allocation2 + $0x98] sm:$0xff] %v378_v2  ;;  %v3099_v13 = vpack.c.bf16 %v378_v2, %v377_v63  ;;  %v3654_v63 = vld [vmem:[%s4132_s3 + $0x128] sm:$0xff]  }
  0x22   : > { %3358 = vmatpush3.bf16.msra.mxu0 %v3614_v11  ;;  %v3009_v58 = vpack.c.bf16 %v418_v54, %v417_v49  ;;  %v3069_v60 = vpack.c.bf16 %v419_v55, %v418_v54  ;;  %415 = vst [vmem:[#allocation2 + $0xb0] sm:$0xff] %v379_v4  ;;  %v3044_v11 = vpack.c.bf16 %v379_v4, %v378_v2  ;;  %3213 = vst [vmem:[#allocation3 + $0x30] sm:$0xff] %v3039_v6   ;;  %v516_v15 = vld [vmem:[#allocation2 + $0x39] sm:$0xff]  ;;  %v3639_v54 = vld [vmem:[%s4132_s3 + $0xd0] sm:$0xff]  }
  0x23   : > { %3382 = vmatpush3.bf16.msra.mxu1 %v3615_v14  ;;  %3359 = vmatprep.subr.bf16.mxu0 %v3616_v21  ;;  %v3620_v62 = vld [vmem:[#allocation3 + $0x20] sm:$0xff]   ;;  %v515_v14 = vld [vmem:[#allocation2 + $0x21] sm:$0xff]  ;;  %416 = vst [vmem:[#allocation2 + $0xc8] sm:$0xff] %v380_v9  ;;  %v3104_v17 = vpack.c.bf16 %v380_v9, %v379_v4  ;;  %3230 = vst [vmem:[#allocation3 + $0xe8] sm:$0xff] %v3039_v6   ;;  %v3164_v18 = vpack.c.bf16 %v3736_v3, %v380_v9 }
  0x24   : > { %3383 = vmatprep.subr.bf16.mxu1 %v3617_v24  ;;  %3010 = vst [vmem:[#allocation3] sm:$0xff] %v3009_v58   ;;  %v420_v0 = vld [vmem:[#allocation2 + $0x4f] sm:$0xff]  ;;  %3070 = vst [vmem:[#allocation3 + $0x60] sm:$0xff] %v3069_v60   ;;  %3363 = vmatprep.mubr.bf16.mxu0 %v3620_v62  ;;  %v421_v7 = vld [vmem:[#allocation2 + $0x67] sm:$0xff]  ;;  %v3049_v19 = vpack.c.bf16 %v515_v14, %v514_v8 }
  0x25   : > { %v3014_v5 = vpack.c.bf16 %v420_v0, %v419_v55  ;;  %v3074_v12 = vpack.c.bf16 %v421_v7, %v420_v0  ;;  %v3916_v16 = vld [vmem:[#allocation2 + $0x51] sm:$0xff]  ;;  %3214 = vst [vmem:[#allocation3 + $0x38] sm:$0xff] %v3044_v11   ;;  %3222 = vst [vmem:[#allocation3 + $0x90] sm:$0xff] %v3099_v13   ;;  %v518_v40 = vld [vmem:[#allocation2 + $0x69] sm:$0xff] }
  0x26   : > { %3360 = vmatpush3.bf16.msra.mxu0 %v3616_v21  ;;  %v3624_v10 = vld [vmem:[#allocation3 + $0x28] sm:$0xff]   ;;  %v3054_v20 = vpack.c.bf16 %v3916_v16, %v516_v15  ;;  %v3109_v21 = vpack.c.bf16 %v516_v15, %v515_v14  ;;  %3231 = vst [vmem:[#allocation3 + $0xf0] sm:$0xff] %v3044_v11   ;;  %3223 = vst [vmem:[#allocation3 + $0x98] sm:$0xff] %v3104_v17   ;;  %v3642_v55 = vld [vmem:[%s4132_s3 + $0x80] sm:$0xff]  }
  0x27   : > { %3384 = vmatpush3.bf16.msra.mxu1 %v3617_v24  ;;  %3361 = vmatprep.subr.bf16.mxu0 %v3618_v29  ;;  %3209 = vst [vmem:[#allocation3 + $0x8] sm:$0xff] %v3014_v5   ;;  %3130 = vst [vmem:[#allocation3 + $0xc0] sm:$0xff] %v3014_v5   ;;  %v422_v24 = vld [vmem:[#allocation2 + $0x7f] sm:$0xff]  ;;  %v3650_v60 = vld [vmem:[%s4132_s3 + $0x130] sm:$0xff]  }
  0x28   : > { %3385 = vmatprep.subr.bf16.mxu1 %v3619_v34  ;;  %3218 = vst [vmem:[#allocation3 + $0x68] sm:$0xff] %v3074_v12   ;;  %3232 = vst [vmem:[#allocation3 + $0xf8] sm:$0xff] %v3164_v18   ;;  %v3019_v26 = vpack.c.bf16 %v422_v24, %v421_v7  ;;  %v423_v27 = vld [vmem:[#allocation2 + $0x97] sm:$0xff]  ;;  %v519_v41 = vld [vmem:[#allocation2 + $0x81] sm:$0xff] }
  0x29   : > { %3050 = vst [vmem:[#allocation3 + $0x40] sm:$0xff] %v3049_v19   ;;  %3215 = vst [vmem:[#allocation3 + $0x48] sm:$0xff] %v3054_v20   ;;  %v3930_v28 = vld [vmem:[#allocation2 + $0xaf] sm:$0xff]  ;;  %v3079_v31 = vpack.c.bf16 %v423_v27, %v422_v24  ;;  %v3634_v32 = vld [vmem:[#allocation3 + $0x30] sm:$0xff]   ;;  %v3059_v44 = vpack.c.bf16 %v519_v41, %v518_v40 }
  0x2a   : > { %3362 = vmatpush3.bf16.msra.mxu0 %v3618_v29  ;;  %3110 = vst [vmem:[#allocation3 + $0xa0] sm:$0xff] %v3109_v21   ;;  %3170 = vst [vmem:[#allocation3 + $0x100] sm:$0xff] %v3054_v20   ;;  %v3024_v30 = vpack.c.bf16 %v3930_v28, %v423_v27  ;;  %v520_v42 = vld [vmem:[#allocation2 + $0x99] sm:$0xff]  ;;  %v3947_v48 = vld [vmem:[#allocation2 + $0xb1] sm:$0xff] }
  0x2b   : > { %3386 = vmatpush3.bf16.msra.mxu1 %v3619_v34  ;;  %3395 = vmatprep.subr.bf16.mxu0 %v3898_v38  ;;  %v3621_v3 = vld [vmem:[#allocation3] sm:$0xff]   ;;  %3210 = vst [vmem:[#allocation3 + $0x10] sm:$0xff] %v3019_v26   ;;  %3227 = vst [vmem:[#allocation3 + $0xc8] sm:$0xff] %v3019_v26   ;;  %v3629_v34 = vld [vmem:[%s4132_s3 + $0xe8] sm:$0xff]   ;;  %v3119_v46 = vpack.c.bf16 %v520_v42, %v519_v41  ;;  %v3064_v50 = vpack.c.bf16 %v3947_v48, %v520_v42 }
  0x2c   : > { %3419 = vmatprep.subr.bf16.mxu1 %v3905_v45  ;;  %3387 = vmatprep.mubr.bf16.mxu1 %v3621_v3  ;;  %v3636_v33 = vld [vmem:[#allocation3 + $0x38] sm:$0xff]   ;;  %3211 = vst [vmem:[#allocation3 + $0x18] sm:$0xff] %v3024_v30   ;;  %3219 = vst [vmem:[#allocation3 + $0x70] sm:$0xff] %v3079_v31   ;;  %v3646_v39 = vld [vmem:[#allocation3 + $0x60] sm:$0xff]  }
  0x2d   : > { %3364 = vmatmul.mubr.bf16.vlgmr.msra.gmra.mxu0 %v3624_v10  ;;  %3228 = vst [vmem:[#allocation3 + $0xd0] sm:$0xff] %v3024_v30   ;;  %3216 = vst [vmem:[#allocation3 + $0x50] sm:$0xff] %v3059_v44   ;;  %v3633_v49 = vld [vmem:[%s4132_s3 + $0xd8] sm:$0xff]   ;;  %v3956_v52 = vld [vmem:[#allocation2 + $0xc7] sm:$0xff] }
  0x2e   : > { %3396 = vmatpush3.bf16.msra.mxu0 %v3898_v38  ;;  %v3625_v29 = vld [vmem:[#allocation3 + $0x8] sm:$0xff]   ;;  %3367 = vmatprep.mubr.bf16.mxu0 %v3634_v32  ;;  %v3638_v38 = vld [vmem:[%s4132_s3 + $0x90] sm:$0xff]   ;;  %3225 = vst [vmem:[#allocation3 + $0xb0] sm:$0xff] %v3119_v46   ;;  %3233 = vst [vmem:[#allocation3 + $0x108] sm:$0xff] %v3059_v44   ;;  %v3084_v53 = vpack.c.bf16 %v3956_v52, %v3930_v28 }
  0x2f   : > { %3397 = vmatprep.subr.bf16.mxu0 %v3626_v1  ;;  %3388 = vmatmul.mubr.bf16.vlgmr.msra.gmra.mxu1 %v3625_v29  ;;  %3217 = vst [vmem:[#allocation3 + $0x58] sm:$0xff] %v3064_v50   ;;  %3234 = vst [vmem:[#allocation3 + $0x110] sm:$0xff] %v3064_v50   ;;  %v3648_v62 = vld [vmem:[%s4132_s3 + $0x178] sm:$0xff]   ;;  %v3658_v5 = vld [vmem:[%s4132_s3 + $0x120] sm:$0xff]  }
  0x30   : > { %3420 = vmatpush3.bf16.msra.mxu1 %v3905_v45  ;;  %v3644_v36 = vld [vmem:[#allocation3 + $0x40] sm:$0xff]   ;;  %v3114_v45 = vpack.c.bf16 %v518_v40, %v3916_v16  ;;  %3220 = vst [vmem:[#allocation3 + $0x78] sm:$0xff] %v3084_v53   ;;  %v3645_v58 = vld [vmem:[#allocation3 + $0x48] sm:$0xff]   ;;  %v3655_v7 = vld [vmem:[%s4132_s3 + $0x168] sm:$0xff]  }
  0x31   : > { %3421 = vmatprep.subr.bf16.mxu1 %v3627_v23  ;;  %v3649_v0 = vld [vmem:[#allocation3 + $0x68] sm:$0xff]   ;;  %v3668_v6 = vld [vmem:[#allocation3 + $0x80] sm:$0xff]   ;;  %v3659_v12 = vld [vmem:[%s4132_s3 + $0x160] sm:$0xff]  }
  0x32   : > { %3398 = vmatpush3.bf16.msra.mxu0 %v3626_v1  ;;  %v3635_v43 = vld [vmem:[#allocation3 + $0x10] sm:$0xff]   ;;  %3224 = vst [vmem:[#allocation3 + $0xa8] sm:$0xff] %v3114_v45   ;;  %v3651_v1 = vld [vmem:[%s4132_s3 + $0x170] sm:$0xff]   ;;  %v3660_v8 = vld [vmem:[%s4132_s3 + $0x118] sm:$0xff]  }
  0x33   : > { %3399 = vmatprep.subr.bf16.mxu0 %v3628_v22  ;;  %v3637_v47 = vld [vmem:[#allocation3 + $0x18] sm:$0xff]   ;;  %3391 = vmatprep.mubr.bf16.mxu1 %v3635_v43  ;;  %v3656_v4 = vld [vmem:[#allocation3 + $0x70] sm:$0xff]   ;;  %v3670_v10 = vld [vmem:[#allocation3 + $0xa0] sm:$0xff]  }
  0x34   : > { %3422 = vmatpush3.bf16.msra.mxu1 %v3627_v23  ;;  %v3652_v61 = vld [vmem:[#allocation3 + $0x50] sm:$0xff]   ;;  %v3996_v11 = vld [vmem:[#allocation2 + $0xc9] sm:$0xff]  ;;  %v3661_v15 = vld [vmem:[%s4132_s3 + $0x158] sm:$0xff]  }
  0x35   : > { %3368 = vmatmul.mubr.bf16.gmra.mxu0 %v3636_v33  ;;  %3423 = vmatprep.subr.bf16.mxu1 %v3629_v34  ;;  %v3124_v13 = vpack.c.bf16 %v3996_v11, %v3947_v48  ;;  %v3662_v14 = vld [vmem:[%s4132_s3 + $0x110] sm:$0xff]   ;;  %v3664_v16 = vld [vmem:[%s4132_s3 + $0x108] sm:$0xff]   ;;  %v3666_v18 = vld [vmem:[%s4132_s3 + $0x100] sm:$0xff]  }
  0x36   : > { %3400 = vmatpush3.bf16.msra.mxu0 %v3628_v22  ;;  %3411 = vmatprep.mubr.bf16.mxu0 %v3644_v36  ;;  %v3653_v2 = vld [vmem:[#allocation3 + $0x58] sm:$0xff]   ;;  %v3663_v17 = vld [vmem:[%s4132_s3 + $0x150] sm:$0xff]   ;;  %v3671_v20 = vld [vmem:[%s4132_s3 + $0x1b8] sm:$0xff]  }
  0x37   : > { %3401 = vmatprep.subr.bf16.mxu0 %v3630_v25  ;;  %3392 = vmatmul.mubr.bf16.gmra.mxu1 %v3637_v47  ;;  %v3657_v9 = vld [vmem:[#allocation3 + $0x78] sm:$0xff]   ;;  %3226 = vst [vmem:[#allocation3 + $0xb8] sm:$0xff] %v3124_v13   ;;  %v3667_v21 = vld [vmem:[%s4132_s3 + $0x140] sm:$0xff]   ;;  %v3669_v22 = vld [vmem:[#allocation3 + $0x88] sm:$0xff]  }
  0x38   : > { %3424 = vmatpush3.bf16.msra.mxu1 %v3629_v34  ;;  %3435 = vmatprep.mubr.bf16.mxu1 %v3646_v39  ;;  %v3665_v19 = vld [vmem:[%s4132_s3 + $0x148] sm:$0xff]   ;;  %v3674_v3 = vld [vmem:[%s4132_s3 + $0x1b0] sm:$0xff]   ;;  %v3676_v23 = vld [vmem:[#allocation3 + $0x90] sm:$0xff]  }
  0x39   : > { %3425 = vmatprep.subr.bf16.mxu1 %v3631_v37  ;;  %v718_v24 = vld [vmem:[#allocation2 + $0xdf] sm:$0xff]  ;;  %v3678_v28 = vld [vmem:[%s4132_s3 + $0x1a8] sm:$0xff]   ;;  %v3675_v29 = vld [vmem:[%s4132_s3 + $0x1f0] sm:$0xff]  }
  0x3a   : > { %3402 = vmatpush3.bf16.msra.mxu0 %v3630_v25  ;;  %v3672_v25 = vld [vmem:[%s4132_s3 + $0x1f8] sm:$0xff]   ;;  %v3144_v26 = vpack.c.bf16 %v718_v24, %v3956_v52  ;;  %v3677_v30 = vld [vmem:[#allocation3 + $0x98] sm:$0xff]   ;;  %v3680_v31 = vld [vmem:[#allocation3 + $0xb0] sm:$0xff]  }
  0x3b   : > { %3403 = vmatprep.subr.bf16.mxu0 %v3632_v35  ;;  %v3673_v27 = vld [vmem:[#allocation3 + $0xa8] sm:$0xff]   ;;  %v3692_v32 = vld [vmem:[#allocation3 + $0xc0] sm:$0xff]   ;;  %v3682_v33 = vld [vmem:[%s4132_s3 + $0x1a0] sm:$0xff]  }
  0x3c   : > { %3426 = vmatpush3.bf16.msra.mxu1 %v3631_v37  ;;  %3229 = vst [vmem:[#allocation3 + $0xd8] sm:$0xff] %v3144_v26   ;;  %v3679_v34 = vld [vmem:[%s4132_s3 + $0x1e8] sm:$0xff]   ;;  %v3684_v36 = vld [vmem:[%s4132_s3 + $0x198] sm:$0xff]   ;;  %v3683_v40 = vld [vmem:[%s4132_s3 + $0x1e0] sm:$0xff]  }
  0x3d   : > { %3427 = vmatprep.subr.bf16.mxu1 %v3633_v49  ;;  %v816_v37 = vld [vmem:[#allocation2 + $0xe1] sm:$0xff]  ;;  %v3686_v41 = vld [vmem:[%s4132_s3 + $0x190] sm:$0xff]   ;;  %v3685_v42 = vld [vmem:[%s4132_s3 + $0x1d8] sm:$0xff]  }
  0x3e   : > { %3404 = vmatpush3.bf16.msra.mxu0 %v3632_v35  ;;  %v3681_v35 = vld [vmem:[#allocation3 + $0xb8] sm:$0xff]   ;;  %v3184_v39 = vpack.c.bf16 %v816_v37, %v3996_v11  ;;  %v3687_v44 = vld [vmem:[%s4132_s3 + $0x1d0] sm:$0xff]   ;;  %v3690_v45 = vld [vmem:[%s4132_s3 + $0x180] sm:$0xff]  }
  0x3f   : > { %3405 = vmatprep.subr.bf16.mxu0 %v3638_v38  ;;  %v3688_v43 = vld [vmem:[%s4132_s3 + $0x188] sm:$0xff]   ;;  %v3695_v47 = vld [vmem:[%s4132_s3 + $0x238] sm:$0xff]   ;;  %v3691_v48 = vld [vmem:[%s4132_s3 + $0x1c0] sm:$0xff]  }
  0x40   : > { %3428 = vmatpush3.bf16.msra.mxu1 %v3633_v49  ;;  %3235 = vst [vmem:[#allocation3 + $0x118] sm:$0xff] %v3184_v39   ;;  %v3689_v46 = vld [vmem:[%s4132_s3 + $0x1c8] sm:$0xff]   ;;  %v3693_v49 = vld [vmem:[#allocation3 + $0xc8] sm:$0xff]   ;;  %v3698_v50 = vld [vmem:[#allocation3 + $0xd0] sm:$0xff]  }
  0x41   : > { %3429 = vmatprep.subr.bf16.mxu1 %v3639_v54  ;;  %v3696_v52 = vld [vmem:[#allocation3 + $0xe8] sm:$0xff]   ;;  %v3700_v53 = vld [vmem:[%s4132_s3 + $0x228] sm:$0xff]  }
  0x42   : > { %3406 = vmatpush3.bf16.msra.mxu0 %v3638_v38  ;;  %v3694_v38 = vld [vmem:[#allocation3 + $0xe0] sm:$0xff]  }
  0x43   : > { %3407 = vmatprep.subr.bf16.mxu0 %v3640_v51 }
  0x44   : > { %3430 = vmatpush3.bf16.msra.mxu1 %v3639_v54  ;;  %v3701_v54 = vld [vmem:[#allocation3 + $0xf0] sm:$0xff]  }
  0x45   : > { %3431 = vmatprep.subr.bf16.mxu1 %v3641_v56 }
  0x46   : > { %3408 = vmatpush3.bf16.msra.mxu0 %v3640_v51  ;;  %v3697_v51 = vld [vmem:[%s4132_s3 + $0x230] sm:$0xff]  }
  0x47   : > { %3409 = vmatprep.subr.bf16.mxu0 %v3642_v55 }
  0x48   : > { %3432 = vmatpush3.bf16.msra.mxu1 %v3641_v56  ;;  %v3708_v56 = vld [vmem:[#allocation3 + $0x100] sm:$0xff]  }
  0x49   : > { %3433 = vmatprep.subr.bf16.mxu1 %v3643_v59 }
  0x4a   : > { %3410 = vmatpush3.bf16.msra.mxu0 %v3642_v55  ;;  %v3699_v55 = vld [vmem:[#allocation3 + $0xd8] sm:$0xff]  }
  0x4b   : > { %3443 = vmatprep.subr.bf16.mxu0 %v3647_v57 }
  0x4c   : > { %3434 = vmatpush3.bf16.msra.mxu1 %v3643_v59  ;;  %v3704_v59 = vld [vmem:[%s4132_s3 + $0x218] sm:$0xff]  }
  0x4d   : > { %3412 = vmatmul.mubr.bf16.vlgmr.msra.gmra.mxu0 %v3645_v58  ;;  %3467 = vmatprep.subr.bf16.mxu1 %v3648_v62  ;;  %v3702_v58 = vld [vmem:[#allocation3 + $0xf8] sm:$0xff]  }
  0x4e   : > { %3444 = vmatpush3.bf16.msra.mxu0 %v3647_v57  ;;  %3415 = vmatprep.mubr.bf16.mxu0 %v3652_v61  ;;  %v3703_v57 = vld [vmem:[%s4132_s3 + $0x220] sm:$0xff]   ;;  %v3705_v61 = vld [vmem:[%s4132_s3 + $0x210] sm:$0xff]  }
  0x4f   : > { %3445 = vmatprep.subr.bf16.mxu0 %v3650_v60  ;;  %3436 = vmatmul.mubr.bf16.vlgmr.msra.gmra.mxu1 %v3649_v0  ;;  %v3710_v0 = vld [vmem:[#allocation3 + $0x108] sm:$0xff]  }
  0x50   : > { %3468 = vmatpush3.bf16.msra.mxu1 %v3648_v62  ;;  %3439 = vmatprep.mubr.bf16.mxu1 %v3656_v4  ;;  %v3706_v62 = vld [vmem:[%s4132_s3 + $0x208] sm:$0xff]  }
  0x51   : > { %3469 = vmatprep.subr.bf16.mxu1 %v3651_v1 }
  0x52   : > { %3446 = vmatpush3.bf16.msra.mxu0 %v3650_v60  ;;  %v3709_v60 = vld [vmem:[#allocation3 + $0x110] sm:$0xff]  }
  0x53   : > { %3447 = vmatprep.subr.bf16.mxu0 %v3654_v63 }
  0x54   : > { %3470 = vmatpush3.bf16.msra.mxu1 %v3651_v1  ;;  %v3711_v1 = vld [vmem:[#allocation3 + $0x118] sm:$0xff]  }
  0x55   : > { %3416 = vmatmul.mubr.bf16.gmra.mxu0 %v3653_v2  ;;  %3471 = vmatprep.subr.bf16.mxu1 %v3655_v7 }
  0x56   : > { %3448 = vmatpush3.bf16.msra.mxu0 %v3654_v63  ;;  %3459 = vmatprep.mubr.bf16.mxu0 %v3668_v6  ;;  %v3707_v63 = vld [vmem:[%s4132_s3 + $0x200] sm:$0xff]  }
  0x57   : > { %3449 = vmatprep.subr.bf16.mxu0 %v3658_v5  ;;  %3440 = vmatmul.mubr.bf16.gmra.mxu1 %v3657_v9 }
  0x58   : > { %3472 = vmatpush3.bf16.msra.mxu1 %v3655_v7  ;;  %3483 = vmatprep.mubr.bf16.mxu1 %v3670_v10 }
  0x59   : > { %3473 = vmatprep.subr.bf16.mxu1 %v3659_v12 }
  0x5a   : > { %3450 = vmatpush3.bf16.msra.mxu0 %v3658_v5 }
  0x5b   : > { %3451 = vmatprep.subr.bf16.mxu0 %v3660_v8 }
  0x5c   : > { %3474 = vmatpush3.bf16.msra.mxu1 %v3659_v12 }
  0x5d   : > { %3475 = vmatprep.subr.bf16.mxu1 %v3661_v15 }
  0x5e   : > { %3452 = vmatpush3.bf16.msra.mxu0 %v3660_v8 }
  0x5f   : > { %3453 = vmatprep.subr.bf16.mxu0 %v3662_v14 }
  0x60   : > { %3476 = vmatpush3.bf16.msra.mxu1 %v3661_v15 }
  0x61   : > { %3477 = vmatprep.subr.bf16.mxu1 %v3663_v17 }
  0x62   : > { %3454 = vmatpush3.bf16.msra.mxu0 %v3662_v14 }
  0x63   : > { %3455 = vmatprep.subr.bf16.mxu0 %v3664_v16 }
  0x64   : > { %3478 = vmatpush3.bf16.msra.mxu1 %v3663_v17 }
  0x65   : > { %3479 = vmatprep.subr.bf16.mxu1 %v3665_v19 }
  0x66   : > { %3456 = vmatpush3.bf16.msra.mxu0 %v3664_v16 }
  0x67   : > { %3457 = vmatprep.subr.bf16.mxu0 %v3666_v18 }
  0x68   : > { %3480 = vmatpush3.bf16.msra.mxu1 %v3665_v19 }
  0x69   : > { %3481 = vmatprep.subr.bf16.mxu1 %v3667_v21 }
  0x6a   : > { %3458 = vmatpush3.bf16.msra.mxu0 %v3666_v18 }
  0x6b   : > { %3491 = vmatprep.subr.bf16.mxu0 %v3671_v20 }
  0x6c   : > { %3482 = vmatpush3.bf16.msra.mxu1 %v3667_v21 }
  0x6d   : > { %3460 = vmatmul.mubr.bf16.vlgmr.msra.gmra.mxu0 %v3669_v22  ;;  %3515 = vmatprep.subr.bf16.mxu1 %v3672_v25 }
  0x6e   : > { %3492 = vmatpush3.bf16.msra.mxu0 %v3671_v20  ;;  %3463 = vmatprep.mubr.bf16.mxu0 %v3676_v23 }
  0x6f   : > { %3493 = vmatprep.subr.bf16.mxu0 %v3674_v3  ;;  %3484 = vmatmul.mubr.bf16.vlgmr.msra.gmra.mxu1 %v3673_v27 }
  0x70   : > { %3516 = vmatpush3.bf16.msra.mxu1 %v3672_v25  ;;  %3487 = vmatprep.mubr.bf16.mxu1 %v3680_v31 }
  0x71   : > { %3517 = vmatprep.subr.bf16.mxu1 %v3675_v29 }
  0x72   : > { %3494 = vmatpush3.bf16.msra.mxu0 %v3674_v3 }
  0x73   : > { %3495 = vmatprep.subr.bf16.mxu0 %v3678_v28 }
  0x74   : > { %3518 = vmatpush3.bf16.msra.mxu1 %v3675_v29 }
  0x75   : > { %3464 = vmatmul.mubr.bf16.gmra.mxu0 %v3677_v30  ;;  %3519 = vmatprep.subr.bf16.mxu1 %v3679_v34 }
  0x76   : > { %3496 = vmatpush3.bf16.msra.mxu0 %v3678_v28  ;;  %3507 = vmatprep.mubr.bf16.mxu0 %v3692_v32 }
  0x77   : > { %3497 = vmatprep.subr.bf16.mxu0 %v3682_v33  ;;  %3488 = vmatmul.mubr.bf16.gmra.mxu1 %v3681_v35 }
  0x78   : > { %3520 = vmatpush3.bf16.msra.mxu1 %v3679_v34  ;;  %3531 = vmatprep.mubr.bf16.mxu1 %v3694_v38 }
  0x79   : > { %3521 = vmatprep.subr.bf16.mxu1 %v3683_v40 }
  0x7a   : > { %3498 = vmatpush3.bf16.msra.mxu0 %v3682_v33 }
  0x7b   : > { %3499 = vmatprep.subr.bf16.mxu0 %v3684_v36 }
  0x7c   : > { %3522 = vmatpush3.bf16.msra.mxu1 %v3683_v40 }
  0x7d   : > { %3523 = vmatprep.subr.bf16.mxu1 %v3685_v42 }
  0x7e   : > { %3500 = vmatpush3.bf16.msra.mxu0 %v3684_v36 }
  0x7f   : > { %3501 = vmatprep.subr.bf16.mxu0 %v3686_v41 }
  0x80   : > { %3524 = vmatpush3.bf16.msra.mxu1 %v3685_v42 }
  0x81   : > { %3525 = vmatprep.subr.bf16.mxu1 %v3687_v44 }
  0x82   : > { %3502 = vmatpush3.bf16.msra.mxu0 %v3686_v41 }
  0x83   : > { %3503 = vmatprep.subr.bf16.mxu0 %v3688_v43 }
  0x84   : > { %3526 = vmatpush3.bf16.msra.mxu1 %v3687_v44 }
  0x85   : > { %3527 = vmatprep.subr.bf16.mxu1 %v3689_v46 }
  0x86   : > { %3504 = vmatpush3.bf16.msra.mxu0 %v3688_v43 }
  0x87   : > { %3505 = vmatprep.subr.bf16.mxu0 %v3690_v45 }
  0x88   : > { %3528 = vmatpush3.bf16.msra.mxu1 %v3689_v46 }
  0x89   : > { %3529 = vmatprep.subr.bf16.mxu1 %v3691_v48 }
  0x8a   : > { %3506 = vmatpush3.bf16.msra.mxu0 %v3690_v45 }
  0x8b   : > { %3539 = vmatprep.subr.bf16.mxu0 %v3695_v47 }
  0x8c   : > { %3530 = vmatpush3.bf16.msra.mxu1 %v3691_v48 }
  0x8d   : > { %3508 = vmatmul.mubr.bf16.vlgmr.msra.gmra.mxu0 %v3693_v49  ;;  %3563 = vmatprep.subr.bf16.mxu1 %v3695_v47 }
  0x8e   : > { %3540 = vmatpush3.bf16.msra.mxu0 %v3695_v47  ;;  %3511 = vmatprep.mubr.bf16.mxu0 %v3698_v50 }
  0x8f   : > { %3541 = vmatprep.subr.bf16.mxu0 %v3697_v51  ;;  %3532 = vmatmul.mubr.bf16.vlgmr.msra.gmra.mxu1 %v3696_v52 }
  0x90   : > { %3571 = vmatpush3.bf16.msra.mxu1 %v3695_v47  ;;  %3535 = vmatprep.mubr.bf16.mxu1 %v3701_v54 }
  0x91   : > { %3564 = vmatprep.subr.bf16.mxu1 %v3697_v51 }
  0x92   : > { %3542 = vmatpush3.bf16.msra.mxu0 %v3697_v51 }
  0x93   : > { %3543 = vmatprep.subr.bf16.mxu0 %v3700_v53 }
  0x94   : > { %3572 = vmatpush3.bf16.msra.mxu1 %v3697_v51 }
  0x95   : > { %3512 = vmatmul.mubr.bf16.gmra.mxu0 %v3699_v55  ;;  %3565 = vmatprep.subr.bf16.mxu1 %v3700_v53 }
  0x96   : > { %3544 = vmatpush3.bf16.msra.mxu0 %v3700_v53  ;;  %3555 = vmatprep.mubr.bf16.mxu0 %v3708_v56 }
  0x97   : > { %3545 = vmatprep.subr.bf16.mxu0 %v3703_v57  ;;  %3536 = vmatmul.mubr.bf16.gmra.mxu1 %v3702_v58 }
  0x98   : > { %3573 = vmatpush3.bf16.msra.mxu1 %v3700_v53  ;;  %3559 = vmatprep.mubr.bf16.mxu1 %v3709_v60 }
  0x99   : > { %3566 = vmatprep.subr.bf16.mxu1 %v3703_v57 }
  0x9a   : > { %3546 = vmatpush3.bf16.msra.mxu0 %v3703_v57 }
  0x9b   : > { %3547 = vmatprep.subr.bf16.mxu0 %v3704_v59 }
  0x9c   : > { %3574 = vmatpush3.bf16.msra.mxu1 %v3703_v57 }
  0x9d   : > { %3567 = vmatprep.subr.bf16.mxu1 %v3704_v59 }
  0x9e   : > { %3548 = vmatpush3.bf16.msra.mxu0 %v3704_v59 }
  0x9f   : > { %3549 = vmatprep.subr.bf16.mxu0 %v3705_v61 }
  0xa0   : > { %3575 = vmatpush3.bf16.msra.mxu1 %v3704_v59 }
  0xa1   : > { %3568 = vmatprep.subr.bf16.mxu1 %v3705_v61 }
  0xa2   : > { %3550 = vmatpush3.bf16.msra.mxu0 %v3705_v61 }
  0xa3   : > { %3551 = vmatprep.subr.bf16.mxu0 %v3706_v62 }
  0xa4   : > { %3576 = vmatpush3.bf16.msra.mxu1 %v3705_v61 }
  0xa5   : > { %3569 = vmatprep.subr.bf16.mxu1 %v3706_v62 }
  0xa6   : > { %3552 = vmatpush3.bf16.msra.mxu0 %v3706_v62 }
  0xa7   : > { %3553 = vmatprep.subr.bf16.mxu0 %v3707_v63 }
  0xa8   : > { %3577 = vmatpush3.bf16.msra.mxu1 %v3706_v62 }
  0xa9   : > { %3570 = vmatprep.subr.bf16.mxu1 %v3707_v63 }
  0xaa   : > { %3554 = vmatpush3.bf16.msra.mxu0 %v3707_v63 }
  0xac   : > { %3578 = vmatpush3.bf16.msra.mxu1 %v3707_v63 }
  0xad   : > { %3556 = vmatmul.mubr.bf16.vlgmr.msra.gmra.mxu0 %v3710_v0 }
  0xaf   : > { %3560 = vmatmul.mubr.bf16.vlgmr.msra.gmra.mxu1 %v3711_v1 }
  0xed   : > { %v3365_v2 = vpop.f32.mrf.mxu0 }
  0xef   : > { %v1014_v4 = vpop.f32.mrf.mxu0  ;;  %v3389_v5 = vpop.f32.mrf.mxu1 }
  0xf0   : > { %v1160_v57 = vadd.f32 %v3389_v5, %v3365_v2 }
  0xf1   : > { %v3366_v6 = vpop.f32.mrf.mxu0  ;;  %v1151_v7 = vpop.f32.mrf.mxu1 }
  0xf2   : > { %v1152_v59 = vadd.f32 %v1151_v7, %v1014_v4 }
  0xf3   : > { %v1017_v8 = vpop.f32.mrf.mxu0  ;;  %v3390_v9 = vpop.f32.mrf.mxu1 }
  0xf4   : > { %v1163_v58 = vadd.f32 %v3390_v9, %v3366_v6 }
  0xf5   : > { %v3369_v10 = vpop.f32.mrf.mxu0  ;;  %v1154_v11 = vpop.f32.mrf.mxu1 }
  0xf6   : > { %v1155_v61 = vadd.f32 %v1154_v11, %v1017_v8 }
  0xf7   : > { %v1030_v12 = vpop.f32.mrf.mxu0  ;;  %v3393_v13 = vpop.f32.mrf.mxu1 }
  0xf8   : > { %v1176_v2 = vadd.f32 %v3393_v13, %v3369_v10 }
  0xf9   : > { %v3370_v14 = vpop.f32.mrf.mxu0  ;;  %v1167_v15 = vpop.f32.mrf.mxu1 }
  0xfa   : > { %v1168_v7 = vadd.f32 %v1167_v15, %v1030_v12 }
  0xfb   : > { %v1033_v16 = vpop.f32.mrf.mxu0  ;;  %v3394_v17 = vpop.f32.mrf.mxu1 }
  0xfc   : > { %v1179_v6 = vadd.f32 %v3394_v17, %v3370_v14 }
  0xfd   : > { %v1170_v19 = vpop.f32.mrf.mxu1 }
  0xfe   : > { %v1171_v8 = vadd.f32 %v1170_v19, %v1033_v16 }
 0x10d   : > { %v3413_v18 = vpop.f32.mrf.mxu0 }
 0x10e   : > { %v1347_v62 = vadd.f32 %v3413_v18, %v1160_v57 }
 0x10f   : > { %v1314_v20 = vpop.f32.mrf.mxu0  ;;  %v3437_v21 = vpop.f32.mrf.mxu1 }
 0x110   : > { %v1345_v0 = vadd.f32 %v1314_v20, %v1152_v59  ;;  %v1518_v9 = vadd.f32 %v3437_v21, %v1347_v62 }
 0x111   : > { %v3414_v22 = vpop.f32.mrf.mxu0  ;;  %v1485_v3 = vpop.f32.mrf.mxu1 }
 0x112   : > { %v1348_v63 = vadd.f32 %v3414_v22, %v1163_v58  ;;  %v1516_v11 = vadd.f32 %v1485_v3, %v1345_v0 }
 0x113   : > { %v1317_v23 = vpop.f32.mrf.mxu0  ;;  %v3438_v24 = vpop.f32.mrf.mxu1 }
 0x114   : > { %v1519_v4 = vadd.f32 %v3438_v24, %v1348_v63 }
 0x115   : > { %v3417_v25 = vpop.f32.mrf.mxu0  ;;  %v1488_v26 = vpop.f32.mrf.mxu1 }
 0x116   : > { %v1351_v18 = vadd.f32 %v3417_v25, %v1176_v2 }
 0x117   : > { %v1330_v27 = vpop.f32.mrf.mxu0  ;;  %v3441_v28 = vpop.f32.mrf.mxu1 }
 0x118   : > { %v1522_v17 = vadd.f32 %v3441_v28, %v1351_v18 }
 0x119   : > { %v3418_v29 = vpop.f32.mrf.mxu0  ;;  %v1501_v30 = vpop.f32.mrf.mxu1 }
 0x11a   : > { %v1352_v58 = vadd.f32 %v3418_v29, %v1179_v6 }
 0x11b   : > { %v1333_v31 = vpop.f32.mrf.mxu0  ;;  %v3442_v32 = vpop.f32.mrf.mxu1 }
 0x11c   : > { %v1523_v62 = vadd.f32 %v3442_v32, %v1352_v58 }
 0x11d   : > { %v1504_v34 = vpop.f32.mrf.mxu1 }
 0x12d   : > { %v3461_v33 = vpop.f32.mrf.mxu0 }
 0x12e   : > { %v1689_v20 = vadd.f32 %v3461_v33, %v1518_v9 }
 0x12f   : > { %v1656_v35 = vpop.f32.mrf.mxu0  ;;  %v3485_v36 = vpop.f32.mrf.mxu1 }
 0x130   : > { %v1687_v10 = vadd.f32 %v1656_v35, %v1516_v11  ;;  %v1860_v24 = vadd.f32 %v3485_v36, %v1689_v20 }
 0x131   : > { %v3462_v37 = vpop.f32.mrf.mxu0  ;;  %v1827_v38 = vpop.f32.mrf.mxu1 }
 0x132   : > { %v1690_v59 = vadd.f32 %v3462_v37, %v1519_v4  ;;  %v1858_v16 = vadd.f32 %v1827_v38, %v1687_v10 }
 0x133   : > { %v1659_v39 = vpop.f32.mrf.mxu0  ;;  %v3486_v40 = vpop.f32.mrf.mxu1 }
 0x134   : > { %v1861_v63 = vadd.f32 %v3486_v40, %v1690_v59 }
 0x135   : > { %v3465_v41 = vpop.f32.mrf.mxu0  ;;  %v1830_v42 = vpop.f32.mrf.mxu1 }
 0x136   : > { %v1693_v19 = vadd.f32 %v3465_v41, %v1522_v17 }
 0x137   : > { %v1672_v43 = vpop.f32.mrf.mxu0  ;;  %v3489_v44 = vpop.f32.mrf.mxu1 }
 0x138   : > { %v1864_v28 = vadd.f32 %v3489_v44, %v1693_v19 }
 0x139   : > { %v3466_v45 = vpop.f32.mrf.mxu0  ;;  %v4098_v46 = vpop.f32.mrf.mxu1 }
 0x13a   : > { %4136 = vst [vmem:[#allocation4_spill] sm:$0xff] %v4098_v46  ;;  %v1346_v46 = vadd.f32 %v1317_v23, %v1155_v61  ;;  %v1349_v23 = vadd.f32 %v1330_v27, %v1168_v7  ;;  %v1350_v61 = vadd.f32 %v1333_v31, %v1171_v8 }
 0x13b   : > { %v1675_v47 = vpop.f32.mrf.mxu0  ;;  %v3490_v48 = vpop.f32.mrf.mxu1 }
 0x13c   : > { %v1517_v22 = vadd.f32 %v1488_v26, %v1346_v46  ;;  %v1520_v12 = vadd.f32 %v1501_v30, %v1349_v23  ;;  %v1521_v15 = vadd.f32 %v1504_v34, %v1350_v61  ;;  %v1694_v26 = vadd.f32 %v3466_v45, %v1523_v62 }
 0x13d   : > { %v1846_v50 = vpop.f32.mrf.mxu1 }
 0x13e   : > { %v1688_v14 = vadd.f32 %v1659_v39, %v1517_v22  ;;  %v1691_v37 = vadd.f32 %v1672_v43, %v1520_v12  ;;  %v1692_v27 = vadd.f32 %v1675_v47, %v1521_v15  ;;  %v1865_v32 = vadd.f32 %v3490_v48, %v1694_v26 }
 0x140   : > { %v1859_v25 = vadd.f32 %v1830_v42, %v1688_v14  ;;  %v1863_v40 = vadd.f32 %v1846_v50, %v1692_v27 }
 0x141   : > { %v4137_v34 = vld [vmem:[#allocation4_spill] sm:$0xff] }
 0x142   : > { %v1862_v38 = vadd.f32 %v4137_v34, %v1691_v37 }
 0x14d   : > { %v3509_v49 = vpop.f32.mrf.mxu0 }
 0x14e   : > { %v2031_v29 = vadd.f32 %v3509_v49, %v1860_v24 }
 0x14f   : > { %v1998_v51 = vpop.f32.mrf.mxu0  ;;  %v3533_v52 = vpop.f32.mrf.mxu1 }
 0x150   : > { %v2029_v31 = vadd.f32 %v1998_v51, %v1858_v16  ;;  %v2202_v36 = vadd.f32 %v3533_v52, %v2031_v29 }
 0x151   : > { %v3510_v53 = vpop.f32.mrf.mxu0  ;;  %v2169_v54 = vpop.f32.mrf.mxu1 }
 0x152   : > { %v2032_v33 = vadd.f32 %v3510_v53, %v1861_v63  ;;  %v2200_v41 = vadd.f32 %v2169_v54, %v2029_v31 }
 0x153   : > { %v2001_v55 = vpop.f32.mrf.mxu0  ;;  %v3534_v56 = vpop.f32.mrf.mxu1 }
 0x154   : > { %v2030_v39 = vadd.f32 %v2001_v55, %v1859_v25  ;;  %v2203_v30 = vadd.f32 %v3534_v56, %v2032_v33 }
 0x155   : > { %v3513_v60 = vpop.f32.mrf.mxu0  ;;  %v2172_v1 = vpop.f32.mrf.mxu1 }
 0x156   : > { %v2035_v42 = vadd.f32 %v3513_v60, %v1864_v28  ;;  %v2201_v53 = vadd.f32 %v2172_v1, %v2030_v39 }
 0x157   : > { %v2014_v5 = vpop.f32.mrf.mxu0  ;;  %v3537_v57 = vpop.f32.mrf.mxu1 }
 0x158   : > { %v2033_v2 = vadd.f32 %v2014_v5, %v1862_v38  ;;  %v2206_v56 = vadd.f32 %v3537_v57, %v2035_v42 }
 0x159   : > { %v3514_v13 = vpop.f32.mrf.mxu0  ;;  %v2185_v21 = vpop.f32.mrf.mxu1 }
 0x15a   : > { %v2036_v43 = vadd.f32 %v3514_v13, %v1865_v32  ;;  %v2204_v9 = vadd.f32 %v2185_v21, %v2033_v2 }
 0x15b   : > { %v2017_v3 = vpop.f32.mrf.mxu0  ;;  %v3538_v35 = vpop.f32.mrf.mxu1 }
 0x15c   : > { %v2034_v48 = vadd.f32 %v2017_v3, %v1863_v40  ;;  %v2207_v60 = vadd.f32 %v3538_v35, %v2036_v43 }
 0x15d   : > { %v2188_v45 = vpop.f32.mrf.mxu1 }
 0x15e   : > { %v2205_v11 = vadd.f32 %v2188_v45, %v2034_v48 }
 0x16d   : > { %v3557_v46 = vpop.f32.mrf.mxu0 }
 0x16e   : > { %v2373_v47 = vadd.f32 %v3557_v46, %v2202_v36 }
 0x16f   : > { %v2340_v0 = vpop.f32.mrf.mxu0  ;;  %v3561_v6 = vpop.f32.mrf.mxu1 }
 0x170   : > { %v2371_v55 = vadd.f32 %v2340_v0, %v2200_v41  ;;  %v2377_v18 = vadd.f32 %v3561_v6, %v2206_v56  ;;  %v2411_v20 = vmul.f32 %v2373_v47, %v2373_v47 }
 0x171   : > { %v3558_v49 = vpop.f32.mrf.mxu0  ;;  %v2356_v54 = vpop.f32.mrf.mxu1 }
 0x172   : > { %v2374_v51 = vadd.f32 %v3558_v49, %v2203_v30  ;;  %v2409_v4 = vmul.f32 %v2371_v55, %v2371_v55  ;;  %v2375_v59 = vadd.f32 %v2356_v54, %v2204_v9  ;;  %v2415_v3 = vmul.f32 %v2377_v18, %v2377_v18 }
 0x173   : > { %v2343_v44 = vpop.f32.mrf.mxu0  ;;  %v3562_v7 = vpop.f32.mrf.mxu1 }
 0x174   : > { %v3194_v50 = vpack.c.bf16 %v2374_v51, %v2373_v47  ;;  %v2372_v52 = vadd.f32 %v2343_v44, %v2201_v53  ;;  %v2378_v22 = vadd.f32 %v3562_v7, %v2207_v60  ;;  %v2412_v14 = vmul.f32 %v2374_v51, %v2374_v51 }
 0x175   : > { %v2359_v61 = vpop.f32.mrf.mxu1  ;;  %v2413_v24 = vmul.f32 %v2375_v59, %v2375_v59 }
 0x176   : > { %3236 = vst [vmem:[%s4106_s26 + $0x8] sm:$0xff] %v3194_v50   ;;  %v3189_v1 = vpack.c.bf16 %v2372_v52, %v2371_v55  ;;  %v2395_v5 = vadd.f32 %v2372_v52, %v2371_v55  ;;  %v2410_v8 = vmul.f32 %v2372_v52, %v2372_v52  ;;  %v3204_v57 = vpack.c.bf16 %v2378_v22, %v2377_v18 }
 0x177   : > { %v2376_v10 = vadd.f32 %v2359_v61, %v2205_v11  ;;  %v2416_v29 = vmul.f32 %v2378_v22, %v2378_v22 }
 0x178   : > { %3190 = vst [vmem:[%s4106_s26] sm:$0xff] %v3189_v1   ;;  %v2396_v58 = vadd.f32 %v2395_v5, %v2373_v47  ;;  %v2417_v23 = vadd.f32 %v2410_v8, %v2409_v4  ;;  %3238 = vst [vmem:[%s4106_s26 + $0x18] sm:$0xff] %v3204_v57  }
 0x179   : > { %v3199_v21 = vpack.c.bf16 %v2376_v10, %v2375_v59  ;;  %v2414_v15 = vmul.f32 %v2376_v10, %v2376_v10 }
 0x17a   : > { %v2397_v13 = vadd.f32 %v2396_v58, %v2374_v51  ;;  %v2418_v17 = vadd.f32 %v2417_v23, %v2411_v20 }
 0x17b   : > { %3237 = vst [vmem:[%s4106_s26 + $0x10] sm:$0xff] %v3199_v21  }
 0x17c   : > { %v2398_v62 = vadd.f32 %v2397_v13, %v2375_v59  ;;  %v2419_v63 = vadd.f32 %v2418_v17, %v2412_v14 }
 0x17e   : > { %v2399_v12 = vadd.f32 %v2398_v62, %v2376_v10  ;;  %v2420_v16 = vadd.f32 %v2419_v63, %v2413_v24 }
 0x180   : > { %v2400_v19 = vadd.f32 %v2399_v12, %v2377_v18  ;;  %v2421_v25 = vadd.f32 %v2420_v16, %v2414_v15 }
 0x182   : > { %v2401_v26 = vadd.f32 %v2400_v19, %v2378_v22  ;;  %v2422_v33 = vadd.f32 %v2421_v25, %v2415_v3 }
 0x184   : > { %v2402_v37 = vrot.slane %v2401_v26, 4  ;;  %v2423_v27 = vadd.f32 %v2422_v33, %v2416_v29 }
 0x186   : > { %v2403_v31 = vadd.f32 %v2402_v37, %v2401_v26  ;;  %v2424_v35 = vrot.slane %v2423_v27, 4 }
 0x188   : > { %v2404_v46 = vrot.slane %v2403_v31, 2  ;;  %v2425_v39 = vadd.f32 %v2424_v35, %v2423_v27 }
 0x18a   : > { %v2405_v28 = vadd.f32 %v2404_v46, %v2403_v31  ;;  %v2426_v0 = vrot.slane %v2425_v39, 2 }
 0x18c   : > { %v2406_v32 = vrot.slane %v2405_v28, 1  ;;  %v2427_v36 = vadd.f32 %v2426_v0, %v2425_v39 }
 0x18e   : > { %v2407_v30 = vadd.f32 %v2406_v32, %v2405_v28  ;;  %v2428_v34 = vrot.slane %v2427_v36, 1 }
 0x190   : > { %2408 = vst [vmem:[%s315_s29] sm:$0x1] %v2407_v30  ;;  %v2429_v38 = vadd.f32 %v2428_v34, %v2427_v36 }
 0x192   : > { %2430 = vst [vmem:[%s321_s7] sm:$0x1] %v2429_v38 }
 0x193 PF: > { %s17_s23 = sadd.s32 1, %s3734_s23   ;;  %s4138_s21 = smov %s3730_s22 }
 0x194   : > { %p14_p5 = scmp.ge.s32.totalorder %s17_s23, 4   ;;  %s4139_s22 = smov %s4141_s24 }
 0x196   :  { %16 = sbr.rel (!%p14_p5) target bundleno = 2 (0x2), region = 124 }

// kernel: basic_block_forward.3
= control target key start
LH: loop header
LB: loop body
LE: loop exit
PB: predicated region body
PF: predicated region fallthrough
CT: control target
= control target key end

     0   :  { %s4483_s27 = smov 0   ;;  %s4485_s28 = smov 0   ;;  %s4872_s0 = inlined_call_operand.vmem [shape: f32[2,16,16,128], index: 0, kind: input, shape index: {}]   ;;  %s4873_s1 = inlined_call_operand.vmem [shape: bf16[9,128,128], index: 1, kind: input, shape index: {}]   ;;  %s4874_s2 = inlined_call_operand.vmem [shape: bf16[128,128], index: 2, kind: input, shape index: {}]   ;;  %s4875_s3 = inlined_call_operand.vmem [shape: bf16[2,8,8,128], index: 3, kind: output, shape index: {0}]   ;;  %s4876_s4 = inlined_call_operand.vmem [shape: f32[2,1,1,128], index: 4, kind: output, shape index: {1}]   ;;  %s4877_s5 = inlined_call_operand.vmem [shape: f32[2,1,1,128], index: 5, kind: output, shape index: {2}]   ;;  %s4878_s6 = inlined_call_operand.vmem [shape: bf16[2,8,8,128], index: 6, kind: output, shape index: {3}]   ;;  %s4879_s7 = inlined_call_operand.vmem [shape: f32[2,1,1,128], index: 7, kind: output, shape index: {4}]   ;;  %s4880_s8 = inlined_call_operand.vmem [shape: f32[2,1,1,128], index: 8, kind: output, shape index: {5}]  }
   0x1   :  { %s4487_s29 = smov 0  }
   0x2 LB: > { %s31_s30 = sadd.s32 1, %s4431_s28  ;;  %p3251_p0 = scmp.ge.s32.totalorder %s4435_s29, 1  ;;  %s4435_s29 = sphi %s4487_s29, %s19_s29   ;;  %s4431_s28 = sphi %s4485_s28, %s4894_s28   ;;  %s4427_s27 = sphi %s4483_s27, %s4893_s27  }
   0x3   : > { %p33_p1 = scmp.ge.s32.totalorder %s31_s30, 2  ;;  %p315_p2 = scmp.lt.s32.totalorder %s4435_s29, 3 }
   0x5   : > { %s4896_s30 = smov (%p33_p1, %s31_s30), 0  ;;  %p316_p3 = pnand %p3251_p0, %p315_p2 }
   0x7   : > { %319 = sbr.rel (%p316_p3) target bundleno = 405 (0x195), region = 32 }
   0xc   : > { %v4293_v0 = vld [vmem:[%s4873_s1 + $0x78] sm:$0xff]   ;;  %v4295_v2 = vld [vmem:[%s4873_s1 + $0x70] sm:$0xff]   ;;  %p392_p4 = scmp.lt.s32.totalorder %s4427_s27, 1  ;;  %v4437_v3 = vmov 0.0   ;;  %v4297_v5 = vld [vmem:[%s4873_s1 + $0x68] sm:$0xff]  }
   0xd   : > { %v4294_v1 = vld [vmem:[%s4873_s1 + $0x38] sm:$0xff]   ;;  %4028 = vmatprep.subr.bf16.mxu0 %v4293_v0  ;;  %483 = vst [vmem:[#allocation2 + $0x8] sm:$0xff] %v4437_v3  ;;  %484 = vst [vmem:[#allocation2 + $0x10] sm:$0xff] %v4437_v3  ;;  %v4296_v4 = vld [vmem:[%s4873_s1 + $0x30] sm:$0xff]  }
   0xe   : > { %482 = vst [vmem:[#allocation2] sm:$0xff] %v4437_v3  ;;  %492 = vst [vmem:[#allocation2 + $0x27] sm:$0x1] %v4437_v3  ;;  %4052 = vmatprep.subr.bf16.mxu1 %v4294_v1  ;;  %4029 = vmatpush3.bf16.msra.mxu0 %v4293_v0  ;;  %v4298_v6 = vld [vmem:[%s4873_s1 + $0x28] sm:$0xff]   ;;  %s4898_s27 = smov (!%p392_p4, %s4427_s27), 1  ;;  %v4299_v7 = vld [vmem:[%s4873_s1 + $0x60] sm:$0xff]  }
   0xf   : > { %493 = vst [vmem:[#allocation2 + $0x47] sm:$0x1] %v4437_v3  ;;  %494 = vst [vmem:[#allocation2 + $0x67] sm:$0x1] %v4437_v3  ;;  %4053 = vmatpush3.bf16.msra.mxu1 %v4294_v1  ;;  %4030 = vmatprep.subr.bf16.mxu0 %v4295_v2  ;;  %v4300_v8 = vld [vmem:[%s4873_s1 + $0x20] sm:$0xff]   ;;  %s3580_s25 = sshll.u32 %s4898_s27, 8  ;;  %s418_s10 = scalar_lea.vmem %s4876_s4, %s4898_s27 }
  0x10   : > { %495 = vst [vmem:[#allocation2 + $0x87] sm:$0x1] %v4437_v3  ;;  %496 = vst [vmem:[#allocation2 + $0xa7] sm:$0x1] %v4437_v3  ;;  %4054 = vmatprep.subr.bf16.mxu1 %v4296_v4  ;;  %v4301_v9 = vld [vmem:[%s4873_s1 + $0x58] sm:$0xff]   ;;  %s4543_s14 = scalar_lea.vmem %s4872_s0, %s3580_s25  ;;  %v4303_v11 = vld [vmem:[%s4873_s1 + $0x50] sm:$0xff]   ;;  %s438_s25 = scalar_lea.vmem %s4879_s7, %s4898_s27 }
  0x11   : > { %497 = vst [vmem:[#allocation2 + $0xc7] sm:$0x1] %v4437_v3  ;;  %498 = vst [vmem:[#allocation2 + $0xe7] sm:$0x1] %v4437_v3  ;;  %v4302_v10 = vld [vmem:[%s4873_s1 + $0x18] sm:$0xff]   ;;  %v452_v12 = vld [vmem:[%s4543_s14 + $0x10] sm:$0xff]  ;;  %s444_s13 = scalar_lea.vmem %s4880_s8, %s4898_s27 }
  0x12   : > { %499 = vst [vmem:[#allocation2 + $0x107] sm:$0x1] %v4437_v3  ;;  %500 = vst [vmem:[#allocation2 + $0x127] sm:$0x1] %v4437_v3  ;;  %4031 = vmatpush3.bf16.msra.mxu0 %v4295_v2  ;;  %v453_v13 = vld [vmem:[%s4543_s14 + $0x18] sm:$0xff]  ;;  %v456_v14 = vld [vmem:[%s4543_s14 + $0x30] sm:$0xff] }
  0x13   : > { %501 = vst [vmem:[#allocation2 + $0x147] sm:$0x1] %v4437_v3  ;;  %502 = vst [vmem:[#allocation2 + $0x167] sm:$0x1] %v4437_v3  ;;  %4055 = vmatpush3.bf16.msra.mxu1 %v4296_v4  ;;  %4032 = vmatprep.subr.bf16.mxu0 %v4297_v5  ;;  %v4304_v15 = vld [vmem:[%s4873_s1 + $0x10] sm:$0xff]   ;;  %v457_v16 = vld [vmem:[%s4543_s14 + $0x38] sm:$0xff] }
  0x14   : > { %503 = vst [vmem:[#allocation2 + $0x187] sm:$0x1] %v4437_v3  ;;  %504 = vst [vmem:[#allocation2 + $0x1a7] sm:$0x1] %v4437_v3  ;;  %4056 = vmatprep.subr.bf16.mxu1 %v4298_v6  ;;  %v460_v17 = vld [vmem:[%s4543_s14 + $0x50] sm:$0xff]  ;;  %v461_v18 = vld [vmem:[%s4543_s14 + $0x58] sm:$0xff] }
  0x15   : > { %505 = vst [vmem:[#allocation2 + $0x1c7] sm:$0x1] %v4437_v3  ;;  %506 = vst [vmem:[#allocation2 + $0x1e7] sm:$0x1] %v4437_v3  ;;  %v4305_v19 = vld [vmem:[%s4873_s1 + $0x48] sm:$0xff]   ;;  %v4307_v23 = vld [vmem:[%s4873_s1 + $0x40] sm:$0xff]  }
  0x16   : > { %507 = vst [vmem:[#allocation2 + $0x207] sm:$0x1] %v4437_v3  ;;  %491 = vst [vmem:[#allocation2 + $0x7] sm:$0x1] %v4437_v3  ;;  %4033 = vmatpush3.bf16.msra.mxu0 %v4297_v5  ;;  %v4306_v20 = vld [vmem:[%s4873_s1 + $0x8] sm:$0xff]   ;;  %v4308_v26 = vld [vmem:[%s4873_s1] sm:$0xff]  }
  0x17   : > { %4057 = vmatpush3.bf16.msra.mxu1 %v4298_v6  ;;  %4034 = vmatprep.subr.bf16.mxu0 %v4299_v7  ;;  %530 = vst [vmem:[#allocation2 + $0x48] sm:$0xff] %v452_v12  ;;  %531 = vst [vmem:[#allocation2 + $0x50] sm:$0xff] %v453_v13  ;;  %v763_v21 = vld [vmem:[#allocation2 + $0x8] ss:$2 sm:$0xff]  ;;  %v4313_v37 = vld [vmem:[%s4873_s1 + $0xb8] sm:$0xff]   ;;  %s3581_s17 = sshll.u32 %s4898_s27, 5 }
  0x18   : > { %4058 = vmatprep.subr.bf16.mxu1 %v4300_v8  ;;  %534 = vst [vmem:[#allocation2 + $0x88] sm:$0xff] %v456_v14  ;;  %535 = vst [vmem:[#allocation2 + $0x90] sm:$0xff] %v457_v16  ;;  %v4314_v38 = vld [vmem:[%s4873_s1 + $0xf8] sm:$0xff]   ;;  %v464_v39 = vld [vmem:[%s4543_s14 + $0x70] sm:$0xff]  ;;  %s4830_s20 = scalar_lea.vmem %s4875_s3, %s3581_s17 }
  0x19   : > { %538 = vst [vmem:[#allocation2 + $0xc8] sm:$0xff] %v460_v17  ;;  %539 = vst [vmem:[#allocation2 + $0xd0] sm:$0xff] %v461_v18  ;;  %v465_v40 = vld [vmem:[%s4543_s14 + $0x78] sm:$0xff]  ;;  %v468_v41 = vld [vmem:[%s4543_s14 + $0x90] sm:$0xff] }
  0x1a   : > { %4035 = vmatpush3.bf16.msra.mxu0 %v4299_v7  ;;  %v469_v42 = vld [vmem:[%s4543_s14 + $0x98] sm:$0xff]  ;;  %542 = vst [vmem:[#allocation2 + $0x108] sm:$0xff] %v464_v39  ;;  %543 = vst [vmem:[#allocation2 + $0x110] sm:$0xff] %v465_v40  ;;  %v472_v43 = vld [vmem:[%s4543_s14 + $0xb0] sm:$0xff] }
  0x1b   : > { %4059 = vmatpush3.bf16.msra.mxu1 %v4300_v8  ;;  %4036 = vmatprep.subr.bf16.mxu0 %v4301_v9  ;;  %546 = vst [vmem:[#allocation2 + $0x148] sm:$0xff] %v468_v41  ;;  %547 = vst [vmem:[#allocation2 + $0x150] sm:$0xff] %v469_v42  ;;  %v473_v44 = vld [vmem:[%s4543_s14 + $0xb8] sm:$0xff]  ;;  %v476_v45 = vld [vmem:[%s4543_s14 + $0xd0] sm:$0xff] }
  0x1c   : > { %4060 = vmatprep.subr.bf16.mxu1 %v4302_v10  ;;  %v477_v46 = vld [vmem:[%s4543_s14 + $0xd8] sm:$0xff]  ;;  %550 = vst [vmem:[#allocation2 + $0x188] sm:$0xff] %v472_v43  ;;  %551 = vst [vmem:[#allocation2 + $0x190] sm:$0xff] %v473_v44  ;;  %v4315_v48 = vld [vmem:[%s4873_s1 + $0xb0] sm:$0xff]  }
  0x1d   : > { %v561_v22 = vld [vmem:[#allocation2 + $0x7] ss:$2 sm:$0xff]  ;;  %554 = vst [vmem:[#allocation2 + $0x1c8] sm:$0xff] %v476_v45  ;;  %555 = vst [vmem:[#allocation2 + $0x1d0] sm:$0xff] %v477_v46  ;;  %v4322_v13 = vld [vmem:[%s4873_s1 + $0xd8] sm:$0xff]  }
  0x1e   : > { %4037 = vmatpush3.bf16.msra.mxu0 %v4301_v9  ;;  %v767_v24 = vld [vmem:[#allocation2 + $0x48] ss:$2 sm:$0xff]  ;;  %v565_v25 = vld [vmem:[#allocation2 + $0x47] ss:$2 sm:$0xff]  ;;  %v4321_v9 = vld [vmem:[%s4873_s1 + $0x98] sm:$0xff]  }
  0x1f   : > { %4061 = vmatpush3.bf16.msra.mxu1 %v4302_v10  ;;  %4038 = vmatprep.subr.bf16.mxu0 %v4303_v11  ;;  %v771_v27 = vld [vmem:[#allocation2 + $0x88] ss:$2 sm:$0xff]  ;;  %v3718_v28 = vpack.c.bf16 %v767_v24, %v763_v21  ;;  %v569_v29 = vld [vmem:[#allocation2 + $0x87] ss:$2 sm:$0xff]  ;;  %v3658_v30 = vpack.c.bf16 %v565_v25, %v561_v22  ;;  %v4337_v46 = vld [vmem:[%s4873_s1 + $0x138] sm:$0xff]  }
  0x20   : > { %4062 = vmatprep.subr.bf16.mxu1 %v4304_v15  ;;  %v3758_v31 = vpack.c.bf16 %v771_v27, %v767_v24  ;;  %v3698_v32 = vpack.c.bf16 %v569_v29, %v565_v25  ;;  %v4569_v33 = vld [vmem:[#allocation2 + $0xc8] ss:$2 sm:$0xff]  ;;  %v4571_v34 = vld [vmem:[#allocation2 + $0xc7] ss:$2 sm:$0xff] }
  0x21   : > { %3719 = vst [vmem:[#allocation3 + $0x20] sm:$0xff] %v3718_v28   ;;  %3659 = vst [vmem:[#allocation3] sm:$0xff] %v3658_v30   ;;  %v3723_v35 = vpack.c.bf16 %v4569_v33, %v771_v27  ;;  %v3663_v36 = vpack.c.bf16 %v4571_v34, %v569_v29  ;;  %v4316_v50 = vld [vmem:[%s4873_s1 + $0xf0] sm:$0xff]   ;;  %v4317_v53 = vld [vmem:[%s4873_s1 + $0xa8] sm:$0xff]  }
  0x22   : > { %4039 = vmatpush3.bf16.msra.mxu0 %v4303_v11  ;;  %3759 = vst [vmem:[#allocation3 + $0xe0] sm:$0xff] %v3758_v31   ;;  %3699 = vst [vmem:[#allocation3 + $0xc0] sm:$0xff] %v3698_v32   ;;  %v779_v54 = vld [vmem:[#allocation2 + $0x108] ss:$2 sm:$0xff]  ;;  %v577_v56 = vld [vmem:[#allocation2 + $0x107] ss:$2 sm:$0xff] }
  0x23   : > { %4063 = vmatpush3.bf16.msra.mxu1 %v4304_v15  ;;  %4040 = vmatprep.subr.bf16.mxu0 %v4305_v19  ;;  %3884 = vst [vmem:[#allocation3 + $0x28] sm:$0xff] %v3723_v35   ;;  %3875 = vst [vmem:[#allocation3 + $0x8] sm:$0xff] %v3663_v36   ;;  %v783_v55 = vld [vmem:[#allocation2 + $0x148] ss:$2 sm:$0xff]  ;;  %v3763_v58 = vpack.c.bf16 %v779_v54, %v4569_v33  ;;  %v581_v59 = vld [vmem:[#allocation2 + $0x147] ss:$2 sm:$0xff]  ;;  %v3703_v60 = vpack.c.bf16 %v577_v56, %v4571_v34 }
  0x24   : > { %4064 = vmatprep.subr.bf16.mxu1 %v4306_v20  ;;  %v3728_v57 = vpack.c.bf16 %v783_v55, %v779_v54  ;;  %v787_v61 = vld [vmem:[#allocation2 + $0x188] ss:$2 sm:$0xff]  ;;  %v585_v62 = vld [vmem:[#allocation2 + $0x187] ss:$2 sm:$0xff]  ;;  %v3668_v0 = vpack.c.bf16 %v581_v59, %v577_v56 }
  0x25   : > { %v4318_v63 = vld [vmem:[%s4873_s1 + $0xe8] sm:$0xff]   ;;  %v3708_v3 = vpack.c.bf16 %v585_v62, %v581_v59  ;;  %v3768_v4 = vpack.c.bf16 %v787_v61, %v783_v55  ;;  %3890 = vst [vmem:[#allocation3 + $0xe8] sm:$0xff] %v3763_v58   ;;  %3881 = vst [vmem:[#allocation3 + $0xc8] sm:$0xff] %v3703_v60   ;;  %v4319_v7 = vld [vmem:[%s4873_s1 + $0xa0] sm:$0xff]  }
  0x26   : > { %4041 = vmatpush3.bf16.msra.mxu0 %v4305_v19  ;;  %v4603_v1 = vld [vmem:[#allocation2 + $0x1c8] ss:$2 sm:$0xff]  ;;  %v4605_v2 = vld [vmem:[#allocation2 + $0x1c7] ss:$2 sm:$0xff]  ;;  %3885 = vst [vmem:[#allocation3 + $0x30] sm:$0xff] %v3728_v57   ;;  %3876 = vst [vmem:[#allocation3 + $0x10] sm:$0xff] %v3668_v0  }
  0x27   : > { %4065 = vmatpush3.bf16.msra.mxu1 %v4306_v20  ;;  %4042 = vmatprep.subr.bf16.mxu0 %v4307_v23  ;;  %v3733_v5 = vpack.c.bf16 %v4603_v1, %v787_v61  ;;  %v3673_v6 = vpack.c.bf16 %v4605_v2, %v585_v62  ;;  %3882 = vst [vmem:[#allocation3 + $0xd0] sm:$0xff] %v3708_v3   ;;  %3891 = vst [vmem:[#allocation3 + $0xf0] sm:$0xff] %v3768_v4   ;;  %v4320_v8 = vld [vmem:[%s4873_s1 + $0xe0] sm:$0xff]   ;;  %v964_v10 = vld [vmem:[#allocation2 + $0x9] ss:$2 sm:$0xff] }
  0x28   : > { %4066 = vmatprep.subr.bf16.mxu1 %v4308_v26  ;;  %v4309_v47 = vld [vmem:[#allocation3 + $0x20] sm:$0xff]   ;;  %v968_v11 = vld [vmem:[#allocation2 + $0x49] ss:$2 sm:$0xff] }
  0x29   : > { %v4310_v49 = vld [vmem:[#allocation3] sm:$0xff]   ;;  %4044 = vmatprep.mubr.bf16.mxu0 %v4309_v47  ;;  %3886 = vst [vmem:[#allocation3 + $0x38] sm:$0xff] %v3733_v5   ;;  %3877 = vst [vmem:[#allocation3 + $0x18] sm:$0xff] %v3673_v6   ;;  %v3778_v14 = vpack.c.bf16 %v968_v11, %v964_v10  ;;  %v451_v15 = vld [vmem:[%s4543_s14 + $0x8] sm:$0xff] }
  0x2a   : > { %4043 = vmatpush3.bf16.msra.mxu0 %v4307_v23  ;;  %v4311_v51 = vld [vmem:[#allocation3 + $0x28] sm:$0xff]   ;;  %4068 = vmatprep.mubr.bf16.mxu1 %v4310_v49  ;;  %v450_v12 = vld [vmem:[%s4543_s14] sm:$0xff]  ;;  %529 = vst [vmem:[#allocation2 + $0x30] sm:$0xff] %v451_v15  ;;  %v4327_v25 = vld [vmem:[%s4873_s1 + $0x90] sm:$0xff]  }
  0x2b   : > { %4067 = vmatpush3.bf16.msra.mxu1 %v4308_v26  ;;  %4076 = vmatprep.subr.bf16.mxu0 %v4313_v37  ;;  %v4312_v52 = vld [vmem:[#allocation3 + $0x8] sm:$0xff]   ;;  %v454_v16 = vld [vmem:[%s4543_s14 + $0x20] sm:$0xff]  ;;  %528 = vst [vmem:[#allocation2 + $0x28] sm:$0xff] %v450_v12  ;;  %3779 = vst [vmem:[#allocation3 + $0x40] sm:$0xff] %v3778_v14  }
  0x2c   : > { %4100 = vmatprep.subr.bf16.mxu1 %v4314_v38  ;;  %v455_v17 = vld [vmem:[%s4543_s14 + $0x28] sm:$0xff]  ;;  %532 = vst [vmem:[#allocation2 + $0x68] sm:$0xff] %v454_v16  ;;  %v458_v20 = vld [vmem:[%s4543_s14 + $0x40] sm:$0xff]  ;;  %v4328_v27 = vld [vmem:[%s4873_s1 + $0xd0] sm:$0xff]  }
  0x2d   : > { %4045 = vmatmul.mubr.bf16.vlgmr.msra.gmra.mxu0 %v4311_v51  ;;  %533 = vst [vmem:[#allocation2 + $0x70] sm:$0xff] %v455_v17  ;;  %v972_v18 = vld [vmem:[#allocation2 + $0x89] ss:$2 sm:$0xff]  ;;  %536 = vst [vmem:[#allocation2 + $0xa8] sm:$0xff] %v458_v20  ;;  %v462_v30 = vld [vmem:[%s4543_s14 + $0x60] sm:$0xff] }
  0x2e   : > { %4069 = vmatmul.mubr.bf16.vlgmr.msra.gmra.mxu1 %v4312_v52  ;;  %4077 = vmatpush3.bf16.msra.mxu0 %v4313_v37  ;;  %v976_v19 = vld [vmem:[#allocation2 + $0xc9] ss:$2 sm:$0xff]  ;;  %v3818_v23 = vpack.c.bf16 %v972_v18, %v968_v11  ;;  %540 = vst [vmem:[#allocation2 + $0xe8] sm:$0xff] %v462_v30  ;;  %v4332_v39 = vld [vmem:[%s4873_s1 + $0xc0] sm:$0xff]   ;;  %v4349_v16 = vld [vmem:[%s4873_s1 + $0x118] sm:$0xff]  }
  0x2f   : > { %4101 = vmatpush3.bf16.msra.mxu1 %v4314_v38  ;;  %4078 = vmatprep.subr.bf16.mxu0 %v4315_v48  ;;  %v4323_v21 = vld [vmem:[#allocation3 + $0x30] sm:$0xff]   ;;  %v3783_v22 = vpack.c.bf16 %v976_v19, %v972_v18  ;;  %v459_v29 = vld [vmem:[%s4543_s14 + $0x48] sm:$0xff]  ;;  %v4331_v38 = vld [vmem:[%s4873_s1 + $0x80] sm:$0xff]  }
  0x30   : > { %4102 = vmatprep.subr.bf16.mxu1 %v4316_v50  ;;  %v4324_v24 = vld [vmem:[#allocation3 + $0x10] sm:$0xff]   ;;  %4048 = vmatprep.mubr.bf16.mxu0 %v4323_v21  ;;  %v4325_v26 = vld [vmem:[#allocation3 + $0x38] sm:$0xff]   ;;  %3819 = vst [vmem:[#allocation3 + $0x100] sm:$0xff] %v3818_v23   ;;  %v463_v31 = vld [vmem:[%s4543_s14 + $0x68] sm:$0xff] }
  0x31   : > { %3893 = vst [vmem:[#allocation3 + $0x48] sm:$0xff] %v3783_v22   ;;  %v4326_v28 = vld [vmem:[#allocation3 + $0x18] sm:$0xff]   ;;  %4072 = vmatprep.mubr.bf16.mxu1 %v4324_v24  ;;  %v4329_v32 = vld [vmem:[%s4873_s1 + $0x88] sm:$0xff]   ;;  %537 = vst [vmem:[#allocation2 + $0xb0] sm:$0xff] %v459_v29 }
  0x32   : > { %4079 = vmatpush3.bf16.msra.mxu0 %v4315_v48  ;;  %541 = vst [vmem:[#allocation2 + $0xf0] sm:$0xff] %v463_v31  ;;  %v563_v33 = vld [vmem:[#allocation2 + $0x27] ss:$2 sm:$0xff]  ;;  %v4350_v17 = vld [vmem:[%s4873_s1 + $0x158] sm:$0xff]  }
  0x33   : > { %4103 = vmatpush3.bf16.msra.mxu1 %v4316_v50  ;;  %4080 = vmatprep.subr.bf16.mxu0 %v4317_v53  ;;  %v4333_v35 = vld [vmem:[#allocation3 + $0x40] sm:$0xff]   ;;  %v4330_v37 = vld [vmem:[%s4873_s1 + $0xc8] sm:$0xff]   ;;  %v4338_v50 = vld [vmem:[%s4873_s1 + $0x178] sm:$0xff]  }
  0x34   : > { %4104 = vmatprep.subr.bf16.mxu1 %v4318_v63  ;;  %v567_v34 = vld [vmem:[#allocation2 + $0x67] ss:$2 sm:$0xff]  ;;  %v769_v20 = vld [vmem:[#allocation2 + $0x68] ss:$2 sm:$0xff] }
  0x35   : > { %4049 = vmatmul.mubr.bf16.gmra.mxu0 %v4325_v26  ;;  %v3678_v36 = vpack.c.bf16 %v567_v34, %v563_v33  ;;  %v980_v40 = vld [vmem:[#allocation2 + $0x109] ss:$2 sm:$0xff]  ;;  %v466_v54 = vld [vmem:[%s4543_s14 + $0x80] sm:$0xff] }
  0x36   : > { %4081 = vmatpush3.bf16.msra.mxu0 %v4317_v53  ;;  %4073 = vmatmul.mubr.bf16.gmra.mxu1 %v4326_v28  ;;  %v984_v43 = vld [vmem:[#allocation2 + $0x149] ss:$2 sm:$0xff]  ;;  %v3823_v44 = vpack.c.bf16 %v980_v40, %v976_v19  ;;  %544 = vst [vmem:[#allocation2 + $0x128] sm:$0xff] %v466_v54  ;;  %v470_v58 = vld [vmem:[%s4543_s14 + $0xa0] sm:$0xff]  ;;  %v765_v19 = vld [vmem:[#allocation2 + $0x28] ss:$2 sm:$0xff] }
  0x37   : > { %4105 = vmatpush3.bf16.msra.mxu1 %v4318_v63  ;;  %4082 = vmatprep.subr.bf16.mxu0 %v4319_v7  ;;  %3679 = vst [vmem:[#allocation3 + $0x60] sm:$0xff] %v3678_v36   ;;  %v3788_v47 = vpack.c.bf16 %v984_v43, %v980_v40  ;;  %v988_v48 = vld [vmem:[#allocation2 + $0x189] ss:$2 sm:$0xff]  ;;  %548 = vst [vmem:[#allocation2 + $0x168] sm:$0xff] %v470_v58  ;;  %v474_v60 = vld [vmem:[%s4543_s14 + $0xc0] sm:$0xff]  ;;  %v3738_v24 = vpack.c.bf16 %v769_v20, %v765_v19 }
  0x38   : > { %4106 = vmatprep.subr.bf16.mxu1 %v4320_v8  ;;  %4092 = vmatprep.mubr.bf16.mxu0 %v4333_v35  ;;  %v571_v41 = vld [vmem:[#allocation2 + $0xa7] ss:$2 sm:$0xff]  ;;  %3899 = vst [vmem:[#allocation3 + $0x108] sm:$0xff] %v3823_v44   ;;  %v3828_v52 = vpack.c.bf16 %v988_v48, %v984_v43  ;;  %552 = vst [vmem:[#allocation2 + $0x1a8] sm:$0xff] %v474_v60  ;;  %v4386_v19 = vld [vmem:[%s4874_s2 + $0x38] sm:$0xff]  }
  0x39   : > { %v575_v42 = vld [vmem:[#allocation2 + $0xe7] ss:$2 sm:$0xff]  ;;  %3894 = vst [vmem:[#allocation3 + $0x50] sm:$0xff] %v3788_v47   ;;  %v777_v28 = vld [vmem:[#allocation2 + $0xe8] ss:$2 sm:$0xff]  ;;  %3739 = vst [vmem:[#allocation3 + $0x80] sm:$0xff] %v3738_v24  }
  0x3a   : > { %4083 = vmatpush3.bf16.msra.mxu0 %v4319_v7  ;;  %v3683_v45 = vpack.c.bf16 %v575_v42, %v571_v41  ;;  %v4650_v49 = vld [vmem:[#allocation2 + $0x1c9] ss:$2 sm:$0xff]  ;;  %3900 = vst [vmem:[#allocation3 + $0x110] sm:$0xff] %v3828_v52   ;;  %v478_v62 = vld [vmem:[%s4543_s14 + $0xe0] sm:$0xff]  ;;  %v4362_v47 = vld [vmem:[%s4873_s1 + $0x1f8] sm:$0xff]  }
  0x3b   : > { %4107 = vmatpush3.bf16.msra.mxu1 %v4320_v8  ;;  %4084 = vmatprep.subr.bf16.mxu0 %v4321_v9  ;;  %v3793_v51 = vpack.c.bf16 %v4650_v49, %v988_v48  ;;  %v4335_v53 = vld [vmem:[#allocation3 + $0x48] sm:$0xff]   ;;  %v4339_v56 = vld [vmem:[%s4873_s1 + $0x130] sm:$0xff]   ;;  %556 = vst [vmem:[#allocation2 + $0x1e8] sm:$0xff] %v478_v62  ;;  %v4348_v15 = vld [vmem:[%s4873_s1 + $0x160] sm:$0xff]  }
  0x3c   : > { %4108 = vmatprep.subr.bf16.mxu1 %v4322_v13  ;;  %3878 = vst [vmem:[#allocation3 + $0x68] sm:$0xff] %v3683_v45   ;;  %v467_v57 = vld [vmem:[%s4543_s14 + $0x88] sm:$0xff]  ;;  %v4340_v0 = vld [vmem:[%s4873_s1 + $0x170] sm:$0xff]   ;;  %v4355_v36 = vld [vmem:[%s4873_s1 + $0x100] sm:$0xff]  }
  0x3d   : > { %3895 = vst [vmem:[#allocation3 + $0x58] sm:$0xff] %v3793_v51   ;;  %v471_v59 = vld [vmem:[%s4543_s14 + $0xa8] sm:$0xff]  ;;  %545 = vst [vmem:[#allocation2 + $0x130] sm:$0xff] %v467_v57  ;;  %v4351_v18 = vld [vmem:[%s4873_s1 + $0x110] sm:$0xff]  }
  0x3e   : > { %4085 = vmatpush3.bf16.msra.mxu0 %v4321_v9  ;;  %v4334_v55 = vld [vmem:[#allocation3 + $0x60] sm:$0xff]   ;;  %549 = vst [vmem:[#allocation2 + $0x170] sm:$0xff] %v471_v59  ;;  %v475_v61 = vld [vmem:[%s4543_s14 + $0xc8] sm:$0xff]  ;;  %v4352_v26 = vld [vmem:[%s4873_s1 + $0x150] sm:$0xff]  }
  0x3f   : > { %4109 = vmatpush3.bf16.msra.mxu1 %v4322_v13  ;;  %4086 = vmatprep.subr.bf16.mxu0 %v4327_v25  ;;  %v479_v63 = vld [vmem:[%s4543_s14 + $0xe8] sm:$0xff]  ;;  %553 = vst [vmem:[#allocation2 + $0x1b0] sm:$0xff] %v475_v61  ;;  %v4347_v13 = vld [vmem:[%s4873_s1 + $0x120] sm:$0xff]   ;;  %v4364_v59 = vld [vmem:[%s4873_s1 + $0x1f0] sm:$0xff]  }
  0x40   : > { %4110 = vmatprep.subr.bf16.mxu1 %v4328_v27  ;;  %4116 = vmatprep.mubr.bf16.mxu1 %v4334_v55  ;;  %557 = vst [vmem:[#allocation2 + $0x1f0] sm:$0xff] %v479_v63  ;;  %v4343_v3 = vld [vmem:[%s4873_s1 + $0x128] sm:$0xff]   ;;  %v4341_v5 = vld [vmem:[#allocation3 + $0x50] sm:$0xff]   ;;  %v4357_v42 = vld [vmem:[#allocation3 + $0x80] sm:$0xff]  }
  0x41   : > { %v4344_v6 = vld [vmem:[%s4873_s1 + $0x168] sm:$0xff]   ;;  %v4356_v45 = vld [vmem:[%s4873_s1 + $0x140] sm:$0xff]  }
  0x42   : > { %4087 = vmatpush3.bf16.msra.mxu0 %v4327_v25  ;;  %v966_v21 = vld [vmem:[#allocation2 + $0x29] ss:$2 sm:$0xff]  ;;  %v4371_v63 = vld [vmem:[%s4873_s1 + $0x1a0] sm:$0xff]  }
  0x43   : > { %4111 = vmatpush3.bf16.msra.mxu1 %v4328_v27  ;;  %4088 = vmatprep.subr.bf16.mxu0 %v4329_v32  ;;  %v4336_v4 = vld [vmem:[#allocation3 + $0x68] sm:$0xff]  }
  0x44   : > { %4112 = vmatprep.subr.bf16.mxu1 %v4330_v37  ;;  %v4342_v7 = vld [vmem:[#allocation3 + $0x58] sm:$0xff]   ;;  %v579_v8 = vld [vmem:[#allocation2 + $0x127] ss:$2 sm:$0xff]  ;;  %v773_v27 = vld [vmem:[#allocation2 + $0xa8] ss:$2 sm:$0xff] }
  0x45   : > { %v583_v9 = vld [vmem:[#allocation2 + $0x167] ss:$2 sm:$0xff]  ;;  %v3743_v31 = vpack.c.bf16 %v777_v28, %v773_v27 }
  0x46   : > { %4089 = vmatpush3.bf16.msra.mxu0 %v4329_v32  ;;  %v3688_v10 = vpack.c.bf16 %v583_v9, %v579_v8  ;;  %v587_v11 = vld [vmem:[#allocation2 + $0x1a7] ss:$2 sm:$0xff]  ;;  %v789_v40 = vld [vmem:[#allocation2 + $0x1a8] ss:$2 sm:$0xff] }
  0x47   : > { %4113 = vmatpush3.bf16.msra.mxu1 %v4330_v37  ;;  %4090 = vmatprep.subr.bf16.mxu0 %v4331_v38  ;;  %v591_v12 = vld [vmem:[#allocation2 + $0x1e7] ss:$2 sm:$0xff]  ;;  %3887 = vst [vmem:[#allocation3 + $0x88] sm:$0xff] %v3743_v31   ;;  %v781_v37 = vld [vmem:[#allocation2 + $0x128] ss:$2 sm:$0xff] }
  0x48   : > { %4114 = vmatprep.subr.bf16.mxu1 %v4332_v39  ;;  %3879 = vst [vmem:[#allocation3 + $0x70] sm:$0xff] %v3688_v10   ;;  %v3693_v14 = vpack.c.bf16 %v591_v12, %v587_v11  ;;  %v970_v22 = vld [vmem:[#allocation2 + $0x69] ss:$2 sm:$0xff]  ;;  %v793_v41 = vld [vmem:[#allocation2 + $0x1e8] ss:$2 sm:$0xff]  ;;  %v4382_v8 = vld [vmem:[#allocation3 + $0xe0] sm:$0xff]  }
  0x49   : > { %v3798_v25 = vpack.c.bf16 %v970_v22, %v966_v21  ;;  %v974_v29 = vld [vmem:[#allocation2 + $0xa9] ss:$2 sm:$0xff]  ;;  %v3753_v43 = vpack.c.bf16 %v793_v41, %v789_v40  ;;  %v4406_v31 = vld [vmem:[#allocation3 + $0x80] sm:$0xff]  }
  0x4a   : > { %4091 = vmatpush3.bf16.msra.mxu0 %v4331_v38  ;;  %3880 = vst [vmem:[#allocation3 + $0x78] sm:$0xff] %v3693_v14   ;;  %v978_v32 = vld [vmem:[#allocation2 + $0xe9] ss:$2 sm:$0xff]  ;;  %v785_v38 = vld [vmem:[#allocation2 + $0x168] ss:$2 sm:$0xff]  ;;  %v481_v14 = vld [vmem:[%s4543_s14 + $0xf8] sm:$0xff] }
  0x4b   : > { %4115 = vmatpush3.bf16.msra.mxu1 %v4332_v39  ;;  %4124 = vmatprep.subr.bf16.mxu0 %v4337_v46  ;;  %3799 = vst [vmem:[#allocation3 + $0xa0] sm:$0xff] %v3798_v25   ;;  %v4353_v33 = vld [vmem:[%s4873_s1 + $0x108] sm:$0xff]   ;;  %v3803_v34 = vpack.c.bf16 %v978_v32, %v974_v29  ;;  %v3748_v39 = vpack.c.bf16 %v785_v38, %v781_v37  ;;  %3889 = vst [vmem:[#allocation3 + $0x98] sm:$0xff] %v3753_v43   ;;  %v4375_v9 = vld [vmem:[%s4873_s1 + $0x190] sm:$0xff]  }
  0x4c   : > { %4148 = vmatprep.subr.bf16.mxu1 %v4338_v50  ;;  %v4354_v35 = vld [vmem:[%s4873_s1 + $0x148] sm:$0xff]   ;;  %v4376_v10 = vld [vmem:[%s4873_s1 + $0x1d0] sm:$0xff]   ;;  %559 = vst [vmem:[#allocation2 + $0x210] sm:$0xff] %v481_v14  ;;  %v4395_v29 = vld [vmem:[%s4873_s1 + $0x220] sm:$0xff]  }
  0x4d   : > { %4093 = vmatmul.mubr.bf16.vlgmr.msra.gmra.mxu0 %v4335_v53  ;;  %3896 = vst [vmem:[#allocation3 + $0xa8] sm:$0xff] %v3803_v34   ;;  %3888 = vst [vmem:[#allocation3 + $0x90] sm:$0xff] %v3748_v39   ;;  %v982_v51 = vld [vmem:[#allocation2 + $0x129] ss:$2 sm:$0xff]  ;;  %v4396_v34 = vld [vmem:[%s4874_s2 + $0x20] sm:$0xff]  }
  0x4e   : > { %4125 = vmatpush3.bf16.msra.mxu0 %v4337_v46  ;;  %4117 = vmatmul.mubr.bf16.vlgmr.msra.gmra.mxu1 %v4336_v4  ;;  %v4361_v46 = vld [vmem:[%s4873_s1 + $0x1b8] sm:$0xff]   ;;  %v4359_v48 = vld [vmem:[#allocation3 + $0x88] sm:$0xff]   ;;  %v4372_v4 = vld [vmem:[%s4873_s1 + $0x1e0] sm:$0xff]  }
  0x4f   : > { %4126 = vmatprep.subr.bf16.mxu0 %v4339_v56  ;;  %4149 = vmatpush3.bf16.msra.mxu1 %v4338_v50  ;;  %v4345_v23 = vld [vmem:[#allocation3 + $0x70] sm:$0xff]   ;;  %v4367_v60 = vld [vmem:[%s4873_s1 + $0x1a8] sm:$0xff]   ;;  %v4398_v38 = vld [vmem:[%s4874_s2 + $0x18] sm:$0xff]  }
  0x50   : > { %4096 = vmatprep.mubr.bf16.mxu0 %v4341_v5  ;;  %4150 = vmatprep.subr.bf16.mxu1 %v4340_v0  ;;  %v4363_v50 = vld [vmem:[%s4873_s1 + $0x1b0] sm:$0xff]   ;;  %v4368_v62 = vld [vmem:[%s4873_s1 + $0x1e8] sm:$0xff]   ;;  %v4373_v5 = vld [vmem:[%s4873_s1 + $0x198] sm:$0xff]  }
  0x51   : > { %4120 = vmatprep.mubr.bf16.mxu1 %v4345_v23  ;;  %v4346_v30 = vld [vmem:[#allocation3 + $0x78] sm:$0xff]   ;;  %v986_v52 = vld [vmem:[#allocation2 + $0x169] ss:$2 sm:$0xff]  ;;  %v4404_v43 = vld [vmem:[%s4874_s2] sm:$0xff]  }
  0x52   : > { %4127 = vmatpush3.bf16.msra.mxu0 %v4339_v56  ;;  %v4358_v44 = vld [vmem:[#allocation3 + $0xa0] sm:$0xff]   ;;  %v990_v53 = vld [vmem:[#allocation2 + $0x1a9] ss:$2 sm:$0xff]  ;;  %v3808_v56 = vpack.c.bf16 %v986_v52, %v982_v51  ;;  %v4366_v61 = vld [vmem:[#allocation3 + $0x98] sm:$0xff]  }
  0x53   : > { %4128 = vmatprep.subr.bf16.mxu0 %v4343_v3  ;;  %4151 = vmatpush3.bf16.msra.mxu1 %v4340_v0  ;;  %v994_v54 = vld [vmem:[#allocation2 + $0x1e9] ss:$2 sm:$0xff] }
  0x54   : > { %4152 = vmatprep.subr.bf16.mxu1 %v4344_v6  ;;  %v4360_v55 = vld [vmem:[#allocation3 + $0xa8] sm:$0xff]   ;;  %v3813_v57 = vpack.c.bf16 %v994_v54, %v990_v53  ;;  %v4365_v58 = vld [vmem:[#allocation3 + $0x90] sm:$0xff]   ;;  %3897 = vst [vmem:[#allocation3 + $0xb0] sm:$0xff] %v3808_v56  }
  0x55   : > { %4097 = vmatmul.mubr.bf16.gmra.mxu0 %v4342_v7  ;;  %v4381_v7 = vld [vmem:[#allocation3 + $0xc0] sm:$0xff]   ;;  %v4377_v11 = vld [vmem:[%s4873_s1 + $0x188] sm:$0xff]   ;;  %v4389_v23 = vld [vmem:[#allocation3 + $0xd0] sm:$0xff]  }
  0x56   : > { %4129 = vmatpush3.bf16.msra.mxu0 %v4343_v3  ;;  %4121 = vmatmul.mubr.bf16.gmra.mxu1 %v4346_v30  ;;  %3898 = vst [vmem:[#allocation3 + $0xb8] sm:$0xff] %v3813_v57   ;;  %v4378_v12 = vld [vmem:[%s4873_s1 + $0x1c8] sm:$0xff]   ;;  %v4393_v27 = vld [vmem:[#allocation3 + $0xf0] sm:$0xff]   ;;  %v4405_v30 = vld [vmem:[#allocation3 + $0x100] sm:$0xff]  }
  0x57   : > { %4130 = vmatprep.subr.bf16.mxu0 %v4347_v13  ;;  %4153 = vmatpush3.bf16.msra.mxu1 %v4344_v6  ;;  %v4374_v6 = vld [vmem:[%s4873_s1 + $0x1d8] sm:$0xff]   ;;  %v4384_v20 = vld [vmem:[#allocation3 + $0xe8] sm:$0xff]   ;;  %v4388_v28 = vld [vmem:[%s4874_s2 + $0x30] sm:$0xff]  }
  0x58   : > { %4154 = vmatprep.subr.bf16.mxu1 %v4348_v15  ;;  %4140 = vmatprep.mubr.bf16.mxu0 %v4357_v42  ;;  %v4399_v39 = vld [vmem:[%s4873_s1 + $0x210] sm:$0xff]   ;;  %v4402_v41 = vld [vmem:[%s4874_s2 + $0x8] sm:$0xff]   ;;  %v4403_v42 = vld [vmem:[%s4873_s1 + $0x200] sm:$0xff]  }
  0x59   : > { %4164 = vmatprep.mubr.bf16.mxu1 %v4358_v44  ;;  %v4400_v40 = vld [vmem:[%s4874_s2 + $0x10] sm:$0xff]   ;;  %v4407_v44 = vld [vmem:[#allocation3 + $0x108] sm:$0xff]  }
  0x5a   : > { %4131 = vmatpush3.bf16.msra.mxu0 %v4347_v13  ;;  %v480_v13 = vld [vmem:[%s4543_s14 + $0xf0] sm:$0xff]  ;;  %s4835_s14 = scalar_lea.vmem %s4878_s6, %s3581_s17  ;;  %s424_s17 = scalar_lea.vmem %s4877_s5, %s4898_s27 }
  0x5b   : > { %4132 = vmatprep.subr.bf16.mxu0 %v4349_v16  ;;  %4155 = vmatpush3.bf16.msra.mxu1 %v4348_v15  ;;  %v4369_v0 = vld [vmem:[#allocation3 + $0xb0] sm:$0xff]   ;;  %558 = vst [vmem:[#allocation2 + $0x208] sm:$0xff] %v480_v13  ;;  %v4379_v15 = vld [vmem:[%s4873_s1 + $0x180] sm:$0xff]  }
  0x5c   : > { %4156 = vmatprep.subr.bf16.mxu1 %v4350_v17 }
  0x5d   : > { %v4370_v3 = vld [vmem:[#allocation3 + $0xb8] sm:$0xff]  }
  0x5e   : > { %4133 = vmatpush3.bf16.msra.mxu0 %v4349_v16  ;;  %v4380_v16 = vld [vmem:[%s4873_s1 + $0x1c0] sm:$0xff]  }
  0x5f   : > { %4134 = vmatprep.subr.bf16.mxu0 %v4351_v18  ;;  %4157 = vmatpush3.bf16.msra.mxu1 %v4350_v17  ;;  %v4383_v17 = vld [vmem:[#allocation3 + $0xc8] sm:$0xff]  }
  0x60   : > { %4158 = vmatprep.subr.bf16.mxu1 %v4352_v26 }
  0x62   : > { %4135 = vmatpush3.bf16.msra.mxu0 %v4351_v18  ;;  %v4385_v18 = vld [vmem:[%s4873_s1 + $0x238] sm:$0xff]   ;;  %v593_v21 = vld [vmem:[#allocation2 + $0x207] ss:$2 sm:$0xff]  ;;  %v795_v22 = vld [vmem:[#allocation2 + $0x208] ss:$2 sm:$0xff] }
  0x63   : > { %4136 = vmatprep.subr.bf16.mxu0 %v4353_v33  ;;  %4159 = vmatpush3.bf16.msra.mxu1 %v4352_v26  ;;  %v3713_v24 = vpack.c.bf16 %v593_v21, %v4605_v2  ;;  %v3773_v25 = vpack.c.bf16 %v795_v22, %v4603_v1  ;;  %v4387_v26 = vld [vmem:[%s4873_s1 + $0x230] sm:$0xff]   ;;  %v4391_v1 = vld [vmem:[%s4873_s1 + $0x228] sm:$0xff]  }
  0x64   : > { %4160 = vmatprep.subr.bf16.mxu1 %v4354_v35  ;;  %v4392_v2 = vld [vmem:[%s4874_s2 + $0x28] sm:$0xff]  }
  0x65   : > { %3883 = vst [vmem:[#allocation3 + $0xd8] sm:$0xff] %v3713_v24   ;;  %3892 = vst [vmem:[#allocation3 + $0xf8] sm:$0xff] %v3773_v25  }
  0x66   : > { %4137 = vmatpush3.bf16.msra.mxu0 %v4353_v33 }
  0x67   : > { %4138 = vmatprep.subr.bf16.mxu0 %v4355_v36  ;;  %4161 = vmatpush3.bf16.msra.mxu1 %v4354_v35  ;;  %v4397_v35 = vld [vmem:[%s4873_s1 + $0x218] sm:$0xff]  }
  0x68   : > { %4162 = vmatprep.subr.bf16.mxu1 %v4356_v45 }
  0x6a   : > { %4139 = vmatpush3.bf16.msra.mxu0 %v4355_v36  ;;  %v996_v36 = vld [vmem:[#allocation2 + $0x209] ss:$2 sm:$0xff] }
  0x6b   : > { %4172 = vmatprep.subr.bf16.mxu0 %v4361_v46  ;;  %4163 = vmatpush3.bf16.msra.mxu1 %v4356_v45  ;;  %v3833_v37 = vpack.c.bf16 %v996_v36, %v4650_v49  ;;  %v4401_v49 = vld [vmem:[%s4873_s1 + $0x208] sm:$0xff]   ;;  %v4409_v45 = vld [vmem:[#allocation3 + $0x110] sm:$0xff]  }
  0x6c   : > { %4196 = vmatprep.subr.bf16.mxu1 %v4362_v47  ;;  %v4390_v32 = vld [vmem:[#allocation3 + $0xd8] sm:$0xff]  }
  0x6d   : > { %4141 = vmatmul.mubr.bf16.vlgmr.msra.gmra.mxu0 %v4359_v48  ;;  %v4394_v33 = vld [vmem:[#allocation3 + $0xf8] sm:$0xff]   ;;  %3901 = vst [vmem:[#allocation3 + $0x118] sm:$0xff] %v3833_v37  }
  0x6e   : > { %4173 = vmatpush3.bf16.msra.mxu0 %v4361_v46  ;;  %4144 = vmatprep.mubr.bf16.mxu0 %v4365_v58  ;;  %v4408_v46 = vld [vmem:[#allocation3 + $0x88] sm:$0xff]  }
  0x6f   : > { %4174 = vmatprep.subr.bf16.mxu0 %v4363_v50  ;;  %4165 = vmatmul.mubr.bf16.vlgmr.msra.gmra.mxu1 %v4360_v55 }
  0x70   : > { %4197 = vmatpush3.bf16.msra.mxu1 %v4362_v47  ;;  %4168 = vmatprep.mubr.bf16.mxu1 %v4369_v0  ;;  %v4410_v47 = vld [vmem:[#allocation3 + $0x90] sm:$0xff]  }
  0x71   : > { %4198 = vmatprep.subr.bf16.mxu1 %v4364_v59 }
  0x72   : > { %4175 = vmatpush3.bf16.msra.mxu0 %v4363_v50  ;;  %v4412_v50 = vld [vmem:[#allocation3 + $0x98] sm:$0xff]  }
  0x73   : > { %4176 = vmatprep.subr.bf16.mxu0 %v4367_v60 }
  0x74   : > { %4199 = vmatpush3.bf16.msra.mxu1 %v4364_v59  ;;  %v4411_v48 = vld [vmem:[#allocation3 + $0x118] sm:$0xff]  }
  0x75   : > { %4145 = vmatmul.mubr.bf16.gmra.mxu0 %v4366_v61  ;;  %4200 = vmatprep.subr.bf16.mxu1 %v4368_v62 }
  0x76   : > { %4177 = vmatpush3.bf16.msra.mxu0 %v4367_v60  ;;  %4188 = vmatprep.mubr.bf16.mxu0 %v4381_v7 }
  0x77   : > { %4169 = vmatmul.mubr.bf16.gmra.mxu1 %v4370_v3  ;;  %4178 = vmatprep.subr.bf16.mxu0 %v4371_v63 }
  0x78   : > { %4201 = vmatpush3.bf16.msra.mxu1 %v4368_v62  ;;  %4212 = vmatprep.mubr.bf16.mxu1 %v4382_v8 }
  0x79   : > { %4202 = vmatprep.subr.bf16.mxu1 %v4372_v4 }
  0x7a   : > { %4179 = vmatpush3.bf16.msra.mxu0 %v4371_v63 }
  0x7b   : > { %4180 = vmatprep.subr.bf16.mxu0 %v4373_v5 }
  0x7c   : > { %4203 = vmatpush3.bf16.msra.mxu1 %v4372_v4 }
  0x7d   : > { %4204 = vmatprep.subr.bf16.mxu1 %v4374_v6 }
  0x7e   : > { %4181 = vmatpush3.bf16.msra.mxu0 %v4373_v5 }
  0x7f   : > { %4182 = vmatprep.subr.bf16.mxu0 %v4375_v9 }
  0x80   : > { %4205 = vmatpush3.bf16.msra.mxu1 %v4374_v6 }
  0x81   : > { %4206 = vmatprep.subr.bf16.mxu1 %v4376_v10 }
  0x82   : > { %4183 = vmatpush3.bf16.msra.mxu0 %v4375_v9 }
  0x83   : > { %4184 = vmatprep.subr.bf16.mxu0 %v4377_v11 }
  0x84   : > { %4207 = vmatpush3.bf16.msra.mxu1 %v4376_v10 }
  0x85   : > { %4208 = vmatprep.subr.bf16.mxu1 %v4378_v12 }
  0x86   : > { %4185 = vmatpush3.bf16.msra.mxu0 %v4377_v11 }
  0x87   : > { %4186 = vmatprep.subr.bf16.mxu0 %v4379_v15 }
  0x88   : > { %4209 = vmatpush3.bf16.msra.mxu1 %v4378_v12 }
  0x89   : > { %4210 = vmatprep.subr.bf16.mxu1 %v4380_v16 }
  0x8a   : > { %4187 = vmatpush3.bf16.msra.mxu0 %v4379_v15 }
  0x8b   : > { %4220 = vmatprep.subr.bf16.mxu0 %v4385_v18 }
  0x8c   : > { %4211 = vmatpush3.bf16.msra.mxu1 %v4380_v16 }
  0x8d   : > { %4189 = vmatmul.mubr.bf16.vlgmr.msra.gmra.mxu0 %v4383_v17  ;;  %4244 = vmatprep.subr.bf16.mxu1 %v4386_v19 }
  0x8e   : > { %4221 = vmatpush3.bf16.msra.mxu0 %v4385_v18  ;;  %4192 = vmatprep.mubr.bf16.mxu0 %v4389_v23 }
  0x8f   : > { %4213 = vmatmul.mubr.bf16.vlgmr.msra.gmra.mxu1 %v4384_v20  ;;  %4222 = vmatprep.subr.bf16.mxu0 %v4387_v26 }
  0x90   : > { %4245 = vmatpush3.bf16.msra.mxu1 %v4386_v19  ;;  %4216 = vmatprep.mubr.bf16.mxu1 %v4393_v27 }
  0x91   : > { %4246 = vmatprep.subr.bf16.mxu1 %v4388_v28 }
  0x92   : > { %4223 = vmatpush3.bf16.msra.mxu0 %v4387_v26 }
  0x93   : > { %4224 = vmatprep.subr.bf16.mxu0 %v4391_v1 }
  0x94   : > { %4247 = vmatpush3.bf16.msra.mxu1 %v4388_v28 }
  0x95   : > { %4193 = vmatmul.mubr.bf16.gmra.mxu0 %v4390_v32  ;;  %4248 = vmatprep.subr.bf16.mxu1 %v4392_v2 }
  0x96   : > { %4225 = vmatpush3.bf16.msra.mxu0 %v4391_v1  ;;  %4236 = vmatprep.mubr.bf16.mxu0 %v4405_v30 }
  0x97   : > { %4217 = vmatmul.mubr.bf16.gmra.mxu1 %v4394_v33  ;;  %4226 = vmatprep.subr.bf16.mxu0 %v4395_v29 }
  0x98   : > { %4249 = vmatpush3.bf16.msra.mxu1 %v4392_v2  ;;  %4260 = vmatprep.mubr.bf16.mxu1 %v4406_v31 }
  0x99   : > { %4250 = vmatprep.subr.bf16.mxu1 %v4396_v34 }
  0x9a   : > { %4227 = vmatpush3.bf16.msra.mxu0 %v4395_v29 }
  0x9b   : > { %4228 = vmatprep.subr.bf16.mxu0 %v4397_v35 }
  0x9c   : > { %4251 = vmatpush3.bf16.msra.mxu1 %v4396_v34 }
  0x9d   : > { %4252 = vmatprep.subr.bf16.mxu1 %v4398_v38 }
  0x9e   : > { %4229 = vmatpush3.bf16.msra.mxu0 %v4397_v35 }
  0x9f   : > { %4230 = vmatprep.subr.bf16.mxu0 %v4399_v39 }
  0xa0   : > { %4253 = vmatpush3.bf16.msra.mxu1 %v4398_v38 }
  0xa1   : > { %4254 = vmatprep.subr.bf16.mxu1 %v4400_v40 }
  0xa2   : > { %4231 = vmatpush3.bf16.msra.mxu0 %v4399_v39 }
  0xa3   : > { %4232 = vmatprep.subr.bf16.mxu0 %v4401_v49 }
  0xa4   : > { %4255 = vmatpush3.bf16.msra.mxu1 %v4400_v40 }
  0xa5   : > { %4256 = vmatprep.subr.bf16.mxu1 %v4402_v41 }
  0xa6   : > { %4233 = vmatpush3.bf16.msra.mxu0 %v4401_v49 }
  0xa7   : > { %4234 = vmatprep.subr.bf16.mxu0 %v4403_v42 }
  0xa8   : > { %4257 = vmatpush3.bf16.msra.mxu1 %v4402_v41 }
  0xa9   : > { %4258 = vmatprep.subr.bf16.mxu1 %v4404_v43 }
  0xaa   : > { %4235 = vmatpush3.bf16.msra.mxu0 %v4403_v42 }
  0xac   : > { %4259 = vmatpush3.bf16.msra.mxu1 %v4404_v43 }
  0xad   : > { %4237 = vmatmul.mubr.bf16.vlgmr.msra.gmra.mxu0 %v4407_v44 }
  0xae   : > { %4240 = vmatprep.mubr.bf16.mxu0 %v4409_v45 }
  0xaf   : > { %4261 = vmatmul.mubr.bf16.vlgmr.msra.gmra.mxu1 %v4408_v46 }
  0xb0   : > { %4264 = vmatprep.mubr.bf16.mxu1 %v4410_v47 }
  0xb5   : > { %4241 = vmatmul.mubr.bf16.gmra.mxu0 %v4411_v48 }
  0xb7   : > { %4265 = vmatmul.mubr.bf16.gmra.mxu1 %v4412_v50 }
  0xed   : > { %v4046_v51 = vpop.f32.mrf.mxu0 }
  0xee   : > { %v4070_v53 = vpop.f32.mrf.mxu1 }
  0xef   : > { %v1320_v52 = vpop.f32.mrf.mxu0  ;;  %v1466_v41 = vadd.f32 %v4070_v53, %v4046_v51 }
  0xf0   : > { %v1457_v55 = vpop.f32.mrf.mxu1 }
  0xf1   : > { %v4047_v54 = vpop.f32.mrf.mxu0  ;;  %v1458_v43 = vadd.f32 %v1457_v55, %v1320_v52 }
  0xf2   : > { %v4071_v58 = vpop.f32.mrf.mxu1 }
  0xf3   : > { %v1323_v56 = vpop.f32.mrf.mxu0  ;;  %v1469_v42 = vadd.f32 %v4071_v58, %v4047_v54 }
  0xf4   : > { %v1460_v60 = vpop.f32.mrf.mxu1 }
  0xf5   : > { %v4050_v57 = vpop.f32.mrf.mxu0  ;;  %v1461_v48 = vadd.f32 %v1460_v60, %v1323_v56 }
  0xf6   : > { %v4074_v61 = vpop.f32.mrf.mxu1 }
  0xf7   : > { %v1336_v59 = vpop.f32.mrf.mxu0 }
  0xf8   : > { %v1473_v63 = vpop.f32.mrf.mxu1 }
  0xf9   : > { %v4051_v62 = vpop.f32.mrf.mxu0 }
  0xfa   : > { %v4075_v4 = vpop.f32.mrf.mxu1 }
  0xfb   : > { %v4807_v0 = vpop.f32.mrf.mxu0 }
  0xfc   : > { %4881 = vst [vmem:[#allocation5_spill] sm:$0xff] %v4807_v0  ;;  %v1476_v6 = vpop.f32.mrf.mxu1  ;;  %v1474_v0 = vadd.f32 %v1473_v63, %v1336_v59 }
 0x103   : > { %v4887_v56 = vld [vmem:[#allocation5_spill] sm:$0xff] }
 0x104   : > { %v1477_v60 = vadd.f32 %v1476_v6, %v4887_v56 }
 0x10d   : > { %v4094_v3 = vpop.f32.mrf.mxu0 }
 0x10e   : > { %v4118_v7 = vpop.f32.mrf.mxu1  ;;  %v1653_v46 = vadd.f32 %v4094_v3, %v1466_v41 }
 0x10f   : > { %v1620_v5 = vpop.f32.mrf.mxu0 }
 0x110   : > { %v1791_v9 = vpop.f32.mrf.mxu1  ;;  %v1651_v50 = vadd.f32 %v1620_v5, %v1458_v43  ;;  %v1824_v54 = vadd.f32 %v4118_v7, %v1653_v46 }
 0x111   : > { %v4095_v8 = vpop.f32.mrf.mxu0 }
 0x112   : > { %v4119_v11 = vpop.f32.mrf.mxu1  ;;  %v1654_v47 = vadd.f32 %v4095_v8, %v1469_v42  ;;  %v1822_v55 = vadd.f32 %v1791_v9, %v1651_v50 }
 0x113   : > { %v1623_v10 = vpop.f32.mrf.mxu0 }
 0x114   : > { %v1794_v13 = vpop.f32.mrf.mxu1  ;;  %v1652_v51 = vadd.f32 %v1623_v10, %v1461_v48  ;;  %v1825_v58 = vadd.f32 %v4119_v11, %v1654_v47 }
 0x115   : > { %v4098_v12 = vpop.f32.mrf.mxu0 }
 0x116   : > { %v4122_v15 = vpop.f32.mrf.mxu1  ;;  %v1823_v5 = vadd.f32 %v1794_v13, %v1652_v51 }
 0x117   : > { %v1636_v14 = vpop.f32.mrf.mxu0 }
 0x118   : > { %v1807_v17 = vpop.f32.mrf.mxu1 }
 0x119   : > { %v4099_v16 = vpop.f32.mrf.mxu0 }
 0x11a   : > { %v4123_v19 = vpop.f32.mrf.mxu1 }
 0x11b   : > { %v1639_v18 = vpop.f32.mrf.mxu0 }
 0x11c   : > { %v4809_v21 = vpop.f32.mrf.mxu1  ;;  %v1656_v59 = vadd.f32 %v1639_v18, %v1477_v60 }
 0x11d   : > { %4882 = vst [vmem:[#allocation6_spill] sm:$0xff] %v4809_v21 }
 0x12d   : > { %v4142_v20 = vpop.f32.mrf.mxu0 }
 0x12e   : > { %v1995_v8 = vadd.f32 %v4142_v20, %v1824_v54 }
 0x12f   : > { %v1962_v22 = vpop.f32.mrf.mxu0  ;;  %v4166_v23 = vpop.f32.mrf.mxu1 }
 0x130   : > { %v1993_v43 = vadd.f32 %v1962_v22, %v1822_v55  ;;  %v2166_v7 = vadd.f32 %v4166_v23, %v1995_v8 }
 0x131   : > { %v4143_v24 = vpop.f32.mrf.mxu0  ;;  %v2133_v25 = vpop.f32.mrf.mxu1 }
 0x132   : > { %v1996_v42 = vadd.f32 %v4143_v24, %v1825_v58  ;;  %v2164_v9 = vadd.f32 %v2133_v25, %v1993_v43  ;;  %v4888_v24 = vld [vmem:[#allocation6_spill] sm:$0xff] }
 0x133   : > { %v1965_v26 = vpop.f32.mrf.mxu0  ;;  %v4167_v27 = vpop.f32.mrf.mxu1  ;;  %v1827_v6 = vadd.f32 %v4888_v24, %v1656_v59 }
 0x134   : > { %v1994_v63 = vadd.f32 %v1965_v26, %v1823_v5  ;;  %v2167_v10 = vadd.f32 %v4167_v27, %v1996_v42 }
 0x135   : > { %v4146_v28 = vpop.f32.mrf.mxu0  ;;  %v2136_v1 = vpop.f32.mrf.mxu1 }
 0x136   : > { %v2165_v13 = vadd.f32 %v2136_v1, %v1994_v63 }
 0x137   : > { %v1978_v2 = vpop.f32.mrf.mxu0  ;;  %v4170_v29 = vpop.f32.mrf.mxu1 }
 0x139   : > { %v4147_v30 = vpop.f32.mrf.mxu0  ;;  %v2149_v31 = vpop.f32.mrf.mxu1 }
 0x13b   : > { %v1981_v32 = vpop.f32.mrf.mxu0  ;;  %v4171_v33 = vpop.f32.mrf.mxu1 }
 0x13c   : > { %v1998_v26 = vadd.f32 %v1981_v32, %v1827_v6 }
 0x13d   : > { %v4811_v35 = vpop.f32.mrf.mxu1 }
 0x13e   : > { %4883 = vst [vmem:[#allocation7_spill] sm:$0xff] %v4811_v35  ;;  %v1482_v35 = vadd.f32 %v4074_v61, %v4050_v57 }
 0x140   : > { %v1657_v52 = vadd.f32 %v4098_v12, %v1482_v35 }
 0x142   : > { %v1828_v57 = vadd.f32 %v4122_v15, %v1657_v52 }
 0x144   : > { %v1999_v11 = vadd.f32 %v4146_v28, %v1828_v57 }
 0x145   : > { %v4890_v48 = vld [vmem:[#allocation7_spill] sm:$0xff] }
 0x146   : > { %v2170_v18 = vadd.f32 %v4170_v29, %v1999_v11  ;;  %v2169_v29 = vadd.f32 %v4890_v48, %v1998_v26 }
 0x14d   : > { %v4190_v34 = vpop.f32.mrf.mxu0 }
 0x14f   : > { %v4214_v36 = vpop.f32.mrf.mxu1  ;;  %v2304_v37 = vpop.f32.mrf.mxu0 }
 0x150   : > { %v2335_v22 = vadd.f32 %v2304_v37, %v2164_v9 }
 0x151   : > { %v4813_v38 = vpop.f32.mrf.mxu1  ;;  %v4191_v39 = vpop.f32.mrf.mxu0 }
 0x152   : > { %4884 = vst [vmem:[#allocation8_spill] sm:$0xff] %v4813_v38  ;;  %v1485_v38 = vadd.f32 %v4075_v4, %v4051_v62  ;;  %v2338_v20 = vadd.f32 %v4191_v39, %v2167_v10 }
 0x153   : > { %v4215_v40 = vpop.f32.mrf.mxu1  ;;  %v2307_v49 = vpop.f32.mrf.mxu0 }
 0x154   : > { %v1658_v3 = vadd.f32 %v4099_v16, %v1485_v38  ;;  %v2337_v16 = vadd.f32 %v4190_v34, %v2166_v7  ;;  %v2336_v27 = vadd.f32 %v2307_v49, %v2165_v13 }
 0x155   : > { %v4815_v44 = vpop.f32.mrf.mxu1  ;;  %v4194_v45 = vpop.f32.mrf.mxu0 }
 0x156   : > { %4885 = vst [vmem:[#allocation9_spill] sm:$0xff] %v4815_v44  ;;  %v1655_v44 = vadd.f32 %v1636_v14, %v1474_v0  ;;  %v1829_v62 = vadd.f32 %v4123_v19, %v1658_v3  ;;  %v2341_v35 = vadd.f32 %v4194_v45, %v2170_v18 }
 0x157   : > { %v4817_v21 = vpop.f32.mrf.mxu1  ;;  %v2320_v53 = vpop.f32.mrf.mxu0 }
 0x158   : > { %4886 = vst [vmem:[#allocation10_spill] sm:$0xff] %v4817_v21  ;;  %v1826_v61 = vadd.f32 %v1807_v17, %v1655_v44  ;;  %v2000_v12 = vadd.f32 %v4147_v30, %v1829_v62  ;;  %v2509_v30 = vadd.f32 %v4215_v40, %v2338_v20 }
 0x159   : > { %v2491_v41 = vpop.f32.mrf.mxu1  ;;  %v4195_v21 = vpop.f32.mrf.mxu0  ;;  %v4889_v34 = vld [vmem:[#allocation8_spill] sm:$0xff] }
 0x15a   : > { %v1997_v0 = vadd.f32 %v1978_v2, %v1826_v61  ;;  %v2171_v23 = vadd.f32 %v4171_v33, %v2000_v12  ;;  %v2508_v2 = vadd.f32 %v4214_v36, %v2337_v16  ;;  %v2506_v38 = vadd.f32 %v4889_v34, %v2335_v22 }
 0x15b   : > { %v4219_v4 = vpop.f32.mrf.mxu1  ;;  %v2323_v14 = vpop.f32.mrf.mxu0 }
 0x15c   : > { %v2168_v19 = vadd.f32 %v2149_v31, %v1997_v0  ;;  %v2342_v44 = vadd.f32 %v4195_v21, %v2171_v23 }
 0x15d   : > { %v4821_v15 = vpop.f32.mrf.mxu1  ;;  %v4891_v31 = vld [vmem:[#allocation9_spill] sm:$0xff] }
 0x15e   : > { %v2339_v39 = vadd.f32 %v2320_v53, %v2168_v19  ;;  %v2507_v32 = vadd.f32 %v4891_v31, %v2336_v27  ;;  %v2340_v53 = vadd.f32 %v2323_v14, %v2169_v29  ;;  %v2513_v54 = vadd.f32 %v4219_v4, %v2342_v44 }
 0x15f   : > { %v4892_v40 = vld [vmem:[#allocation10_spill] sm:$0xff] }
 0x160   : > { %v2512_v49 = vadd.f32 %v4892_v40, %v2341_v35  ;;  %v2510_v51 = vadd.f32 %v2491_v41, %v2339_v39  ;;  %v2511_v6 = vadd.f32 %v4821_v15, %v2340_v53 }
 0x16d   : > { %v4238_v17 = vpop.f32.mrf.mxu0 }
 0x16e   : > { %v2679_v46 = vadd.f32 %v4238_v17, %v2508_v2 }
 0x16f   : > { %v4262_v28 = vpop.f32.mrf.mxu1  ;;  %v2646_v25 = vpop.f32.mrf.mxu0 }
 0x170   : > { %v2677_v33 = vadd.f32 %v2646_v25, %v2506_v38  ;;  %v2717_v41 = vmul.f32 %v2679_v46, %v2679_v46  ;;  %v2930_v62 = vmul.f32 %v4262_v28, %v4262_v28 }
 0x171   : > { %v2867_v1 = vpop.f32.mrf.mxu1  ;;  %v4239_v37 = vpop.f32.mrf.mxu0 }
 0x172   : > { %v2680_v47 = vadd.f32 %v4239_v37, %v2509_v30  ;;  %v2928_v3 = vmul.f32 %v2867_v1, %v2867_v1  ;;  %v2715_v60 = vmul.f32 %v2677_v33, %v2677_v33 }
 0x173   : > { %v4263_v21 = vpop.f32.mrf.mxu1  ;;  %v2649_v36 = vpop.f32.mrf.mxu0 }
 0x174   : > { %v3843_v45 = vpack.c.bf16 %v2680_v47, %v2679_v46  ;;  %v3863_v50 = vpack.c.bf16 %v4263_v21, %v4262_v28  ;;  %v2678_v58 = vadd.f32 %v2649_v36, %v2507_v32  ;;  %v2931_v7 = vmul.f32 %v4263_v21, %v4263_v21 }
 0x175   : > { %v2870_v52 = vpop.f32.mrf.mxu1  ;;  %v4242_v55 = vpop.f32.mrf.mxu0  ;;  %v2718_v13 = vmul.f32 %v2680_v47, %v2680_v47 }
 0x176   : > { %3902 = vst [vmem:[%s4830_s20 + $0x8] sm:$0xff] %v3843_v45   ;;  %3905 = vst [vmem:[%s4835_s14 + $0x8] sm:$0xff] %v3863_v50   ;;  %v3858_v8 = vpack.c.bf16 %v2870_v52, %v2867_v1  ;;  %v2914_v42 = vadd.f32 %v2870_v52, %v2867_v1  ;;  %v2929_v56 = vmul.f32 %v2870_v52, %v2870_v52 }
 0x177   : > { %v3838_v5 = vpack.c.bf16 %v2678_v58, %v2677_v33  ;;  %v2701_v43 = vadd.f32 %v2678_v58, %v2677_v33  ;;  %v2716_v57 = vmul.f32 %v2678_v58, %v2678_v58  ;;  %v4266_v61 = vpop.f32.mrf.mxu1  ;;  %v2662_v59 = vpop.f32.mrf.mxu0  ;;  %v2683_v16 = vadd.f32 %v4242_v55, %v2512_v49 }
 0x178   : > { %3859 = vst [vmem:[%s4835_s14] sm:$0xff] %v3858_v8   ;;  %v2915_v63 = vadd.f32 %v4262_v28, %v2914_v42  ;;  %v2936_v4 = vadd.f32 %v2929_v56, %v2928_v3  ;;  %v2681_v9 = vadd.f32 %v2662_v59, %v2510_v51  ;;  %v2934_v31 = vmul.f32 %v4266_v61, %v4266_v61 }
 0x179   : > { %3839 = vst [vmem:[%s4830_s20] sm:$0xff] %v3838_v5   ;;  %v2702_v10 = vadd.f32 %v2701_v43, %v2679_v46  ;;  %v2723_v11 = vadd.f32 %v2716_v57, %v2715_v60  ;;  %v2883_v0 = vpop.f32.mrf.mxu1  ;;  %v4243_v12 = vpop.f32.mrf.mxu0  ;;  %v2721_v33 = vmul.f32 %v2683_v16, %v2683_v16 }
 0x17a   : > { %v2937_v14 = vadd.f32 %v2936_v4, %v2930_v62  ;;  %v2916_v20 = vadd.f32 %v4263_v21, %v2915_v63  ;;  %v2684_v24 = vadd.f32 %v4243_v12, %v2513_v54  ;;  %v2932_v23 = vmul.f32 %v2883_v0, %v2883_v0 }
 0x17b   : > { %v2724_v22 = vadd.f32 %v2723_v11, %v2717_v41  ;;  %v2703_v17 = vadd.f32 %v2702_v10, %v2680_v47  ;;  %v4267_v18 = vpop.f32.mrf.mxu1  ;;  %v2665_v19 = vpop.f32.mrf.mxu0  ;;  %v2719_v2 = vmul.f32 %v2681_v9, %v2681_v9 }
 0x17c   : > { %v2917_v26 = vadd.f32 %v2916_v20, %v2883_v0  ;;  %v2938_v27 = vadd.f32 %v2937_v14, %v2931_v7  ;;  %v3853_v28 = vpack.c.bf16 %v2684_v24, %v2683_v16  ;;  %v3873_v35 = vpack.c.bf16 %v4267_v18, %v4266_v61 }
 0x17d   : > { %v2704_v25 = vadd.f32 %v2703_v17, %v2681_v9  ;;  %v2725_v30 = vadd.f32 %v2724_v22, %v2718_v13  ;;  %v2886_v34 = vpop.f32.mrf.mxu1  ;;  %v2682_v15 = vadd.f32 %v2665_v19, %v2511_v6  ;;  %v2935_v49 = vmul.f32 %v4267_v18, %v4267_v18 }
 0x17e   : > { %v2939_v38 = vadd.f32 %v2938_v27, %v2932_v23  ;;  %3904 = vst [vmem:[%s4830_s20 + $0x18] sm:$0xff] %v3853_v28   ;;  %v3868_v39 = vpack.c.bf16 %v2886_v34, %v2883_v0  ;;  %v2918_v44 = vadd.f32 %v2917_v26, %v2886_v34  ;;  %3907 = vst [vmem:[%s4835_s14 + $0x18] sm:$0xff] %v3873_v35  }
 0x17f   : > { %v2726_v1 = vadd.f32 %v2725_v30, %v2719_v2  ;;  %v2933_v37 = vmul.f32 %v2886_v34, %v2886_v34  ;;  %v3848_v46 = vpack.c.bf16 %v2682_v15, %v2681_v9  ;;  %v2705_v47 = vadd.f32 %v2704_v25, %v2682_v15 }
 0x180   : > { %v2720_v48 = vmul.f32 %v2682_v15, %v2682_v15  ;;  %3906 = vst [vmem:[%s4835_s14 + $0x10] sm:$0xff] %v3868_v39   ;;  %v2919_v29 = vadd.f32 %v4266_v61, %v2918_v44  ;;  %v2722_v50 = vmul.f32 %v2684_v24, %v2684_v24 }
 0x181   : > { %v2940_v32 = vadd.f32 %v2939_v38, %v2933_v37  ;;  %3903 = vst [vmem:[%s4830_s20 + $0x10] sm:$0xff] %v3848_v46   ;;  %v2706_v21 = vadd.f32 %v2705_v47, %v2683_v16 }
 0x182   : > { %v2727_v36 = vadd.f32 %v2726_v1, %v2720_v48  ;;  %v2920_v40 = vadd.f32 %v4267_v18, %v2919_v29 }
 0x183   : > { %v2941_v45 = vadd.f32 %v2940_v32, %v2934_v31  ;;  %v2707_v51 = vadd.f32 %v2706_v21, %v2684_v24 }
 0x184   : > { %v2728_v53 = vadd.f32 %v2727_v36, %v2721_v33  ;;  %v2921_v54 = vrot.slane %v2920_v40, 4 }
 0x185   : > { %v2942_v58 = vadd.f32 %v2941_v45, %v2935_v49  ;;  %v2708_v52 = vrot.slane %v2707_v51, 4 }
 0x186   : > { %v2729_v55 = vadd.f32 %v2728_v53, %v2722_v50  ;;  %v2922_v3 = vadd.f32 %v2921_v54, %v2920_v40 }
 0x187   : > { %v2943_v8 = vrot.slane %v2942_v58, 4  ;;  %v2709_v42 = vadd.f32 %v2708_v52, %v2707_v51 }
 0x188   : > { %v2730_v56 = vrot.slane %v2729_v55, 4  ;;  %v2923_v60 = vrot.slane %v2922_v3, 2 }
 0x189   : > { %v2944_v5 = vadd.f32 %v2943_v8, %v2942_v58  ;;  %v2710_v43 = vrot.slane %v2709_v42, 2 }
 0x18a   : > { %v2731_v57 = vadd.f32 %v2730_v56, %v2729_v55  ;;  %v2924_v61 = vadd.f32 %v2923_v60, %v2922_v3 }
 0x18b   : > { %v2945_v59 = vrot.slane %v2944_v5, 2  ;;  %v2711_v41 = vadd.f32 %v2710_v43, %v2709_v42 }
 0x18c   : > { %v2732_v62 = vrot.slane %v2731_v57, 2  ;;  %v2925_v63 = vrot.slane %v2924_v61, 1 }
 0x18d   : > { %v2946_v4 = vadd.f32 %v2945_v59, %v2944_v5  ;;  %v2712_v7 = vrot.slane %v2711_v41, 1 }
 0x18e   : > { %v2733_v10 = vadd.f32 %v2732_v62, %v2731_v57  ;;  %v2926_v11 = vadd.f32 %v2925_v63, %v2924_v61 }
 0x18f   : > { %v2947_v9 = vrot.slane %v2946_v4, 1  ;;  %v2713_v0 = vadd.f32 %v2712_v7, %v2711_v41 }
 0x190   : > { %v2734_v12 = vrot.slane %v2733_v10, 1  ;;  %2927 = vst [vmem:[%s438_s25] sm:$0x1] %v2926_v11 }
 0x191   : > { %v2948_v14 = vadd.f32 %v2947_v9, %v2946_v4  ;;  %2714 = vst [vmem:[%s418_s10] sm:$0x1] %v2713_v0 }
 0x192   : > { %v2735_v16 = vadd.f32 %v2734_v12, %v2733_v10 }
 0x193   : > { %2949 = vst [vmem:[%s444_s13] sm:$0x1] %v2948_v14 }
 0x194   : > { %2736 = vst [vmem:[%s424_s17] sm:$0x1] %v2735_v16 }
 0x195 PF: > { %s19_s29 = sadd.s32 1, %s4435_s29   ;;  %s4893_s27 = smov %s4431_s28 }
 0x196   : > { %p16_p5 = scmp.ge.s32.totalorder %s19_s29, 4   ;;  %s4894_s28 = smov %s4896_s30 }
 0x198   :  { %18 = sbr.rel (!%p16_p5) target bundleno = 2 (0x2), region = 214 }

</bundles_post_ra>
